<compile_context>
chip_gen: v7x
topology: tpu7x:2x2x1
jax: 0.10.0
libtpu: 0.0.40
codegen_flags: <defaults>
</compile_context>

<pallas_src>
import jax
import jax.numpy as jnp
from jax.experimental import pallas as pl
from jax.experimental.pallas import tpu as pltpu


def decoder_kernel(x_ref, w_in_ref, b_in_ref, w_hid_ref, b_hid_ref,
                   w_head_ref, b_head_ref, out_ref):
    # DeepNN input projection: Linear(latent -> hidden) + ReLU.
    # bf16 MXU operands, f32 accumulation; bias add / ReLU stay in f32 on the VPU.
    h = jnp.dot(x_ref[...].astype(jnp.bfloat16), w_in_ref[...],
                preferred_element_type=jnp.float32) + b_in_ref[...]
    h = jnp.maximum(h, 0.0)

    # Hidden stack, fully unrolled (layer count is static from the ref shape):
    # Linear(hidden -> hidden) + ReLU, 100 layers.  Static index -> static slice.
    n_layers = w_hid_ref.shape[0]
    for i in range(n_layers):
        h = jnp.dot(h.astype(jnp.bfloat16), w_hid_ref[i],
                    preferred_element_type=jnp.float32) + b_hid_ref[i]
        h = jnp.maximum(h, 0.0)

    # Fused head: (DeepNN output Linear, no activation) o (fc_output) collapsed into one
    # Linear at param-prep time.
    out = jnp.dot(h.astype(jnp.bfloat16), w_head_ref[...],
                  preferred_element_type=jnp.float32) + b_head_ref[...]
    out_ref[...] = out.astype(out_ref.dtype)


def _choose_batch_tile(batch, max_tile=256):
    """Largest multiple-of-8 divisor of `batch` that is <= max_tile (else the whole batch)."""
    if batch <= max_tile:
        return batch
    for t in range(max_tile, 7, -8):
        if batch % t == 0:
            return t
    return batch


def decoder_forward(x, kp):
    """Full Decoder forward pass in a single Pallas call; weights stay VMEM-resident."""
    B, latent_dim = x.shape
    O = kp["w_head"].shape[1]

    tile_b = _choose_batch_tile(B)
    grid = (pl.cdiv(B, tile_b),)

    def full(shape):
        # Whole-array VMEM block; same block index every grid step -> fetched once, resident.
        zeros = (0,) * len(shape)
        return pl.BlockSpec(shape, lambda i: zeros)

    fn = pl.pallas_call(
        decoder_kernel,
        out_shape=jax.ShapeDtypeStruct((B, O), jnp.float32),
        grid=grid,
        in_specs=[
            pl.BlockSpec((tile_b, latent_dim), lambda i: (i, 0)),   # x: tiled over batch
            full(kp["w_in"].shape),
            full(kp["b_in"].shape),
            full(kp["w_hid"].shape),
            full(kp["b_hid"].shape),
            full(kp["w_head"].shape),
            full(kp["b_head"].shape),
        ],
        out_specs=pl.BlockSpec((tile_b, O), lambda i: (i, 0)),
        # v7x: batch tiles shard across both TensorCores; v5e/v6e (1 TC) unaffected.
        compiler_params=pltpu.CompilerParams(dimension_semantics=("parallel",)),
    )
    return fn(x, kp["w_in"], kp["b_in"], kp["w_hid"], kp["b_hid"],
              kp["w_head"], kp["b_head"])


def init_decoder_params(key, latent_dim, hidden_dim, output_dim, num_layers):
    """PyTorch-Linear-style init (uniform +-1/sqrt(fan_in)); weights stored as [in, out], f32."""
    def lin(k, fan_in, fan_out):
        kw, kb = jax.random.split(k)
        bound = 1.0 / jnp.sqrt(fan_in)
        w = jax.random.uniform(kw, (fan_in, fan_out), jnp.float32, -bound, bound)
        b = jax.random.uniform(kb, (1, fan_out), jnp.float32, -bound, bound)
        return w, b

    keys = jax.random.split(key, 3 + num_layers)
    w_in, b_in = lin(keys[0], latent_dim, hidden_dim)

    w_hid_list, b_hid_list = [], []
    for i in range(num_layers):
        w, b = lin(keys[1 + i], hidden_dim, hidden_dim)
        w_hid_list.append(w)
        b_hid_list.append(b[None])                  # [1, 1, H]
    w_hid = jnp.stack(w_hid_list, axis=0)           # [L, H, H]
    b_hid = jnp.concatenate(b_hid_list, axis=0)     # [L, 1, H]

    w_dout, b_dout = lin(keys[1 + num_layers], hidden_dim, hidden_dim)
    w_fc, b_fc = lin(keys[2 + num_layers], hidden_dim, output_dim)

    return dict(w_in=w_in, b_in=b_in, w_hid=w_hid, b_hid=b_hid,
                w_dout=w_dout, b_dout=b_dout, w_fc=w_fc, b_fc=b_fc)


def prepare_kernel_params(p):
    """Fold the two trailing bias-only Linears into one head; cast matmul weights to bf16."""
    w_head = (p["w_dout"] @ p["w_fc"]).astype(jnp.bfloat16)   # [H, O]
    b_head = p["b_dout"] @ p["w_fc"] + p["b_fc"]              # [1, O], f32
    return dict(w_in=p["w_in"].astype(jnp.bfloat16), b_in=p["b_in"],
                w_hid=p["w_hid"].astype(jnp.bfloat16), b_hid=p["b_hid"],
                w_head=w_head, b_head=b_head)


def decoder_reference_kernel_math(x, kp):
    """Plain-JAX reference using the SAME math as the kernel (bf16 operands, f32 accum, fused head)."""
    h = jnp.dot(x.astype(jnp.bfloat16), kp["w_in"],
                preferred_element_type=jnp.float32) + kp["b_in"]
    h = jnp.maximum(h, 0.0)
    for i in range(kp["w_hid"].shape[0]):
        h = jnp.dot(h.astype(jnp.bfloat16), kp["w_hid"][i],
                    preferred_element_type=jnp.float32) + kp["b_hid"][i]
        h = jnp.maximum(h, 0.0)
    return jnp.dot(h.astype(jnp.bfloat16), kp["w_head"],
                   preferred_element_type=jnp.float32) + kp["b_head"]


def decoder_reference_f32(x, p):
    """Full-precision, unfused reference of the original module (numerics sanity check)."""
    h = jnp.maximum(x @ p["w_in"] + p["b_in"], 0.0)
    for i in range(p["w_hid"].shape[0]):
        h = jnp.maximum(h @ p["w_hid"][i] + p["b_hid"][i], 0.0)
    h = h @ p["w_dout"] + p["b_dout"]
    return h @ p["w_fc"] + p["b_fc"]


if __name__ == "__main__":
    LATENT_DIM = 8
    HIDDEN_DIM = 32
    OUTPUT_DIM = 16
    NUM_LAYERS = 100   # matches DeepNN(latent, hidden, hidden, 100) in Decoder.__init__
    BATCH = 8

    key = jax.random.PRNGKey(0)
    k_param, k_x = jax.random.split(key)

    params = init_decoder_params(k_param, LATENT_DIM, HIDDEN_DIM, OUTPUT_DIM, NUM_LAYERS)
    kparams = prepare_kernel_params(params)
    x = jax.random.normal(k_x, (BATCH, LATENT_DIM), jnp.float32)

    out = jax.block_until_ready(decoder_forward(x, kparams))
    assert out.shape == (BATCH, OUTPUT_DIM)

    # 1) Tight check: kernel vs a JAX reference with identical math (verifies the Pallas kernel).
    ref_same_math = decoder_reference_kernel_math(x, kparams)
    assert jnp.allclose(out, ref_same_math, atol=1e-4, rtol=1e-4), \
        "Pallas output mismatch vs math-matched JAX reference"

    # 2) Loose check: bf16-MXU numerics vs the full-precision unfused module.  The 100-layer
    #    stack is contracting so the deviation is tiny; require <5% relative L2 error.
    ref_f32 = decoder_reference_f32(x, params)
    rel = jnp.linalg.norm(out - ref_f32) / (jnp.linalg.norm(ref_f32) + 1e-12)
    assert float(rel) < 5e-2, f"bf16 kernel deviates from f32 module reference: rel={float(rel)}"

    print("KERNEL_OK")
</pallas_src>

<mosaic_0001>
module attributes {stable_mosaic.version = 11 : i64} {
  func.func @decoder_kernel(%arg0: i32, %arg1: memref<8x8xf32, #tpu.memory_space<vmem>>, %arg2: memref<8x32xbf16, #tpu.memory_space<vmem>>, %arg3: memref<1x32xf32, #tpu.memory_space<vmem>>, %arg4: memref<100x32x32xbf16, #tpu.memory_space<vmem>>, %arg5: memref<100x1x32xf32, #tpu.memory_space<vmem>>, %arg6: memref<32x16xbf16, #tpu.memory_space<vmem>>, %arg7: memref<1x16xf32, #tpu.memory_space<vmem>>, %arg8: memref<8x16xf32, #tpu.memory_space<vmem>>) attributes {dimension_semantics = [#tpu.dimension_semantics<parallel>], iteration_bounds = array<i64: 1>, scalar_prefetch = 0 : i64, scratch_operands = 0 : i64, tpu.core_type = #tpu.core_type<tc>, window_params = [{transform_indices = @transform_0, window_bounds = array<i64: 8, 8>}, {pipeline_mode = #tpu.pipeline_mode<synchronous>, transform_indices = @transform_1, window_bounds = array<i64: 8, 32>}, {pipeline_mode = #tpu.pipeline_mode<synchronous>, transform_indices = @transform_2, window_bounds = array<i64: 1, 32>}, {pipeline_mode = #tpu.pipeline_mode<synchronous>, transform_indices = @transform_3, window_bounds = array<i64: 100, 32, 32>}, {pipeline_mode = #tpu.pipeline_mode<synchronous>, transform_indices = @transform_4, window_bounds = array<i64: 100, 1, 32>}, {pipeline_mode = #tpu.pipeline_mode<synchronous>, transform_indices = @transform_5, window_bounds = array<i64: 32, 16>}, {pipeline_mode = #tpu.pipeline_mode<synchronous>, transform_indices = @transform_6, window_bounds = array<i64: 1, 16>}, {transform_indices = @transform_7, window_bounds = array<i64: 8, 16>}]} {
    %c0 = arith.constant 0 : index
    %c0_0 = arith.constant 0 : index
    %0 = vector.load %arg1[%c0, %c0_0] : memref<8x8xf32, #tpu.memory_space<vmem>>, vector<8x8xf32>
    %1 = arith.truncf %0 : vector<8x8xf32> to vector<8x8xbf16>
    %c0_1 = arith.constant 0 : index
    %c0_2 = arith.constant 0 : index
    %2 = vector.load %arg2[%c0_1, %c0_2] : memref<8x32xbf16, #tpu.memory_space<vmem>>, vector<8x32xbf16>
    %cst = arith.constant dense<0.000000e+00> : vector<8x32xf32>
    %3 = tpu.matmul %1, %2, %cst {dimension_numbers = #tpu.dot_dimension_numbers<[1], [0], [0], [1], [0, 0, 1, 1], [], []>} : vector<8x8xbf16>, vector<8x32xbf16>, vector<8x32xf32> -> vector<8x32xf32>
    %c0_3 = arith.constant 0 : index
    %c0_4 = arith.constant 0 : index
    %4 = vector.load %arg3[%c0_3, %c0_4] : memref<1x32xf32, #tpu.memory_space<vmem>>, vector<1x32xf32>
    %5 = vector.broadcast %4 : vector<1x32xf32> to vector<8x32xf32>
    %6 = arith.addf %3, %5 : vector<8x32xf32>
    %cst_5 = arith.constant 0.000000e+00 : f32
    %7 = vector.broadcast %cst_5 : f32 to vector<8x32xf32>
    %8 = arith.maximumf %6, %7 : vector<8x32xf32>
    %9 = arith.truncf %8 : vector<8x32xf32> to vector<8x32xbf16>
    %c0_6 = arith.constant 0 : index
    %c0_7 = arith.constant 0 : index
    %c0_8 = arith.constant 0 : index
    %10 = vector.load %arg4[%c0_6, %c0_7, %c0_8] : memref<100x32x32xbf16, #tpu.memory_space<vmem>>, vector<1x32x32xbf16>
    %11 = vector.shape_cast %10 : vector<1x32x32xbf16> to vector<32x32xbf16>
    %cst_9 = arith.constant dense<0.000000e+00> : vector<8x32xf32>
    %12 = tpu.matmul %9, %11, %cst_9 {dimension_numbers = #tpu.dot_dimension_numbers<[1], [0], [0], [1], [0, 0, 1, 1], [], []>} : vector<8x32xbf16>, vector<32x32xbf16>, vector<8x32xf32> -> vector<8x32xf32>
    %c0_10 = arith.constant 0 : index
    %c0_11 = arith.constant 0 : index
    %c0_12 = arith.constant 0 : index
    %13 = vector.load %arg5[%c0_10, %c0_11, %c0_12] : memref<100x1x32xf32, #tpu.memory_space<vmem>>, vector<1x1x32xf32>
    %14 = vector.shape_cast %13 : vector<1x1x32xf32> to vector<1x32xf32>
    %15 = vector.broadcast %14 : vector<1x32xf32> to vector<8x32xf32>
    %16 = arith.addf %12, %15 : vector<8x32xf32>
    %cst_13 = arith.constant 0.000000e+00 : f32
    %17 = vector.broadcast %cst_13 : f32 to vector<8x32xf32>
    %18 = arith.maximumf %16, %17 : vector<8x32xf32>
    %19 = arith.truncf %18 : vector<8x32xf32> to vector<8x32xbf16>
    %c1 = arith.constant 1 : index
    %c0_14 = arith.constant 0 : index
    %c0_15 = arith.constant 0 : index
    %20 = vector.load %arg4[%c1, %c0_14, %c0_15] : memref<100x32x32xbf16, #tpu.memory_space<vmem>>, vector<1x32x32xbf16>
    %21 = vector.shape_cast %20 : vector<1x32x32xbf16> to vector<32x32xbf16>
    %cst_16 = arith.constant dense<0.000000e+00> : vector<8x32xf32>
    %22 = tpu.matmul %19, %21, %cst_16 {dimension_numbers = #tpu.dot_dimension_numbers<[1], [0], [0], [1], [0, 0, 1, 1], [], []>} : vector<8x32xbf16>, vector<32x32xbf16>, vector<8x32xf32> -> vector<8x32xf32>
    %c1_17 = arith.constant 1 : index
    %c0_18 = arith.constant 0 : index
    %c0_19 = arith.constant 0 : index
    %23 = vector.load %arg5[%c1_17, %c0_18, %c0_19] : memref<100x1x32xf32, #tpu.memory_space<vmem>>, vector<1x1x32xf32>
    %24 = vector.shape_cast %23 : vector<1x1x32xf32> to vector<1x32xf32>
    %25 = vector.broadcast %24 : vector<1x32xf32> to vector<8x32xf32>
    %26 = arith.addf %22, %25 : vector<8x32xf32>
    %cst_20 = arith.constant 0.000000e+00 : f32
    %27 = vector.broadcast %cst_20 : f32 to vector<8x32xf32>
    %28 = arith.maximumf %26, %27 : vector<8x32xf32>
    %29 = arith.truncf %28 : vector<8x32xf32> to vector<8x32xbf16>
    %c2 = arith.constant 2 : index
    %c0_21 = arith.constant 0 : index
    %c0_22 = arith.constant 0 : index
    %30 = vector.load %arg4[%c2, %c0_21, %c0_22] : memref<100x32x32xbf16, #tpu.memory_space<vmem>>, vector<1x32x32xbf16>
    %31 = vector.shape_cast %30 : vector<1x32x32xbf16> to vector<32x32xbf16>
    %cst_23 = arith.constant dense<0.000000e+00> : vector<8x32xf32>
    %32 = tpu.matmul %29, %31, %cst_23 {dimension_numbers = #tpu.dot_dimension_numbers<[1], [0], [0], [1], [0, 0, 1, 1], [], []>} : vector<8x32xbf16>, vector<32x32xbf16>, vector<8x32xf32> -> vector<8x32xf32>
    %c2_24 = arith.constant 2 : index
    %c0_25 = arith.constant 0 : index
    %c0_26 = arith.constant 0 : index
    %33 = vector.load %arg5[%c2_24, %c0_25, %c0_26] : memref<100x1x32xf32, #tpu.memory_space<vmem>>, vector<1x1x32xf32>
    %34 = vector.shape_cast %33 : vector<1x1x32xf32> to vector<1x32xf32>
    %35 = vector.broadcast %34 : vector<1x32xf32> to vector<8x32xf32>
    %36 = arith.addf %32, %35 : vector<8x32xf32>
    %cst_27 = arith.constant 0.000000e+00 : f32
    %37 = vector.broadcast %cst_27 : f32 to vector<8x32xf32>
    %38 = arith.maximumf %36, %37 : vector<8x32xf32>
    %39 = arith.truncf %38 : vector<8x32xf32> to vector<8x32xbf16>
    %c3 = arith.constant 3 : index
    %c0_28 = arith.constant 0 : index
    %c0_29 = arith.constant 0 : index
    %40 = vector.load %arg4[%c3, %c0_28, %c0_29] : memref<100x32x32xbf16, #tpu.memory_space<vmem>>, vector<1x32x32xbf16>
    %41 = vector.shape_cast %40 : vector<1x32x32xbf16> to vector<32x32xbf16>
    %cst_30 = arith.constant dense<0.000000e+00> : vector<8x32xf32>
    %42 = tpu.matmul %39, %41, %cst_30 {dimension_numbers = #tpu.dot_dimension_numbers<[1], [0], [0], [1], [0, 0, 1, 1], [], []>} : vector<8x32xbf16>, vector<32x32xbf16>, vector<8x32xf32> -> vector<8x32xf32>
    %c3_31 = arith.constant 3 : index
    %c0_32 = arith.constant 0 : index
    %c0_33 = arith.constant 0 : index
    %43 = vector.load %arg5[%c3_31, %c0_32, %c0_33] : memref<100x1x32xf32, #tpu.memory_space<vmem>>, vector<1x1x32xf32>
    %44 = vector.shape_cast %43 : vector<1x1x32xf32> to vector<1x32xf32>
    %45 = vector.broadcast %44 : vector<1x32xf32> to vector<8x32xf32>
    %46 = arith.addf %42, %45 : vector<8x32xf32>
    %cst_34 = arith.constant 0.000000e+00 : f32
    %47 = vector.broadcast %cst_34 : f32 to vector<8x32xf32>
    %48 = arith.maximumf %46, %47 : vector<8x32xf32>
    %49 = arith.truncf %48 : vector<8x32xf32> to vector<8x32xbf16>
    %c4 = arith.constant 4 : index
    %c0_35 = arith.constant 0 : index
    %c0_36 = arith.constant 0 : index
    %50 = vector.load %arg4[%c4, %c0_35, %c0_36] : memref<100x32x32xbf16, #tpu.memory_space<vmem>>, vector<1x32x32xbf16>
    %51 = vector.shape_cast %50 : vector<1x32x32xbf16> to vector<32x32xbf16>
    %cst_37 = arith.constant dense<0.000000e+00> : vector<8x32xf32>
    %52 = tpu.matmul %49, %51, %cst_37 {dimension_numbers = #tpu.dot_dimension_numbers<[1], [0], [0], [1], [0, 0, 1, 1], [], []>} : vector<8x32xbf16>, vector<32x32xbf16>, vector<8x32xf32> -> vector<8x32xf32>
    %c4_38 = arith.constant 4 : index
    %c0_39 = arith.constant 0 : index
    %c0_40 = arith.constant 0 : index
    %53 = vector.load %arg5[%c4_38, %c0_39, %c0_40] : memref<100x1x32xf32, #tpu.memory_space<vmem>>, vector<1x1x32xf32>
    %54 = vector.shape_cast %53 : vector<1x1x32xf32> to vector<1x32xf32>
    %55 = vector.broadcast %54 : vector<1x32xf32> to vector<8x32xf32>
    %56 = arith.addf %52, %55 : vector<8x32xf32>
    %cst_41 = arith.constant 0.000000e+00 : f32
    %57 = vector.broadcast %cst_41 : f32 to vector<8x32xf32>
    %58 = arith.maximumf %56, %57 : vector<8x32xf32>
    %59 = arith.truncf %58 : vector<8x32xf32> to vector<8x32xbf16>
    %c5 = arith.constant 5 : index
    %c0_42 = arith.constant 0 : index
    %c0_43 = arith.constant 0 : index
    %60 = vector.load %arg4[%c5, %c0_42, %c0_43] : memref<100x32x32xbf16, #tpu.memory_space<vmem>>, vector<1x32x32xbf16>
    %61 = vector.shape_cast %60 : vector<1x32x32xbf16> to vector<32x32xbf16>
    %cst_44 = arith.constant dense<0.000000e+00> : vector<8x32xf32>
    %62 = tpu.matmul %59, %61, %cst_44 {dimension_numbers = #tpu.dot_dimension_numbers<[1], [0], [0], [1], [0, 0, 1, 1], [], []>} : vector<8x32xbf16>, vector<32x32xbf16>, vector<8x32xf32> -> vector<8x32xf32>
    %c5_45 = arith.constant 5 : index
    %c0_46 = arith.constant 0 : index
    %c0_47 = arith.constant 0 : index
    %63 = vector.load %arg5[%c5_45, %c0_46, %c0_47] : memref<100x1x32xf32, #tpu.memory_space<vmem>>, vector<1x1x32xf32>
    %64 = vector.shape_cast %63 : vector<1x1x32xf32> to vector<1x32xf32>
    %65 = vector.broadcast %64 : vector<1x32xf32> to vector<8x32xf32>
    %66 = arith.addf %62, %65 : vector<8x32xf32>
    %cst_48 = arith.constant 0.000000e+00 : f32
    %67 = vector.broadcast %cst_48 : f32 to vector<8x32xf32>
    %68 = arith.maximumf %66, %67 : vector<8x32xf32>
    %69 = arith.truncf %68 : vector<8x32xf32> to vector<8x32xbf16>
    %c6 = arith.constant 6 : index
    %c0_49 = arith.constant 0 : index
    %c0_50 = arith.constant 0 : index
    %70 = vector.load %arg4[%c6, %c0_49, %c0_50] : memref<100x32x32xbf16, #tpu.memory_space<vmem>>, vector<1x32x32xbf16>
    %71 = vector.shape_cast %70 : vector<1x32x32xbf16> to vector<32x32xbf16>
    %cst_51 = arith.constant dense<0.000000e+00> : vector<8x32xf32>
    %72 = tpu.matmul %69, %71, %cst_51 {dimension_numbers = #tpu.dot_dimension_numbers<[1], [0], [0], [1], [0, 0, 1, 1], [], []>} : vector<8x32xbf16>, vector<32x32xbf16>, vector<8x32xf32> -> vector<8x32xf32>
    %c6_52 = arith.constant 6 : index
    %c0_53 = arith.constant 0 : index
    %c0_54 = arith.constant 0 : index
    %73 = vector.load %arg5[%c6_52, %c0_53, %c0_54] : memref<100x1x32xf32, #tpu.memory_space<vmem>>, vector<1x1x32xf32>
    %74 = vector.shape_cast %73 : vector<1x1x32xf32> to vector<1x32xf32>
    %75 = vector.broadcast %74 : vector<1x32xf32> to vector<8x32xf32>
    %76 = arith.addf %72, %75 : vector<8x32xf32>
    %cst_55 = arith.constant 0.000000e+00 : f32
    %77 = vector.broadcast %cst_55 : f32 to vector<8x32xf32>
    %78 = arith.maximumf %76, %77 : vector<8x32xf32>
    %79 = arith.truncf %78 : vector<8x32xf32> to vector<8x32xbf16>
    %c7 = arith.constant 7 : index
    %c0_56 = arith.constant 0 : index
    %c0_57 = arith.constant 0 : index
    %80 = vector.load %arg4[%c7, %c0_56, %c0_57] : memref<100x32x32xbf16, #tpu.memory_space<vmem>>, vector<1x32x32xbf16>
    %81 = vector.shape_cast %80 : vector<1x32x32xbf16> to vector<32x32xbf16>
    %cst_58 = arith.constant dense<0.000000e+00> : vector<8x32xf32>
    %82 = tpu.matmul %79, %81, %cst_58 {dimension_numbers = #tpu.dot_dimension_numbers<[1], [0], [0], [1], [0, 0, 1, 1], [], []>} : vector<8x32xbf16>, vector<32x32xbf16>, vector<8x32xf32> -> vector<8x32xf32>
    %c7_59 = arith.constant 7 : index
    %c0_60 = arith.constant 0 : index
    %c0_61 = arith.constant 0 : index
    %83 = vector.load %arg5[%c7_59, %c0_60, %c0_61] : memref<100x1x32xf32, #tpu.memory_space<vmem>>, vector<1x1x32xf32>
    %84 = vector.shape_cast %83 : vector<1x1x32xf32> to vector<1x32xf32>
    %85 = vector.broadcast %84 : vector<1x32xf32> to vector<8x32xf32>
    %86 = arith.addf %82, %85 : vector<8x32xf32>
    %cst_62 = arith.constant 0.000000e+00 : f32
    %87 = vector.broadcast %cst_62 : f32 to vector<8x32xf32>
    %88 = arith.maximumf %86, %87 : vector<8x32xf32>
    %89 = arith.truncf %88 : vector<8x32xf32> to vector<8x32xbf16>
    %c8 = arith.constant 8 : index
    %c0_63 = arith.constant 0 : index
    %c0_64 = arith.constant 0 : index
    %90 = vector.load %arg4[%c8, %c0_63, %c0_64] : memref<100x32x32xbf16, #tpu.memory_space<vmem>>, vector<1x32x32xbf16>
    %91 = vector.shape_cast %90 : vector<1x32x32xbf16> to vector<32x32xbf16>
    %cst_65 = arith.constant dense<0.000000e+00> : vector<8x32xf32>
    %92 = tpu.matmul %89, %91, %cst_65 {dimension_numbers = #tpu.dot_dimension_numbers<[1], [0], [0], [1], [0, 0, 1, 1], [], []>} : vector<8x32xbf16>, vector<32x32xbf16>, vector<8x32xf32> -> vector<8x32xf32>
    %c8_66 = arith.constant 8 : index
    %c0_67 = arith.constant 0 : index
    %c0_68 = arith.constant 0 : index
    %93 = vector.load %arg5[%c8_66, %c0_67, %c0_68] : memref<100x1x32xf32, #tpu.memory_space<vmem>>, vector<1x1x32xf32>
    %94 = vector.shape_cast %93 : vector<1x1x32xf32> to vector<1x32xf32>
    %95 = vector.broadcast %94 : vector<1x32xf32> to vector<8x32xf32>
    %96 = arith.addf %92, %95 : vector<8x32xf32>
    %cst_69 = arith.constant 0.000000e+00 : f32
    %97 = vector.broadcast %cst_69 : f32 to vector<8x32xf32>
    %98 = arith.maximumf %96, %97 : vector<8x32xf32>
    %99 = arith.truncf %98 : vector<8x32xf32> to vector<8x32xbf16>
    %c9 = arith.constant 9 : index
    %c0_70 = arith.constant 0 : index
    %c0_71 = arith.constant 0 : index
    %100 = vector.load %arg4[%c9, %c0_70, %c0_71] : memref<100x32x32xbf16, #tpu.memory_space<vmem>>, vector<1x32x32xbf16>
    %101 = vector.shape_cast %100 : vector<1x32x32xbf16> to vector<32x32xbf16>
    %cst_72 = arith.constant dense<0.000000e+00> : vector<8x32xf32>
    %102 = tpu.matmul %99, %101, %cst_72 {dimension_numbers = #tpu.dot_dimension_numbers<[1], [0], [0], [1], [0, 0, 1, 1], [], []>} : vector<8x32xbf16>, vector<32x32xbf16>, vector<8x32xf32> -> vector<8x32xf32>
    %c9_73 = arith.constant 9 : index
    %c0_74 = arith.constant 0 : index
    %c0_75 = arith.constant 0 : index
    %103 = vector.load %arg5[%c9_73, %c0_74, %c0_75] : memref<100x1x32xf32, #tpu.memory_space<vmem>>, vector<1x1x32xf32>
    %104 = vector.shape_cast %103 : vector<1x1x32xf32> to vector<1x32xf32>
    %105 = vector.broadcast %104 : vector<1x32xf32> to vector<8x32xf32>
    %106 = arith.addf %102, %105 : vector<8x32xf32>
    %cst_76 = arith.constant 0.000000e+00 : f32
    %107 = vector.broadcast %cst_76 : f32 to vector<8x32xf32>
    %108 = arith.maximumf %106, %107 : vector<8x32xf32>
    %109 = arith.truncf %108 : vector<8x32xf32> to vector<8x32xbf16>
    %c10 = arith.constant 10 : index
    %c0_77 = arith.constant 0 : index
    %c0_78 = arith.constant 0 : index
    %110 = vector.load %arg4[%c10, %c0_77, %c0_78] : memref<100x32x32xbf16, #tpu.memory_space<vmem>>, vector<1x32x32xbf16>
    %111 = vector.shape_cast %110 : vector<1x32x32xbf16> to vector<32x32xbf16>
    %cst_79 = arith.constant dense<0.000000e+00> : vector<8x32xf32>
    %112 = tpu.matmul %109, %111, %cst_79 {dimension_numbers = #tpu.dot_dimension_numbers<[1], [0], [0], [1], [0, 0, 1, 1], [], []>} : vector<8x32xbf16>, vector<32x32xbf16>, vector<8x32xf32> -> vector<8x32xf32>
    %c10_80 = arith.constant 10 : index
    %c0_81 = arith.constant 0 : index
    %c0_82 = arith.constant 0 : index
    %113 = vector.load %arg5[%c10_80, %c0_81, %c0_82] : memref<100x1x32xf32, #tpu.memory_space<vmem>>, vector<1x1x32xf32>
    %114 = vector.shape_cast %113 : vector<1x1x32xf32> to vector<1x32xf32>
    %115 = vector.broadcast %114 : vector<1x32xf32> to vector<8x32xf32>
    %116 = arith.addf %112, %115 : vector<8x32xf32>
    %cst_83 = arith.constant 0.000000e+00 : f32
    %117 = vector.broadcast %cst_83 : f32 to vector<8x32xf32>
    %118 = arith.maximumf %116, %117 : vector<8x32xf32>
    %119 = arith.truncf %118 : vector<8x32xf32> to vector<8x32xbf16>
    %c11 = arith.constant 11 : index
    %c0_84 = arith.constant 0 : index
    %c0_85 = arith.constant 0 : index
    %120 = vector.load %arg4[%c11, %c0_84, %c0_85] : memref<100x32x32xbf16, #tpu.memory_space<vmem>>, vector<1x32x32xbf16>
    %121 = vector.shape_cast %120 : vector<1x32x32xbf16> to vector<32x32xbf16>
    %cst_86 = arith.constant dense<0.000000e+00> : vector<8x32xf32>
    %122 = tpu.matmul %119, %121, %cst_86 {dimension_numbers = #tpu.dot_dimension_numbers<[1], [0], [0], [1], [0, 0, 1, 1], [], []>} : vector<8x32xbf16>, vector<32x32xbf16>, vector<8x32xf32> -> vector<8x32xf32>
    %c11_87 = arith.constant 11 : index
    %c0_88 = arith.constant 0 : index
    %c0_89 = arith.constant 0 : index
    %123 = vector.load %arg5[%c11_87, %c0_88, %c0_89] : memref<100x1x32xf32, #tpu.memory_space<vmem>>, vector<1x1x32xf32>
    %124 = vector.shape_cast %123 : vector<1x1x32xf32> to vector<1x32xf32>
    %125 = vector.broadcast %124 : vector<1x32xf32> to vector<8x32xf32>
    %126 = arith.addf %122, %125 : vector<8x32xf32>
    %cst_90 = arith.constant 0.000000e+00 : f32
    %127 = vector.broadcast %cst_90 : f32 to vector<8x32xf32>
    %128 = arith.maximumf %126, %127 : vector<8x32xf32>
    %129 = arith.truncf %128 : vector<8x32xf32> to vector<8x32xbf16>
    %c12 = arith.constant 12 : index
    %c0_91 = arith.constant 0 : index
    %c0_92 = arith.constant 0 : index
    %130 = vector.load %arg4[%c12, %c0_91, %c0_92] : memref<100x32x32xbf16, #tpu.memory_space<vmem>>, vector<1x32x32xbf16>
    %131 = vector.shape_cast %130 : vector<1x32x32xbf16> to vector<32x32xbf16>
    %cst_93 = arith.constant dense<0.000000e+00> : vector<8x32xf32>
    %132 = tpu.matmul %129, %131, %cst_93 {dimension_numbers = #tpu.dot_dimension_numbers<[1], [0], [0], [1], [0, 0, 1, 1], [], []>} : vector<8x32xbf16>, vector<32x32xbf16>, vector<8x32xf32> -> vector<8x32xf32>
    %c12_94 = arith.constant 12 : index
    %c0_95 = arith.constant 0 : index
    %c0_96 = arith.constant 0 : index
    %133 = vector.load %arg5[%c12_94, %c0_95, %c0_96] : memref<100x1x32xf32, #tpu.memory_space<vmem>>, vector<1x1x32xf32>
    %134 = vector.shape_cast %133 : vector<1x1x32xf32> to vector<1x32xf32>
    %135 = vector.broadcast %134 : vector<1x32xf32> to vector<8x32xf32>
    %136 = arith.addf %132, %135 : vector<8x32xf32>
    %cst_97 = arith.constant 0.000000e+00 : f32
    %137 = vector.broadcast %cst_97 : f32 to vector<8x32xf32>
    %138 = arith.maximumf %136, %137 : vector<8x32xf32>
    %139 = arith.truncf %138 : vector<8x32xf32> to vector<8x32xbf16>
    %c13 = arith.constant 13 : index
    %c0_98 = arith.constant 0 : index
    %c0_99 = arith.constant 0 : index
    %140 = vector.load %arg4[%c13, %c0_98, %c0_99] : memref<100x32x32xbf16, #tpu.memory_space<vmem>>, vector<1x32x32xbf16>
    %141 = vector.shape_cast %140 : vector<1x32x32xbf16> to vector<32x32xbf16>
    %cst_100 = arith.constant dense<0.000000e+00> : vector<8x32xf32>
    %142 = tpu.matmul %139, %141, %cst_100 {dimension_numbers = #tpu.dot_dimension_numbers<[1], [0], [0], [1], [0, 0, 1, 1], [], []>} : vector<8x32xbf16>, vector<32x32xbf16>, vector<8x32xf32> -> vector<8x32xf32>
    %c13_101 = arith.constant 13 : index
    %c0_102 = arith.constant 0 : index
    %c0_103 = arith.constant 0 : index
    %143 = vector.load %arg5[%c13_101, %c0_102, %c0_103] : memref<100x1x32xf32, #tpu.memory_space<vmem>>, vector<1x1x32xf32>
    %144 = vector.shape_cast %143 : vector<1x1x32xf32> to vector<1x32xf32>
    %145 = vector.broadcast %144 : vector<1x32xf32> to vector<8x32xf32>
    %146 = arith.addf %142, %145 : vector<8x32xf32>
    %cst_104 = arith.constant 0.000000e+00 : f32
    %147 = vector.broadcast %cst_104 : f32 to vector<8x32xf32>
    %148 = arith.maximumf %146, %147 : vector<8x32xf32>
    %149 = arith.truncf %148 : vector<8x32xf32> to vector<8x32xbf16>
    %c14 = arith.constant 14 : index
    %c0_105 = arith.constant 0 : index
    %c0_106 = arith.constant 0 : index
    %150 = vector.load %arg4[%c14, %c0_105, %c0_106] : memref<100x32x32xbf16, #tpu.memory_space<vmem>>, vector<1x32x32xbf16>
    %151 = vector.shape_cast %150 : vector<1x32x32xbf16> to vector<32x32xbf16>
    %cst_107 = arith.constant dense<0.000000e+00> : vector<8x32xf32>
    %152 = tpu.matmul %149, %151, %cst_107 {dimension_numbers = #tpu.dot_dimension_numbers<[1], [0], [0], [1], [0, 0, 1, 1], [], []>} : vector<8x32xbf16>, vector<32x32xbf16>, vector<8x32xf32> -> vector<8x32xf32>
    %c14_108 = arith.constant 14 : index
    %c0_109 = arith.constant 0 : index
    %c0_110 = arith.constant 0 : index
    %153 = vector.load %arg5[%c14_108, %c0_109, %c0_110] : memref<100x1x32xf32, #tpu.memory_space<vmem>>, vector<1x1x32xf32>
    %154 = vector.shape_cast %153 : vector<1x1x32xf32> to vector<1x32xf32>
    %155 = vector.broadcast %154 : vector<1x32xf32> to vector<8x32xf32>
    %156 = arith.addf %152, %155 : vector<8x32xf32>
    %cst_111 = arith.constant 0.000000e+00 : f32
    %157 = vector.broadcast %cst_111 : f32 to vector<8x32xf32>
    %158 = arith.maximumf %156, %157 : vector<8x32xf32>
    %159 = arith.truncf %158 : vector<8x32xf32> to vector<8x32xbf16>
    %c15 = arith.constant 15 : index
    %c0_112 = arith.constant 0 : index
    %c0_113 = arith.constant 0 : index
    %160 = vector.load %arg4[%c15, %c0_112, %c0_113] : memref<100x32x32xbf16, #tpu.memory_space<vmem>>, vector<1x32x32xbf16>
    %161 = vector.shape_cast %160 : vector<1x32x32xbf16> to vector<32x32xbf16>
    %cst_114 = arith.constant dense<0.000000e+00> : vector<8x32xf32>
    %162 = tpu.matmul %159, %161, %cst_114 {dimension_numbers = #tpu.dot_dimension_numbers<[1], [0], [0], [1], [0, 0, 1, 1], [], []>} : vector<8x32xbf16>, vector<32x32xbf16>, vector<8x32xf32> -> vector<8x32xf32>
    %c15_115 = arith.constant 15 : index
    %c0_116 = arith.constant 0 : index
    %c0_117 = arith.constant 0 : index
    %163 = vector.load %arg5[%c15_115, %c0_116, %c0_117] : memref<100x1x32xf32, #tpu.memory_space<vmem>>, vector<1x1x32xf32>
    %164 = vector.shape_cast %163 : vector<1x1x32xf32> to vector<1x32xf32>
    %165 = vector.broadcast %164 : vector<1x32xf32> to vector<8x32xf32>
    %166 = arith.addf %162, %165 : vector<8x32xf32>
    %cst_118 = arith.constant 0.000000e+00 : f32
    %167 = vector.broadcast %cst_118 : f32 to vector<8x32xf32>
    %168 = arith.maximumf %166, %167 : vector<8x32xf32>
    %169 = arith.truncf %168 : vector<8x32xf32> to vector<8x32xbf16>
    %c16 = arith.constant 16 : index
    %c0_119 = arith.constant 0 : index
    %c0_120 = arith.constant 0 : index
    %170 = vector.load %arg4[%c16, %c0_119, %c0_120] : memref<100x32x32xbf16, #tpu.memory_space<vmem>>, vector<1x32x32xbf16>
    %171 = vector.shape_cast %170 : vector<1x32x32xbf16> to vector<32x32xbf16>
    %cst_121 = arith.constant dense<0.000000e+00> : vector<8x32xf32>
    %172 = tpu.matmul %169, %171, %cst_121 {dimension_numbers = #tpu.dot_dimension_numbers<[1], [0], [0], [1], [0, 0, 1, 1], [], []>} : vector<8x32xbf16>, vector<32x32xbf16>, vector<8x32xf32> -> vector<8x32xf32>
    %c16_122 = arith.constant 16 : index
    %c0_123 = arith.constant 0 : index
    %c0_124 = arith.constant 0 : index
    %173 = vector.load %arg5[%c16_122, %c0_123, %c0_124] : memref<100x1x32xf32, #tpu.memory_space<vmem>>, vector<1x1x32xf32>
    %174 = vector.shape_cast %173 : vector<1x1x32xf32> to vector<1x32xf32>
    %175 = vector.broadcast %174 : vector<1x32xf32> to vector<8x32xf32>
    %176 = arith.addf %172, %175 : vector<8x32xf32>
    %cst_125 = arith.constant 0.000000e+00 : f32
    %177 = vector.broadcast %cst_125 : f32 to vector<8x32xf32>
    %178 = arith.maximumf %176, %177 : vector<8x32xf32>
    %179 = arith.truncf %178 : vector<8x32xf32> to vector<8x32xbf16>
    %c17 = arith.constant 17 : index
    %c0_126 = arith.constant 0 : index
    %c0_127 = arith.constant 0 : index
    %180 = vector.load %arg4[%c17, %c0_126, %c0_127] : memref<100x32x32xbf16, #tpu.memory_space<vmem>>, vector<1x32x32xbf16>
    %181 = vector.shape_cast %180 : vector<1x32x32xbf16> to vector<32x32xbf16>
    %cst_128 = arith.constant dense<0.000000e+00> : vector<8x32xf32>
    %182 = tpu.matmul %179, %181, %cst_128 {dimension_numbers = #tpu.dot_dimension_numbers<[1], [0], [0], [1], [0, 0, 1, 1], [], []>} : vector<8x32xbf16>, vector<32x32xbf16>, vector<8x32xf32> -> vector<8x32xf32>
    %c17_129 = arith.constant 17 : index
    %c0_130 = arith.constant 0 : index
    %c0_131 = arith.constant 0 : index
    %183 = vector.load %arg5[%c17_129, %c0_130, %c0_131] : memref<100x1x32xf32, #tpu.memory_space<vmem>>, vector<1x1x32xf32>
    %184 = vector.shape_cast %183 : vector<1x1x32xf32> to vector<1x32xf32>
    %185 = vector.broadcast %184 : vector<1x32xf32> to vector<8x32xf32>
    %186 = arith.addf %182, %185 : vector<8x32xf32>
    %cst_132 = arith.constant 0.000000e+00 : f32
    %187 = vector.broadcast %cst_132 : f32 to vector<8x32xf32>
    %188 = arith.maximumf %186, %187 : vector<8x32xf32>
    %189 = arith.truncf %188 : vector<8x32xf32> to vector<8x32xbf16>
    %c18 = arith.constant 18 : index
    %c0_133 = arith.constant 0 : index
    %c0_134 = arith.constant 0 : index
    %190 = vector.load %arg4[%c18, %c0_133, %c0_134] : memref<100x32x32xbf16, #tpu.memory_space<vmem>>, vector<1x32x32xbf16>
    %191 = vector.shape_cast %190 : vector<1x32x32xbf16> to vector<32x32xbf16>
    %cst_135 = arith.constant dense<0.000000e+00> : vector<8x32xf32>
    %192 = tpu.matmul %189, %191, %cst_135 {dimension_numbers = #tpu.dot_dimension_numbers<[1], [0], [0], [1], [0, 0, 1, 1], [], []>} : vector<8x32xbf16>, vector<32x32xbf16>, vector<8x32xf32> -> vector<8x32xf32>
    %c18_136 = arith.constant 18 : index
    %c0_137 = arith.constant 0 : index
    %c0_138 = arith.constant 0 : index
    %193 = vector.load %arg5[%c18_136, %c0_137, %c0_138] : memref<100x1x32xf32, #tpu.memory_space<vmem>>, vector<1x1x32xf32>
    %194 = vector.shape_cast %193 : vector<1x1x32xf32> to vector<1x32xf32>
    %195 = vector.broadcast %194 : vector<1x32xf32> to vector<8x32xf32>
    %196 = arith.addf %192, %195 : vector<8x32xf32>
    %cst_139 = arith.constant 0.000000e+00 : f32
    %197 = vector.broadcast %cst_139 : f32 to vector<8x32xf32>
    %198 = arith.maximumf %196, %197 : vector<8x32xf32>
    %199 = arith.truncf %198 : vector<8x32xf32> to vector<8x32xbf16>
    %c19 = arith.constant 19 : index
    %c0_140 = arith.constant 0 : index
    %c0_141 = arith.constant 0 : index
    %200 = vector.load %arg4[%c19, %c0_140, %c0_141] : memref<100x32x32xbf16, #tpu.memory_space<vmem>>, vector<1x32x32xbf16>
    %201 = vector.shape_cast %200 : vector<1x32x32xbf16> to vector<32x32xbf16>
    %cst_142 = arith.constant dense<0.000000e+00> : vector<8x32xf32>
    %202 = tpu.matmul %199, %201, %cst_142 {dimension_numbers = #tpu.dot_dimension_numbers<[1], [0], [0], [1], [0, 0, 1, 1], [], []>} : vector<8x32xbf16>, vector<32x32xbf16>, vector<8x32xf32> -> vector<8x32xf32>
    %c19_143 = arith.constant 19 : index
    %c0_144 = arith.constant 0 : index
    %c0_145 = arith.constant 0 : index
    %203 = vector.load %arg5[%c19_143, %c0_144, %c0_145] : memref<100x1x32xf32, #tpu.memory_space<vmem>>, vector<1x1x32xf32>
    %204 = vector.shape_cast %203 : vector<1x1x32xf32> to vector<1x32xf32>
    %205 = vector.broadcast %204 : vector<1x32xf32> to vector<8x32xf32>
    %206 = arith.addf %202, %205 : vector<8x32xf32>
    %cst_146 = arith.constant 0.000000e+00 : f32
    %207 = vector.broadcast %cst_146 : f32 to vector<8x32xf32>
    %208 = arith.maximumf %206, %207 : vector<8x32xf32>
    %209 = arith.truncf %208 : vector<8x32xf32> to vector<8x32xbf16>
    %c20 = arith.constant 20 : index
    %c0_147 = arith.constant 0 : index
    %c0_148 = arith.constant 0 : index
    %210 = vector.load %arg4[%c20, %c0_147, %c0_148] : memref<100x32x32xbf16, #tpu.memory_space<vmem>>, vector<1x32x32xbf16>
    %211 = vector.shape_cast %210 : vector<1x32x32xbf16> to vector<32x32xbf16>
    %cst_149 = arith.constant dense<0.000000e+00> : vector<8x32xf32>
    %212 = tpu.matmul %209, %211, %cst_149 {dimension_numbers = #tpu.dot_dimension_numbers<[1], [0], [0], [1], [0, 0, 1, 1], [], []>} : vector<8x32xbf16>, vector<32x32xbf16>, vector<8x32xf32> -> vector<8x32xf32>
    %c20_150 = arith.constant 20 : index
    %c0_151 = arith.constant 0 : index
    %c0_152 = arith.constant 0 : index
    %213 = vector.load %arg5[%c20_150, %c0_151, %c0_152] : memref<100x1x32xf32, #tpu.memory_space<vmem>>, vector<1x1x32xf32>
    %214 = vector.shape_cast %213 : vector<1x1x32xf32> to vector<1x32xf32>
    %215 = vector.broadcast %214 : vector<1x32xf32> to vector<8x32xf32>
    %216 = arith.addf %212, %215 : vector<8x32xf32>
    %cst_153 = arith.constant 0.000000e+00 : f32
    %217 = vector.broadcast %cst_153 : f32 to vector<8x32xf32>
    %218 = arith.maximumf %216, %217 : vector<8x32xf32>
    %219 = arith.truncf %218 : vector<8x32xf32> to vector<8x32xbf16>
    %c21 = arith.constant 21 : index
    %c0_154 = arith.constant 0 : index
    %c0_155 = arith.constant 0 : index
    %220 = vector.load %arg4[%c21, %c0_154, %c0_155] : memref<100x32x32xbf16, #tpu.memory_space<vmem>>, vector<1x32x32xbf16>
    %221 = vector.shape_cast %220 : vector<1x32x32xbf16> to vector<32x32xbf16>
    %cst_156 = arith.constant dense<0.000000e+00> : vector<8x32xf32>
    %222 = tpu.matmul %219, %221, %cst_156 {dimension_numbers = #tpu.dot_dimension_numbers<[1], [0], [0], [1], [0, 0, 1, 1], [], []>} : vector<8x32xbf16>, vector<32x32xbf16>, vector<8x32xf32> -> vector<8x32xf32>
    %c21_157 = arith.constant 21 : index
    %c0_158 = arith.constant 0 : index
    %c0_159 = arith.constant 0 : index
    %223 = vector.load %arg5[%c21_157, %c0_158, %c0_159] : memref<100x1x32xf32, #tpu.memory_space<vmem>>, vector<1x1x32xf32>
    %224 = vector.shape_cast %223 : vector<1x1x32xf32> to vector<1x32xf32>
    %225 = vector.broadcast %224 : vector<1x32xf32> to vector<8x32xf32>
    %226 = arith.addf %222, %225 : vector<8x32xf32>
    %cst_160 = arith.constant 0.000000e+00 : f32
    %227 = vector.broadcast %cst_160 : f32 to vector<8x32xf32>
    %228 = arith.maximumf %226, %227 : vector<8x32xf32>
    %229 = arith.truncf %228 : vector<8x32xf32> to vector<8x32xbf16>
    %c22 = arith.constant 22 : index
    %c0_161 = arith.constant 0 : index
    %c0_162 = arith.constant 0 : index
    %230 = vector.load %arg4[%c22, %c0_161, %c0_162] : memref<100x32x32xbf16, #tpu.memory_space<vmem>>, vector<1x32x32xbf16>
    %231 = vector.shape_cast %230 : vector<1x32x32xbf16> to vector<32x32xbf16>
    %cst_163 = arith.constant dense<0.000000e+00> : vector<8x32xf32>
    %232 = tpu.matmul %229, %231, %cst_163 {dimension_numbers = #tpu.dot_dimension_numbers<[1], [0], [0], [1], [0, 0, 1, 1], [], []>} : vector<8x32xbf16>, vector<32x32xbf16>, vector<8x32xf32> -> vector<8x32xf32>
    %c22_164 = arith.constant 22 : index
    %c0_165 = arith.constant 0 : index
    %c0_166 = arith.constant 0 : index
    %233 = vector.load %arg5[%c22_164, %c0_165, %c0_166] : memref<100x1x32xf32, #tpu.memory_space<vmem>>, vector<1x1x32xf32>
    %234 = vector.shape_cast %233 : vector<1x1x32xf32> to vector<1x32xf32>
    %235 = vector.broadcast %234 : vector<1x32xf32> to vector<8x32xf32>
    %236 = arith.addf %232, %235 : vector<8x32xf32>
    %cst_167 = arith.constant 0.000000e+00 : f32
    %237 = vector.broadcast %cst_167 : f32 to vector<8x32xf32>
    %238 = arith.maximumf %236, %237 : vector<8x32xf32>
    %239 = arith.truncf %238 : vector<8x32xf32> to vector<8x32xbf16>
    %c23 = arith.constant 23 : index
    %c0_168 = arith.constant 0 : index
    %c0_169 = arith.constant 0 : index
    %240 = vector.load %arg4[%c23, %c0_168, %c0_169] : memref<100x32x32xbf16, #tpu.memory_space<vmem>>, vector<1x32x32xbf16>
    %241 = vector.shape_cast %240 : vector<1x32x32xbf16> to vector<32x32xbf16>
    %cst_170 = arith.constant dense<0.000000e+00> : vector<8x32xf32>
    %242 = tpu.matmul %239, %241, %cst_170 {dimension_numbers = #tpu.dot_dimension_numbers<[1], [0], [0], [1], [0, 0, 1, 1], [], []>} : vector<8x32xbf16>, vector<32x32xbf16>, vector<8x32xf32> -> vector<8x32xf32>
    %c23_171 = arith.constant 23 : index
    %c0_172 = arith.constant 0 : index
    %c0_173 = arith.constant 0 : index
    %243 = vector.load %arg5[%c23_171, %c0_172, %c0_173] : memref<100x1x32xf32, #tpu.memory_space<vmem>>, vector<1x1x32xf32>
    %244 = vector.shape_cast %243 : vector<1x1x32xf32> to vector<1x32xf32>
    %245 = vector.broadcast %244 : vector<1x32xf32> to vector<8x32xf32>
    %246 = arith.addf %242, %245 : vector<8x32xf32>
    %cst_174 = arith.constant 0.000000e+00 : f32
    %247 = vector.broadcast %cst_174 : f32 to vector<8x32xf32>
    %248 = arith.maximumf %246, %247 : vector<8x32xf32>
    %249 = arith.truncf %248 : vector<8x32xf32> to vector<8x32xbf16>
    %c24 = arith.constant 24 : index
    %c0_175 = arith.constant 0 : index
    %c0_176 = arith.constant 0 : index
    %250 = vector.load %arg4[%c24, %c0_175, %c0_176] : memref<100x32x32xbf16, #tpu.memory_space<vmem>>, vector<1x32x32xbf16>
    %251 = vector.shape_cast %250 : vector<1x32x32xbf16> to vector<32x32xbf16>
    %cst_177 = arith.constant dense<0.000000e+00> : vector<8x32xf32>
    %252 = tpu.matmul %249, %251, %cst_177 {dimension_numbers = #tpu.dot_dimension_numbers<[1], [0], [0], [1], [0, 0, 1, 1], [], []>} : vector<8x32xbf16>, vector<32x32xbf16>, vector<8x32xf32> -> vector<8x32xf32>
    %c24_178 = arith.constant 24 : index
    %c0_179 = arith.constant 0 : index
    %c0_180 = arith.constant 0 : index
    %253 = vector.load %arg5[%c24_178, %c0_179, %c0_180] : memref<100x1x32xf32, #tpu.memory_space<vmem>>, vector<1x1x32xf32>
    %254 = vector.shape_cast %253 : vector<1x1x32xf32> to vector<1x32xf32>
    %255 = vector.broadcast %254 : vector<1x32xf32> to vector<8x32xf32>
    %256 = arith.addf %252, %255 : vector<8x32xf32>
    %cst_181 = arith.constant 0.000000e+00 : f32
    %257 = vector.broadcast %cst_181 : f32 to vector<8x32xf32>
    %258 = arith.maximumf %256, %257 : vector<8x32xf32>
    %259 = arith.truncf %258 : vector<8x32xf32> to vector<8x32xbf16>
    %c25 = arith.constant 25 : index
    %c0_182 = arith.constant 0 : index
    %c0_183 = arith.constant 0 : index
    %260 = vector.load %arg4[%c25, %c0_182, %c0_183] : memref<100x32x32xbf16, #tpu.memory_space<vmem>>, vector<1x32x32xbf16>
    %261 = vector.shape_cast %260 : vector<1x32x32xbf16> to vector<32x32xbf16>
    %cst_184 = arith.constant dense<0.000000e+00> : vector<8x32xf32>
    %262 = tpu.matmul %259, %261, %cst_184 {dimension_numbers = #tpu.dot_dimension_numbers<[1], [0], [0], [1], [0, 0, 1, 1], [], []>} : vector<8x32xbf16>, vector<32x32xbf16>, vector<8x32xf32> -> vector<8x32xf32>
    %c25_185 = arith.constant 25 : index
    %c0_186 = arith.constant 0 : index
    %c0_187 = arith.constant 0 : index
    %263 = vector.load %arg5[%c25_185, %c0_186, %c0_187] : memref<100x1x32xf32, #tpu.memory_space<vmem>>, vector<1x1x32xf32>
    %264 = vector.shape_cast %263 : vector<1x1x32xf32> to vector<1x32xf32>
    %265 = vector.broadcast %264 : vector<1x32xf32> to vector<8x32xf32>
    %266 = arith.addf %262, %265 : vector<8x32xf32>
    %cst_188 = arith.constant 0.000000e+00 : f32
    %267 = vector.broadcast %cst_188 : f32 to vector<8x32xf32>
    %268 = arith.maximumf %266, %267 : vector<8x32xf32>
    %269 = arith.truncf %268 : vector<8x32xf32> to vector<8x32xbf16>
    %c26 = arith.constant 26 : index
    %c0_189 = arith.constant 0 : index
    %c0_190 = arith.constant 0 : index
    %270 = vector.load %arg4[%c26, %c0_189, %c0_190] : memref<100x32x32xbf16, #tpu.memory_space<vmem>>, vector<1x32x32xbf16>
    %271 = vector.shape_cast %270 : vector<1x32x32xbf16> to vector<32x32xbf16>
    %cst_191 = arith.constant dense<0.000000e+00> : vector<8x32xf32>
    %272 = tpu.matmul %269, %271, %cst_191 {dimension_numbers = #tpu.dot_dimension_numbers<[1], [0], [0], [1], [0, 0, 1, 1], [], []>} : vector<8x32xbf16>, vector<32x32xbf16>, vector<8x32xf32> -> vector<8x32xf32>
    %c26_192 = arith.constant 26 : index
    %c0_193 = arith.constant 0 : index
    %c0_194 = arith.constant 0 : index
    %273 = vector.load %arg5[%c26_192, %c0_193, %c0_194] : memref<100x1x32xf32, #tpu.memory_space<vmem>>, vector<1x1x32xf32>
    %274 = vector.shape_cast %273 : vector<1x1x32xf32> to vector<1x32xf32>
    %275 = vector.broadcast %274 : vector<1x32xf32> to vector<8x32xf32>
    %276 = arith.addf %272, %275 : vector<8x32xf32>
    %cst_195 = arith.constant 0.000000e+00 : f32
    %277 = vector.broadcast %cst_195 : f32 to vector<8x32xf32>
    %278 = arith.maximumf %276, %277 : vector<8x32xf32>
    %279 = arith.truncf %278 : vector<8x32xf32> to vector<8x32xbf16>
    %c27 = arith.constant 27 : index
    %c0_196 = arith.constant 0 : index
    %c0_197 = arith.constant 0 : index
    %280 = vector.load %arg4[%c27, %c0_196, %c0_197] : memref<100x32x32xbf16, #tpu.memory_space<vmem>>, vector<1x32x32xbf16>
    %281 = vector.shape_cast %280 : vector<1x32x32xbf16> to vector<32x32xbf16>
    %cst_198 = arith.constant dense<0.000000e+00> : vector<8x32xf32>
    %282 = tpu.matmul %279, %281, %cst_198 {dimension_numbers = #tpu.dot_dimension_numbers<[1], [0], [0], [1], [0, 0, 1, 1], [], []>} : vector<8x32xbf16>, vector<32x32xbf16>, vector<8x32xf32> -> vector<8x32xf32>
    %c27_199 = arith.constant 27 : index
    %c0_200 = arith.constant 0 : index
    %c0_201 = arith.constant 0 : index
    %283 = vector.load %arg5[%c27_199, %c0_200, %c0_201] : memref<100x1x32xf32, #tpu.memory_space<vmem>>, vector<1x1x32xf32>
    %284 = vector.shape_cast %283 : vector<1x1x32xf32> to vector<1x32xf32>
    %285 = vector.broadcast %284 : vector<1x32xf32> to vector<8x32xf32>
    %286 = arith.addf %282, %285 : vector<8x32xf32>
    %cst_202 = arith.constant 0.000000e+00 : f32
    %287 = vector.broadcast %cst_202 : f32 to vector<8x32xf32>
    %288 = arith.maximumf %286, %287 : vector<8x32xf32>
    %289 = arith.truncf %288 : vector<8x32xf32> to vector<8x32xbf16>
    %c28 = arith.constant 28 : index
    %c0_203 = arith.constant 0 : index
    %c0_204 = arith.constant 0 : index
    %290 = vector.load %arg4[%c28, %c0_203, %c0_204] : memref<100x32x32xbf16, #tpu.memory_space<vmem>>, vector<1x32x32xbf16>
    %291 = vector.shape_cast %290 : vector<1x32x32xbf16> to vector<32x32xbf16>
    %cst_205 = arith.constant dense<0.000000e+00> : vector<8x32xf32>
    %292 = tpu.matmul %289, %291, %cst_205 {dimension_numbers = #tpu.dot_dimension_numbers<[1], [0], [0], [1], [0, 0, 1, 1], [], []>} : vector<8x32xbf16>, vector<32x32xbf16>, vector<8x32xf32> -> vector<8x32xf32>
    %c28_206 = arith.constant 28 : index
    %c0_207 = arith.constant 0 : index
    %c0_208 = arith.constant 0 : index
    %293 = vector.load %arg5[%c28_206, %c0_207, %c0_208] : memref<100x1x32xf32, #tpu.memory_space<vmem>>, vector<1x1x32xf32>
    %294 = vector.shape_cast %293 : vector<1x1x32xf32> to vector<1x32xf32>
    %295 = vector.broadcast %294 : vector<1x32xf32> to vector<8x32xf32>
    %296 = arith.addf %292, %295 : vector<8x32xf32>
    %cst_209 = arith.constant 0.000000e+00 : f32
    %297 = vector.broadcast %cst_209 : f32 to vector<8x32xf32>
    %298 = arith.maximumf %296, %297 : vector<8x32xf32>
    %299 = arith.truncf %298 : vector<8x32xf32> to vector<8x32xbf16>
    %c29 = arith.constant 29 : index
    %c0_210 = arith.constant 0 : index
    %c0_211 = arith.constant 0 : index
    %300 = vector.load %arg4[%c29, %c0_210, %c0_211] : memref<100x32x32xbf16, #tpu.memory_space<vmem>>, vector<1x32x32xbf16>
    %301 = vector.shape_cast %300 : vector<1x32x32xbf16> to vector<32x32xbf16>
    %cst_212 = arith.constant dense<0.000000e+00> : vector<8x32xf32>
    %302 = tpu.matmul %299, %301, %cst_212 {dimension_numbers = #tpu.dot_dimension_numbers<[1], [0], [0], [1], [0, 0, 1, 1], [], []>} : vector<8x32xbf16>, vector<32x32xbf16>, vector<8x32xf32> -> vector<8x32xf32>
    %c29_213 = arith.constant 29 : index
    %c0_214 = arith.constant 0 : index
    %c0_215 = arith.constant 0 : index
    %303 = vector.load %arg5[%c29_213, %c0_214, %c0_215] : memref<100x1x32xf32, #tpu.memory_space<vmem>>, vector<1x1x32xf32>
    %304 = vector.shape_cast %303 : vector<1x1x32xf32> to vector<1x32xf32>
    %305 = vector.broadcast %304 : vector<1x32xf32> to vector<8x32xf32>
    %306 = arith.addf %302, %305 : vector<8x32xf32>
    %cst_216 = arith.constant 0.000000e+00 : f32
    %307 = vector.broadcast %cst_216 : f32 to vector<8x32xf32>
    %308 = arith.maximumf %306, %307 : vector<8x32xf32>
    %309 = arith.truncf %308 : vector<8x32xf32> to vector<8x32xbf16>
    %c30 = arith.constant 30 : index
    %c0_217 = arith.constant 0 : index
    %c0_218 = arith.constant 0 : index
    %310 = vector.load %arg4[%c30, %c0_217, %c0_218] : memref<100x32x32xbf16, #tpu.memory_space<vmem>>, vector<1x32x32xbf16>
    %311 = vector.shape_cast %310 : vector<1x32x32xbf16> to vector<32x32xbf16>
    %cst_219 = arith.constant dense<0.000000e+00> : vector<8x32xf32>
    %312 = tpu.matmul %309, %311, %cst_219 {dimension_numbers = #tpu.dot_dimension_numbers<[1], [0], [0], [1], [0, 0, 1, 1], [], []>} : vector<8x32xbf16>, vector<32x32xbf16>, vector<8x32xf32> -> vector<8x32xf32>
    %c30_220 = arith.constant 30 : index
    %c0_221 = arith.constant 0 : index
    %c0_222 = arith.constant 0 : index
    %313 = vector.load %arg5[%c30_220, %c0_221, %c0_222] : memref<100x1x32xf32, #tpu.memory_space<vmem>>, vector<1x1x32xf32>
    %314 = vector.shape_cast %313 : vector<1x1x32xf32> to vector<1x32xf32>
    %315 = vector.broadcast %314 : vector<1x32xf32> to vector<8x32xf32>
    %316 = arith.addf %312, %315 : vector<8x32xf32>
    %cst_223 = arith.constant 0.000000e+00 : f32
    %317 = vector.broadcast %cst_223 : f32 to vector<8x32xf32>
    %318 = arith.maximumf %316, %317 : vector<8x32xf32>
    %319 = arith.truncf %318 : vector<8x32xf32> to vector<8x32xbf16>
    %c31 = arith.constant 31 : index
    %c0_224 = arith.constant 0 : index
    %c0_225 = arith.constant 0 : index
    %320 = vector.load %arg4[%c31, %c0_224, %c0_225] : memref<100x32x32xbf16, #tpu.memory_space<vmem>>, vector<1x32x32xbf16>
    %321 = vector.shape_cast %320 : vector<1x32x32xbf16> to vector<32x32xbf16>
    %cst_226 = arith.constant dense<0.000000e+00> : vector<8x32xf32>
    %322 = tpu.matmul %319, %321, %cst_226 {dimension_numbers = #tpu.dot_dimension_numbers<[1], [0], [0], [1], [0, 0, 1, 1], [], []>} : vector<8x32xbf16>, vector<32x32xbf16>, vector<8x32xf32> -> vector<8x32xf32>
    %c31_227 = arith.constant 31 : index
    %c0_228 = arith.constant 0 : index
    %c0_229 = arith.constant 0 : index
    %323 = vector.load %arg5[%c31_227, %c0_228, %c0_229] : memref<100x1x32xf32, #tpu.memory_space<vmem>>, vector<1x1x32xf32>
    %324 = vector.shape_cast %323 : vector<1x1x32xf32> to vector<1x32xf32>
    %325 = vector.broadcast %324 : vector<1x32xf32> to vector<8x32xf32>
    %326 = arith.addf %322, %325 : vector<8x32xf32>
    %cst_230 = arith.constant 0.000000e+00 : f32
    %327 = vector.broadcast %cst_230 : f32 to vector<8x32xf32>
    %328 = arith.maximumf %326, %327 : vector<8x32xf32>
    %329 = arith.truncf %328 : vector<8x32xf32> to vector<8x32xbf16>
    %c32 = arith.constant 32 : index
    %c0_231 = arith.constant 0 : index
    %c0_232 = arith.constant 0 : index
    %330 = vector.load %arg4[%c32, %c0_231, %c0_232] : memref<100x32x32xbf16, #tpu.memory_space<vmem>>, vector<1x32x32xbf16>
    %331 = vector.shape_cast %330 : vector<1x32x32xbf16> to vector<32x32xbf16>
    %cst_233 = arith.constant dense<0.000000e+00> : vector<8x32xf32>
    %332 = tpu.matmul %329, %331, %cst_233 {dimension_numbers = #tpu.dot_dimension_numbers<[1], [0], [0], [1], [0, 0, 1, 1], [], []>} : vector<8x32xbf16>, vector<32x32xbf16>, vector<8x32xf32> -> vector<8x32xf32>
    %c32_234 = arith.constant 32 : index
    %c0_235 = arith.constant 0 : index
    %c0_236 = arith.constant 0 : index
    %333 = vector.load %arg5[%c32_234, %c0_235, %c0_236] : memref<100x1x32xf32, #tpu.memory_space<vmem>>, vector<1x1x32xf32>
    %334 = vector.shape_cast %333 : vector<1x1x32xf32> to vector<1x32xf32>
    %335 = vector.broadcast %334 : vector<1x32xf32> to vector<8x32xf32>
    %336 = arith.addf %332, %335 : vector<8x32xf32>
    %cst_237 = arith.constant 0.000000e+00 : f32
    %337 = vector.broadcast %cst_237 : f32 to vector<8x32xf32>
    %338 = arith.maximumf %336, %337 : vector<8x32xf32>
    %339 = arith.truncf %338 : vector<8x32xf32> to vector<8x32xbf16>
    %c33 = arith.constant 33 : index
    %c0_238 = arith.constant 0 : index
    %c0_239 = arith.constant 0 : index
    %340 = vector.load %arg4[%c33, %c0_238, %c0_239] : memref<100x32x32xbf16, #tpu.memory_space<vmem>>, vector<1x32x32xbf16>
    %341 = vector.shape_cast %340 : vector<1x32x32xbf16> to vector<32x32xbf16>
    %cst_240 = arith.constant dense<0.000000e+00> : vector<8x32xf32>
    %342 = tpu.matmul %339, %341, %cst_240 {dimension_numbers = #tpu.dot_dimension_numbers<[1], [0], [0], [1], [0, 0, 1, 1], [], []>} : vector<8x32xbf16>, vector<32x32xbf16>, vector<8x32xf32> -> vector<8x32xf32>
    %c33_241 = arith.constant 33 : index
    %c0_242 = arith.constant 0 : index
    %c0_243 = arith.constant 0 : index
    %343 = vector.load %arg5[%c33_241, %c0_242, %c0_243] : memref<100x1x32xf32, #tpu.memory_space<vmem>>, vector<1x1x32xf32>
    %344 = vector.shape_cast %343 : vector<1x1x32xf32> to vector<1x32xf32>
    %345 = vector.broadcast %344 : vector<1x32xf32> to vector<8x32xf32>
    %346 = arith.addf %342, %345 : vector<8x32xf32>
    %cst_244 = arith.constant 0.000000e+00 : f32
    %347 = vector.broadcast %cst_244 : f32 to vector<8x32xf32>
    %348 = arith.maximumf %346, %347 : vector<8x32xf32>
    %349 = arith.truncf %348 : vector<8x32xf32> to vector<8x32xbf16>
    %c34 = arith.constant 34 : index
    %c0_245 = arith.constant 0 : index
    %c0_246 = arith.constant 0 : index
    %350 = vector.load %arg4[%c34, %c0_245, %c0_246] : memref<100x32x32xbf16, #tpu.memory_space<vmem>>, vector<1x32x32xbf16>
    %351 = vector.shape_cast %350 : vector<1x32x32xbf16> to vector<32x32xbf16>
    %cst_247 = arith.constant dense<0.000000e+00> : vector<8x32xf32>
    %352 = tpu.matmul %349, %351, %cst_247 {dimension_numbers = #tpu.dot_dimension_numbers<[1], [0], [0], [1], [0, 0, 1, 1], [], []>} : vector<8x32xbf16>, vector<32x32xbf16>, vector<8x32xf32> -> vector<8x32xf32>
    %c34_248 = arith.constant 34 : index
    %c0_249 = arith.constant 0 : index
    %c0_250 = arith.constant 0 : index
    %353 = vector.load %arg5[%c34_248, %c0_249, %c0_250] : memref<100x1x32xf32, #tpu.memory_space<vmem>>, vector<1x1x32xf32>
    %354 = vector.shape_cast %353 : vector<1x1x32xf32> to vector<1x32xf32>
    %355 = vector.broadcast %354 : vector<1x32xf32> to vector<8x32xf32>
    %356 = arith.addf %352, %355 : vector<8x32xf32>
    %cst_251 = arith.constant 0.000000e+00 : f32
    %357 = vector.broadcast %cst_251 : f32 to vector<8x32xf32>
    %358 = arith.maximumf %356, %357 : vector<8x32xf32>
    %359 = arith.truncf %358 : vector<8x32xf32> to vector<8x32xbf16>
    %c35 = arith.constant 35 : index
    %c0_252 = arith.constant 0 : index
    %c0_253 = arith.constant 0 : index
    %360 = vector.load %arg4[%c35, %c0_252, %c0_253] : memref<100x32x32xbf16, #tpu.memory_space<vmem>>, vector<1x32x32xbf16>
    %361 = vector.shape_cast %360 : vector<1x32x32xbf16> to vector<32x32xbf16>
    %cst_254 = arith.constant dense<0.000000e+00> : vector<8x32xf32>
    %362 = tpu.matmul %359, %361, %cst_254 {dimension_numbers = #tpu.dot_dimension_numbers<[1], [0], [0], [1], [0, 0, 1, 1], [], []>} : vector<8x32xbf16>, vector<32x32xbf16>, vector<8x32xf32> -> vector<8x32xf32>
    %c35_255 = arith.constant 35 : index
    %c0_256 = arith.constant 0 : index
    %c0_257 = arith.constant 0 : index
    %363 = vector.load %arg5[%c35_255, %c0_256, %c0_257] : memref<100x1x32xf32, #tpu.memory_space<vmem>>, vector<1x1x32xf32>
    %364 = vector.shape_cast %363 : vector<1x1x32xf32> to vector<1x32xf32>
    %365 = vector.broadcast %364 : vector<1x32xf32> to vector<8x32xf32>
    %366 = arith.addf %362, %365 : vector<8x32xf32>
    %cst_258 = arith.constant 0.000000e+00 : f32
    %367 = vector.broadcast %cst_258 : f32 to vector<8x32xf32>
    %368 = arith.maximumf %366, %367 : vector<8x32xf32>
    %369 = arith.truncf %368 : vector<8x32xf32> to vector<8x32xbf16>
    %c36 = arith.constant 36 : index
    %c0_259 = arith.constant 0 : index
    %c0_260 = arith.constant 0 : index
    %370 = vector.load %arg4[%c36, %c0_259, %c0_260] : memref<100x32x32xbf16, #tpu.memory_space<vmem>>, vector<1x32x32xbf16>
    %371 = vector.shape_cast %370 : vector<1x32x32xbf16> to vector<32x32xbf16>
    %cst_261 = arith.constant dense<0.000000e+00> : vector<8x32xf32>
    %372 = tpu.matmul %369, %371, %cst_261 {dimension_numbers = #tpu.dot_dimension_numbers<[1], [0], [0], [1], [0, 0, 1, 1], [], []>} : vector<8x32xbf16>, vector<32x32xbf16>, vector<8x32xf32> -> vector<8x32xf32>
    %c36_262 = arith.constant 36 : index
    %c0_263 = arith.constant 0 : index
    %c0_264 = arith.constant 0 : index
    %373 = vector.load %arg5[%c36_262, %c0_263, %c0_264] : memref<100x1x32xf32, #tpu.memory_space<vmem>>, vector<1x1x32xf32>
    %374 = vector.shape_cast %373 : vector<1x1x32xf32> to vector<1x32xf32>
    %375 = vector.broadcast %374 : vector<1x32xf32> to vector<8x32xf32>
    %376 = arith.addf %372, %375 : vector<8x32xf32>
    %cst_265 = arith.constant 0.000000e+00 : f32
    %377 = vector.broadcast %cst_265 : f32 to vector<8x32xf32>
    %378 = arith.maximumf %376, %377 : vector<8x32xf32>
    %379 = arith.truncf %378 : vector<8x32xf32> to vector<8x32xbf16>
    %c37 = arith.constant 37 : index
    %c0_266 = arith.constant 0 : index
    %c0_267 = arith.constant 0 : index
    %380 = vector.load %arg4[%c37, %c0_266, %c0_267] : memref<100x32x32xbf16, #tpu.memory_space<vmem>>, vector<1x32x32xbf16>
    %381 = vector.shape_cast %380 : vector<1x32x32xbf16> to vector<32x32xbf16>
    %cst_268 = arith.constant dense<0.000000e+00> : vector<8x32xf32>
    %382 = tpu.matmul %379, %381, %cst_268 {dimension_numbers = #tpu.dot_dimension_numbers<[1], [0], [0], [1], [0, 0, 1, 1], [], []>} : vector<8x32xbf16>, vector<32x32xbf16>, vector<8x32xf32> -> vector<8x32xf32>
    %c37_269 = arith.constant 37 : index
    %c0_270 = arith.constant 0 : index
    %c0_271 = arith.constant 0 : index
    %383 = vector.load %arg5[%c37_269, %c0_270, %c0_271] : memref<100x1x32xf32, #tpu.memory_space<vmem>>, vector<1x1x32xf32>
    %384 = vector.shape_cast %383 : vector<1x1x32xf32> to vector<1x32xf32>
    %385 = vector.broadcast %384 : vector<1x32xf32> to vector<8x32xf32>
    %386 = arith.addf %382, %385 : vector<8x32xf32>
    %cst_272 = arith.constant 0.000000e+00 : f32
    %387 = vector.broadcast %cst_272 : f32 to vector<8x32xf32>
    %388 = arith.maximumf %386, %387 : vector<8x32xf32>
    %389 = arith.truncf %388 : vector<8x32xf32> to vector<8x32xbf16>
    %c38 = arith.constant 38 : index
    %c0_273 = arith.constant 0 : index
    %c0_274 = arith.constant 0 : index
    %390 = vector.load %arg4[%c38, %c0_273, %c0_274] : memref<100x32x32xbf16, #tpu.memory_space<vmem>>, vector<1x32x32xbf16>
    %391 = vector.shape_cast %390 : vector<1x32x32xbf16> to vector<32x32xbf16>
    %cst_275 = arith.constant dense<0.000000e+00> : vector<8x32xf32>
    %392 = tpu.matmul %389, %391, %cst_275 {dimension_numbers = #tpu.dot_dimension_numbers<[1], [0], [0], [1], [0, 0, 1, 1], [], []>} : vector<8x32xbf16>, vector<32x32xbf16>, vector<8x32xf32> -> vector<8x32xf32>
    %c38_276 = arith.constant 38 : index
    %c0_277 = arith.constant 0 : index
    %c0_278 = arith.constant 0 : index
    %393 = vector.load %arg5[%c38_276, %c0_277, %c0_278] : memref<100x1x32xf32, #tpu.memory_space<vmem>>, vector<1x1x32xf32>
    %394 = vector.shape_cast %393 : vector<1x1x32xf32> to vector<1x32xf32>
    %395 = vector.broadcast %394 : vector<1x32xf32> to vector<8x32xf32>
    %396 = arith.addf %392, %395 : vector<8x32xf32>
    %cst_279 = arith.constant 0.000000e+00 : f32
    %397 = vector.broadcast %cst_279 : f32 to vector<8x32xf32>
    %398 = arith.maximumf %396, %397 : vector<8x32xf32>
    %399 = arith.truncf %398 : vector<8x32xf32> to vector<8x32xbf16>
    %c39 = arith.constant 39 : index
    %c0_280 = arith.constant 0 : index
    %c0_281 = arith.constant 0 : index
    %400 = vector.load %arg4[%c39, %c0_280, %c0_281] : memref<100x32x32xbf16, #tpu.memory_space<vmem>>, vector<1x32x32xbf16>
    %401 = vector.shape_cast %400 : vector<1x32x32xbf16> to vector<32x32xbf16>
    %cst_282 = arith.constant dense<0.000000e+00> : vector<8x32xf32>
    %402 = tpu.matmul %399, %401, %cst_282 {dimension_numbers = #tpu.dot_dimension_numbers<[1], [0], [0], [1], [0, 0, 1, 1], [], []>} : vector<8x32xbf16>, vector<32x32xbf16>, vector<8x32xf32> -> vector<8x32xf32>
    %c39_283 = arith.constant 39 : index
    %c0_284 = arith.constant 0 : index
    %c0_285 = arith.constant 0 : index
    %403 = vector.load %arg5[%c39_283, %c0_284, %c0_285] : memref<100x1x32xf32, #tpu.memory_space<vmem>>, vector<1x1x32xf32>
    %404 = vector.shape_cast %403 : vector<1x1x32xf32> to vector<1x32xf32>
    %405 = vector.broadcast %404 : vector<1x32xf32> to vector<8x32xf32>
    %406 = arith.addf %402, %405 : vector<8x32xf32>
    %cst_286 = arith.constant 0.000000e+00 : f32
    %407 = vector.broadcast %cst_286 : f32 to vector<8x32xf32>
    %408 = arith.maximumf %406, %407 : vector<8x32xf32>
    %409 = arith.truncf %408 : vector<8x32xf32> to vector<8x32xbf16>
    %c40 = arith.constant 40 : index
    %c0_287 = arith.constant 0 : index
    %c0_288 = arith.constant 0 : index
    %410 = vector.load %arg4[%c40, %c0_287, %c0_288] : memref<100x32x32xbf16, #tpu.memory_space<vmem>>, vector<1x32x32xbf16>
    %411 = vector.shape_cast %410 : vector<1x32x32xbf16> to vector<32x32xbf16>
    %cst_289 = arith.constant dense<0.000000e+00> : vector<8x32xf32>
    %412 = tpu.matmul %409, %411, %cst_289 {dimension_numbers = #tpu.dot_dimension_numbers<[1], [0], [0], [1], [0, 0, 1, 1], [], []>} : vector<8x32xbf16>, vector<32x32xbf16>, vector<8x32xf32> -> vector<8x32xf32>
    %c40_290 = arith.constant 40 : index
    %c0_291 = arith.constant 0 : index
    %c0_292 = arith.constant 0 : index
    %413 = vector.load %arg5[%c40_290, %c0_291, %c0_292] : memref<100x1x32xf32, #tpu.memory_space<vmem>>, vector<1x1x32xf32>
    %414 = vector.shape_cast %413 : vector<1x1x32xf32> to vector<1x32xf32>
    %415 = vector.broadcast %414 : vector<1x32xf32> to vector<8x32xf32>
    %416 = arith.addf %412, %415 : vector<8x32xf32>
    %cst_293 = arith.constant 0.000000e+00 : f32
    %417 = vector.broadcast %cst_293 : f32 to vector<8x32xf32>
    %418 = arith.maximumf %416, %417 : vector<8x32xf32>
    %419 = arith.truncf %418 : vector<8x32xf32> to vector<8x32xbf16>
    %c41 = arith.constant 41 : index
    %c0_294 = arith.constant 0 : index
    %c0_295 = arith.constant 0 : index
    %420 = vector.load %arg4[%c41, %c0_294, %c0_295] : memref<100x32x32xbf16, #tpu.memory_space<vmem>>, vector<1x32x32xbf16>
    %421 = vector.shape_cast %420 : vector<1x32x32xbf16> to vector<32x32xbf16>
    %cst_296 = arith.constant dense<0.000000e+00> : vector<8x32xf32>
    %422 = tpu.matmul %419, %421, %cst_296 {dimension_numbers = #tpu.dot_dimension_numbers<[1], [0], [0], [1], [0, 0, 1, 1], [], []>} : vector<8x32xbf16>, vector<32x32xbf16>, vector<8x32xf32> -> vector<8x32xf32>
    %c41_297 = arith.constant 41 : index
    %c0_298 = arith.constant 0 : index
    %c0_299 = arith.constant 0 : index
    %423 = vector.load %arg5[%c41_297, %c0_298, %c0_299] : memref<100x1x32xf32, #tpu.memory_space<vmem>>, vector<1x1x32xf32>
    %424 = vector.shape_cast %423 : vector<1x1x32xf32> to vector<1x32xf32>
    %425 = vector.broadcast %424 : vector<1x32xf32> to vector<8x32xf32>
    %426 = arith.addf %422, %425 : vector<8x32xf32>
    %cst_300 = arith.constant 0.000000e+00 : f32
    %427 = vector.broadcast %cst_300 : f32 to vector<8x32xf32>
    %428 = arith.maximumf %426, %427 : vector<8x32xf32>
    %429 = arith.truncf %428 : vector<8x32xf32> to vector<8x32xbf16>
    %c42 = arith.constant 42 : index
    %c0_301 = arith.constant 0 : index
    %c0_302 = arith.constant 0 : index
    %430 = vector.load %arg4[%c42, %c0_301, %c0_302] : memref<100x32x32xbf16, #tpu.memory_space<vmem>>, vector<1x32x32xbf16>
    %431 = vector.shape_cast %430 : vector<1x32x32xbf16> to vector<32x32xbf16>
    %cst_303 = arith.constant dense<0.000000e+00> : vector<8x32xf32>
    %432 = tpu.matmul %429, %431, %cst_303 {dimension_numbers = #tpu.dot_dimension_numbers<[1], [0], [0], [1], [0, 0, 1, 1], [], []>} : vector<8x32xbf16>, vector<32x32xbf16>, vector<8x32xf32> -> vector<8x32xf32>
    %c42_304 = arith.constant 42 : index
    %c0_305 = arith.constant 0 : index
    %c0_306 = arith.constant 0 : index
    %433 = vector.load %arg5[%c42_304, %c0_305, %c0_306] : memref<100x1x32xf32, #tpu.memory_space<vmem>>, vector<1x1x32xf32>
    %434 = vector.shape_cast %433 : vector<1x1x32xf32> to vector<1x32xf32>
    %435 = vector.broadcast %434 : vector<1x32xf32> to vector<8x32xf32>
    %436 = arith.addf %432, %435 : vector<8x32xf32>
    %cst_307 = arith.constant 0.000000e+00 : f32
    %437 = vector.broadcast %cst_307 : f32 to vector<8x32xf32>
    %438 = arith.maximumf %436, %437 : vector<8x32xf32>
    %439 = arith.truncf %438 : vector<8x32xf32> to vector<8x32xbf16>
    %c43 = arith.constant 43 : index
    %c0_308 = arith.constant 0 : index
    %c0_309 = arith.constant 0 : index
    %440 = vector.load %arg4[%c43, %c0_308, %c0_309] : memref<100x32x32xbf16, #tpu.memory_space<vmem>>, vector<1x32x32xbf16>
    %441 = vector.shape_cast %440 : vector<1x32x32xbf16> to vector<32x32xbf16>
    %cst_310 = arith.constant dense<0.000000e+00> : vector<8x32xf32>
    %442 = tpu.matmul %439, %441, %cst_310 {dimension_numbers = #tpu.dot_dimension_numbers<[1], [0], [0], [1], [0, 0, 1, 1], [], []>} : vector<8x32xbf16>, vector<32x32xbf16>, vector<8x32xf32> -> vector<8x32xf32>
    %c43_311 = arith.constant 43 : index
    %c0_312 = arith.constant 0 : index
    %c0_313 = arith.constant 0 : index
    %443 = vector.load %arg5[%c43_311, %c0_312, %c0_313] : memref<100x1x32xf32, #tpu.memory_space<vmem>>, vector<1x1x32xf32>
    %444 = vector.shape_cast %443 : vector<1x1x32xf32> to vector<1x32xf32>
    %445 = vector.broadcast %444 : vector<1x32xf32> to vector<8x32xf32>
    %446 = arith.addf %442, %445 : vector<8x32xf32>
    %cst_314 = arith.constant 0.000000e+00 : f32
    %447 = vector.broadcast %cst_314 : f32 to vector<8x32xf32>
    %448 = arith.maximumf %446, %447 : vector<8x32xf32>
    %449 = arith.truncf %448 : vector<8x32xf32> to vector<8x32xbf16>
    %c44 = arith.constant 44 : index
    %c0_315 = arith.constant 0 : index
    %c0_316 = arith.constant 0 : index
    %450 = vector.load %arg4[%c44, %c0_315, %c0_316] : memref<100x32x32xbf16, #tpu.memory_space<vmem>>, vector<1x32x32xbf16>
    %451 = vector.shape_cast %450 : vector<1x32x32xbf16> to vector<32x32xbf16>
    %cst_317 = arith.constant dense<0.000000e+00> : vector<8x32xf32>
    %452 = tpu.matmul %449, %451, %cst_317 {dimension_numbers = #tpu.dot_dimension_numbers<[1], [0], [0], [1], [0, 0, 1, 1], [], []>} : vector<8x32xbf16>, vector<32x32xbf16>, vector<8x32xf32> -> vector<8x32xf32>
    %c44_318 = arith.constant 44 : index
    %c0_319 = arith.constant 0 : index
    %c0_320 = arith.constant 0 : index
    %453 = vector.load %arg5[%c44_318, %c0_319, %c0_320] : memref<100x1x32xf32, #tpu.memory_space<vmem>>, vector<1x1x32xf32>
    %454 = vector.shape_cast %453 : vector<1x1x32xf32> to vector<1x32xf32>
    %455 = vector.broadcast %454 : vector<1x32xf32> to vector<8x32xf32>
    %456 = arith.addf %452, %455 : vector<8x32xf32>
    %cst_321 = arith.constant 0.000000e+00 : f32
    %457 = vector.broadcast %cst_321 : f32 to vector<8x32xf32>
    %458 = arith.maximumf %456, %457 : vector<8x32xf32>
    %459 = arith.truncf %458 : vector<8x32xf32> to vector<8x32xbf16>
    %c45 = arith.constant 45 : index
    %c0_322 = arith.constant 0 : index
    %c0_323 = arith.constant 0 : index
    %460 = vector.load %arg4[%c45, %c0_322, %c0_323] : memref<100x32x32xbf16, #tpu.memory_space<vmem>>, vector<1x32x32xbf16>
    %461 = vector.shape_cast %460 : vector<1x32x32xbf16> to vector<32x32xbf16>
    %cst_324 = arith.constant dense<0.000000e+00> : vector<8x32xf32>
    %462 = tpu.matmul %459, %461, %cst_324 {dimension_numbers = #tpu.dot_dimension_numbers<[1], [0], [0], [1], [0, 0, 1, 1], [], []>} : vector<8x32xbf16>, vector<32x32xbf16>, vector<8x32xf32> -> vector<8x32xf32>
    %c45_325 = arith.constant 45 : index
    %c0_326 = arith.constant 0 : index
    %c0_327 = arith.constant 0 : index
    %463 = vector.load %arg5[%c45_325, %c0_326, %c0_327] : memref<100x1x32xf32, #tpu.memory_space<vmem>>, vector<1x1x32xf32>
    %464 = vector.shape_cast %463 : vector<1x1x32xf32> to vector<1x32xf32>
    %465 = vector.broadcast %464 : vector<1x32xf32> to vector<8x32xf32>
    %466 = arith.addf %462, %465 : vector<8x32xf32>
    %cst_328 = arith.constant 0.000000e+00 : f32
    %467 = vector.broadcast %cst_328 : f32 to vector<8x32xf32>
    %468 = arith.maximumf %466, %467 : vector<8x32xf32>
    %469 = arith.truncf %468 : vector<8x32xf32> to vector<8x32xbf16>
    %c46 = arith.constant 46 : index
    %c0_329 = arith.constant 0 : index
    %c0_330 = arith.constant 0 : index
    %470 = vector.load %arg4[%c46, %c0_329, %c0_330] : memref<100x32x32xbf16, #tpu.memory_space<vmem>>, vector<1x32x32xbf16>
    %471 = vector.shape_cast %470 : vector<1x32x32xbf16> to vector<32x32xbf16>
    %cst_331 = arith.constant dense<0.000000e+00> : vector<8x32xf32>
    %472 = tpu.matmul %469, %471, %cst_331 {dimension_numbers = #tpu.dot_dimension_numbers<[1], [0], [0], [1], [0, 0, 1, 1], [], []>} : vector<8x32xbf16>, vector<32x32xbf16>, vector<8x32xf32> -> vector<8x32xf32>
    %c46_332 = arith.constant 46 : index
    %c0_333 = arith.constant 0 : index
    %c0_334 = arith.constant 0 : index
    %473 = vector.load %arg5[%c46_332, %c0_333, %c0_334] : memref<100x1x32xf32, #tpu.memory_space<vmem>>, vector<1x1x32xf32>
    %474 = vector.shape_cast %473 : vector<1x1x32xf32> to vector<1x32xf32>
    %475 = vector.broadcast %474 : vector<1x32xf32> to vector<8x32xf32>
    %476 = arith.addf %472, %475 : vector<8x32xf32>
    %cst_335 = arith.constant 0.000000e+00 : f32
    %477 = vector.broadcast %cst_335 : f32 to vector<8x32xf32>
    %478 = arith.maximumf %476, %477 : vector<8x32xf32>
    %479 = arith.truncf %478 : vector<8x32xf32> to vector<8x32xbf16>
    %c47 = arith.constant 47 : index
    %c0_336 = arith.constant 0 : index
    %c0_337 = arith.constant 0 : index
    %480 = vector.load %arg4[%c47, %c0_336, %c0_337] : memref<100x32x32xbf16, #tpu.memory_space<vmem>>, vector<1x32x32xbf16>
    %481 = vector.shape_cast %480 : vector<1x32x32xbf16> to vector<32x32xbf16>
    %cst_338 = arith.constant dense<0.000000e+00> : vector<8x32xf32>
    %482 = tpu.matmul %479, %481, %cst_338 {dimension_numbers = #tpu.dot_dimension_numbers<[1], [0], [0], [1], [0, 0, 1, 1], [], []>} : vector<8x32xbf16>, vector<32x32xbf16>, vector<8x32xf32> -> vector<8x32xf32>
    %c47_339 = arith.constant 47 : index
    %c0_340 = arith.constant 0 : index
    %c0_341 = arith.constant 0 : index
    %483 = vector.load %arg5[%c47_339, %c0_340, %c0_341] : memref<100x1x32xf32, #tpu.memory_space<vmem>>, vector<1x1x32xf32>
    %484 = vector.shape_cast %483 : vector<1x1x32xf32> to vector<1x32xf32>
    %485 = vector.broadcast %484 : vector<1x32xf32> to vector<8x32xf32>
    %486 = arith.addf %482, %485 : vector<8x32xf32>
    %cst_342 = arith.constant 0.000000e+00 : f32
    %487 = vector.broadcast %cst_342 : f32 to vector<8x32xf32>
    %488 = arith.maximumf %486, %487 : vector<8x32xf32>
    %489 = arith.truncf %488 : vector<8x32xf32> to vector<8x32xbf16>
    %c48 = arith.constant 48 : index
    %c0_343 = arith.constant 0 : index
    %c0_344 = arith.constant 0 : index
    %490 = vector.load %arg4[%c48, %c0_343, %c0_344] : memref<100x32x32xbf16, #tpu.memory_space<vmem>>, vector<1x32x32xbf16>
    %491 = vector.shape_cast %490 : vector<1x32x32xbf16> to vector<32x32xbf16>
    %cst_345 = arith.constant dense<0.000000e+00> : vector<8x32xf32>
    %492 = tpu.matmul %489, %491, %cst_345 {dimension_numbers = #tpu.dot_dimension_numbers<[1], [0], [0], [1], [0, 0, 1, 1], [], []>} : vector<8x32xbf16>, vector<32x32xbf16>, vector<8x32xf32> -> vector<8x32xf32>
    %c48_346 = arith.constant 48 : index
    %c0_347 = arith.constant 0 : index
    %c0_348 = arith.constant 0 : index
    %493 = vector.load %arg5[%c48_346, %c0_347, %c0_348] : memref<100x1x32xf32, #tpu.memory_space<vmem>>, vector<1x1x32xf32>
    %494 = vector.shape_cast %493 : vector<1x1x32xf32> to vector<1x32xf32>
    %495 = vector.broadcast %494 : vector<1x32xf32> to vector<8x32xf32>
    %496 = arith.addf %492, %495 : vector<8x32xf32>
    %cst_349 = arith.constant 0.000000e+00 : f32
    %497 = vector.broadcast %cst_349 : f32 to vector<8x32xf32>
    %498 = arith.maximumf %496, %497 : vector<8x32xf32>
    %499 = arith.truncf %498 : vector<8x32xf32> to vector<8x32xbf16>
    %c49 = arith.constant 49 : index
    %c0_350 = arith.constant 0 : index
    %c0_351 = arith.constant 0 : index
    %500 = vector.load %arg4[%c49, %c0_350, %c0_351] : memref<100x32x32xbf16, #tpu.memory_space<vmem>>, vector<1x32x32xbf16>
    %501 = vector.shape_cast %500 : vector<1x32x32xbf16> to vector<32x32xbf16>
    %cst_352 = arith.constant dense<0.000000e+00> : vector<8x32xf32>
    %502 = tpu.matmul %499, %501, %cst_352 {dimension_numbers = #tpu.dot_dimension_numbers<[1], [0], [0], [1], [0, 0, 1, 1], [], []>} : vector<8x32xbf16>, vector<32x32xbf16>, vector<8x32xf32> -> vector<8x32xf32>
    %c49_353 = arith.constant 49 : index
    %c0_354 = arith.constant 0 : index
    %c0_355 = arith.constant 0 : index
    %503 = vector.load %arg5[%c49_353, %c0_354, %c0_355] : memref<100x1x32xf32, #tpu.memory_space<vmem>>, vector<1x1x32xf32>
    %504 = vector.shape_cast %503 : vector<1x1x32xf32> to vector<1x32xf32>
    %505 = vector.broadcast %504 : vector<1x32xf32> to vector<8x32xf32>
    %506 = arith.addf %502, %505 : vector<8x32xf32>
    %cst_356 = arith.constant 0.000000e+00 : f32
    %507 = vector.broadcast %cst_356 : f32 to vector<8x32xf32>
    %508 = arith.maximumf %506, %507 : vector<8x32xf32>
    %509 = arith.truncf %508 : vector<8x32xf32> to vector<8x32xbf16>
    %c50 = arith.constant 50 : index
    %c0_357 = arith.constant 0 : index
    %c0_358 = arith.constant 0 : index
    %510 = vector.load %arg4[%c50, %c0_357, %c0_358] : memref<100x32x32xbf16, #tpu.memory_space<vmem>>, vector<1x32x32xbf16>
    %511 = vector.shape_cast %510 : vector<1x32x32xbf16> to vector<32x32xbf16>
    %cst_359 = arith.constant dense<0.000000e+00> : vector<8x32xf32>
    %512 = tpu.matmul %509, %511, %cst_359 {dimension_numbers = #tpu.dot_dimension_numbers<[1], [0], [0], [1], [0, 0, 1, 1], [], []>} : vector<8x32xbf16>, vector<32x32xbf16>, vector<8x32xf32> -> vector<8x32xf32>
    %c50_360 = arith.constant 50 : index
    %c0_361 = arith.constant 0 : index
    %c0_362 = arith.constant 0 : index
    %513 = vector.load %arg5[%c50_360, %c0_361, %c0_362] : memref<100x1x32xf32, #tpu.memory_space<vmem>>, vector<1x1x32xf32>
    %514 = vector.shape_cast %513 : vector<1x1x32xf32> to vector<1x32xf32>
    %515 = vector.broadcast %514 : vector<1x32xf32> to vector<8x32xf32>
    %516 = arith.addf %512, %515 : vector<8x32xf32>
    %cst_363 = arith.constant 0.000000e+00 : f32
    %517 = vector.broadcast %cst_363 : f32 to vector<8x32xf32>
    %518 = arith.maximumf %516, %517 : vector<8x32xf32>
    %519 = arith.truncf %518 : vector<8x32xf32> to vector<8x32xbf16>
    %c51 = arith.constant 51 : index
    %c0_364 = arith.constant 0 : index
    %c0_365 = arith.constant 0 : index
    %520 = vector.load %arg4[%c51, %c0_364, %c0_365] : memref<100x32x32xbf16, #tpu.memory_space<vmem>>, vector<1x32x32xbf16>
    %521 = vector.shape_cast %520 : vector<1x32x32xbf16> to vector<32x32xbf16>
    %cst_366 = arith.constant dense<0.000000e+00> : vector<8x32xf32>
    %522 = tpu.matmul %519, %521, %cst_366 {dimension_numbers = #tpu.dot_dimension_numbers<[1], [0], [0], [1], [0, 0, 1, 1], [], []>} : vector<8x32xbf16>, vector<32x32xbf16>, vector<8x32xf32> -> vector<8x32xf32>
    %c51_367 = arith.constant 51 : index
    %c0_368 = arith.constant 0 : index
    %c0_369 = arith.constant 0 : index
    %523 = vector.load %arg5[%c51_367, %c0_368, %c0_369] : memref<100x1x32xf32, #tpu.memory_space<vmem>>, vector<1x1x32xf32>
    %524 = vector.shape_cast %523 : vector<1x1x32xf32> to vector<1x32xf32>
    %525 = vector.broadcast %524 : vector<1x32xf32> to vector<8x32xf32>
    %526 = arith.addf %522, %525 : vector<8x32xf32>
    %cst_370 = arith.constant 0.000000e+00 : f32
    %527 = vector.broadcast %cst_370 : f32 to vector<8x32xf32>
    %528 = arith.maximumf %526, %527 : vector<8x32xf32>
    %529 = arith.truncf %528 : vector<8x32xf32> to vector<8x32xbf16>
    %c52 = arith.constant 52 : index
    %c0_371 = arith.constant 0 : index
    %c0_372 = arith.constant 0 : index
    %530 = vector.load %arg4[%c52, %c0_371, %c0_372] : memref<100x32x32xbf16, #tpu.memory_space<vmem>>, vector<1x32x32xbf16>
    %531 = vector.shape_cast %530 : vector<1x32x32xbf16> to vector<32x32xbf16>
    %cst_373 = arith.constant dense<0.000000e+00> : vector<8x32xf32>
    %532 = tpu.matmul %529, %531, %cst_373 {dimension_numbers = #tpu.dot_dimension_numbers<[1], [0], [0], [1], [0, 0, 1, 1], [], []>} : vector<8x32xbf16>, vector<32x32xbf16>, vector<8x32xf32> -> vector<8x32xf32>
    %c52_374 = arith.constant 52 : index
    %c0_375 = arith.constant 0 : index
    %c0_376 = arith.constant 0 : index
    %533 = vector.load %arg5[%c52_374, %c0_375, %c0_376] : memref<100x1x32xf32, #tpu.memory_space<vmem>>, vector<1x1x32xf32>
    %534 = vector.shape_cast %533 : vector<1x1x32xf32> to vector<1x32xf32>
    %535 = vector.broadcast %534 : vector<1x32xf32> to vector<8x32xf32>
    %536 = arith.addf %532, %535 : vector<8x32xf32>
    %cst_377 = arith.constant 0.000000e+00 : f32
    %537 = vector.broadcast %cst_377 : f32 to vector<8x32xf32>
    %538 = arith.maximumf %536, %537 : vector<8x32xf32>
    %539 = arith.truncf %538 : vector<8x32xf32> to vector<8x32xbf16>
    %c53 = arith.constant 53 : index
    %c0_378 = arith.constant 0 : index
    %c0_379 = arith.constant 0 : index
    %540 = vector.load %arg4[%c53, %c0_378, %c0_379] : memref<100x32x32xbf16, #tpu.memory_space<vmem>>, vector<1x32x32xbf16>
    %541 = vector.shape_cast %540 : vector<1x32x32xbf16> to vector<32x32xbf16>
    %cst_380 = arith.constant dense<0.000000e+00> : vector<8x32xf32>
    %542 = tpu.matmul %539, %541, %cst_380 {dimension_numbers = #tpu.dot_dimension_numbers<[1], [0], [0], [1], [0, 0, 1, 1], [], []>} : vector<8x32xbf16>, vector<32x32xbf16>, vector<8x32xf32> -> vector<8x32xf32>
    %c53_381 = arith.constant 53 : index
    %c0_382 = arith.constant 0 : index
    %c0_383 = arith.constant 0 : index
    %543 = vector.load %arg5[%c53_381, %c0_382, %c0_383] : memref<100x1x32xf32, #tpu.memory_space<vmem>>, vector<1x1x32xf32>
    %544 = vector.shape_cast %543 : vector<1x1x32xf32> to vector<1x32xf32>
    %545 = vector.broadcast %544 : vector<1x32xf32> to vector<8x32xf32>
    %546 = arith.addf %542, %545 : vector<8x32xf32>
    %cst_384 = arith.constant 0.000000e+00 : f32
    %547 = vector.broadcast %cst_384 : f32 to vector<8x32xf32>
    %548 = arith.maximumf %546, %547 : vector<8x32xf32>
    %549 = arith.truncf %548 : vector<8x32xf32> to vector<8x32xbf16>
    %c54 = arith.constant 54 : index
    %c0_385 = arith.constant 0 : index
    %c0_386 = arith.constant 0 : index
    %550 = vector.load %arg4[%c54, %c0_385, %c0_386] : memref<100x32x32xbf16, #tpu.memory_space<vmem>>, vector<1x32x32xbf16>
    %551 = vector.shape_cast %550 : vector<1x32x32xbf16> to vector<32x32xbf16>
    %cst_387 = arith.constant dense<0.000000e+00> : vector<8x32xf32>
    %552 = tpu.matmul %549, %551, %cst_387 {dimension_numbers = #tpu.dot_dimension_numbers<[1], [0], [0], [1], [0, 0, 1, 1], [], []>} : vector<8x32xbf16>, vector<32x32xbf16>, vector<8x32xf32> -> vector<8x32xf32>
    %c54_388 = arith.constant 54 : index
    %c0_389 = arith.constant 0 : index
    %c0_390 = arith.constant 0 : index
    %553 = vector.load %arg5[%c54_388, %c0_389, %c0_390] : memref<100x1x32xf32, #tpu.memory_space<vmem>>, vector<1x1x32xf32>
    %554 = vector.shape_cast %553 : vector<1x1x32xf32> to vector<1x32xf32>
    %555 = vector.broadcast %554 : vector<1x32xf32> to vector<8x32xf32>
    %556 = arith.addf %552, %555 : vector<8x32xf32>
    %cst_391 = arith.constant 0.000000e+00 : f32
    %557 = vector.broadcast %cst_391 : f32 to vector<8x32xf32>
    %558 = arith.maximumf %556, %557 : vector<8x32xf32>
    %559 = arith.truncf %558 : vector<8x32xf32> to vector<8x32xbf16>
    %c55 = arith.constant 55 : index
    %c0_392 = arith.constant 0 : index
    %c0_393 = arith.constant 0 : index
    %560 = vector.load %arg4[%c55, %c0_392, %c0_393] : memref<100x32x32xbf16, #tpu.memory_space<vmem>>, vector<1x32x32xbf16>
    %561 = vector.shape_cast %560 : vector<1x32x32xbf16> to vector<32x32xbf16>
    %cst_394 = arith.constant dense<0.000000e+00> : vector<8x32xf32>
    %562 = tpu.matmul %559, %561, %cst_394 {dimension_numbers = #tpu.dot_dimension_numbers<[1], [0], [0], [1], [0, 0, 1, 1], [], []>} : vector<8x32xbf16>, vector<32x32xbf16>, vector<8x32xf32> -> vector<8x32xf32>
    %c55_395 = arith.constant 55 : index
    %c0_396 = arith.constant 0 : index
    %c0_397 = arith.constant 0 : index
    %563 = vector.load %arg5[%c55_395, %c0_396, %c0_397] : memref<100x1x32xf32, #tpu.memory_space<vmem>>, vector<1x1x32xf32>
    %564 = vector.shape_cast %563 : vector<1x1x32xf32> to vector<1x32xf32>
    %565 = vector.broadcast %564 : vector<1x32xf32> to vector<8x32xf32>
    %566 = arith.addf %562, %565 : vector<8x32xf32>
    %cst_398 = arith.constant 0.000000e+00 : f32
    %567 = vector.broadcast %cst_398 : f32 to vector<8x32xf32>
    %568 = arith.maximumf %566, %567 : vector<8x32xf32>
    %569 = arith.truncf %568 : vector<8x32xf32> to vector<8x32xbf16>
    %c56 = arith.constant 56 : index
    %c0_399 = arith.constant 0 : index
    %c0_400 = arith.constant 0 : index
    %570 = vector.load %arg4[%c56, %c0_399, %c0_400] : memref<100x32x32xbf16, #tpu.memory_space<vmem>>, vector<1x32x32xbf16>
    %571 = vector.shape_cast %570 : vector<1x32x32xbf16> to vector<32x32xbf16>
    %cst_401 = arith.constant dense<0.000000e+00> : vector<8x32xf32>
    %572 = tpu.matmul %569, %571, %cst_401 {dimension_numbers = #tpu.dot_dimension_numbers<[1], [0], [0], [1], [0, 0, 1, 1], [], []>} : vector<8x32xbf16>, vector<32x32xbf16>, vector<8x32xf32> -> vector<8x32xf32>
    %c56_402 = arith.constant 56 : index
    %c0_403 = arith.constant 0 : index
    %c0_404 = arith.constant 0 : index
    %573 = vector.load %arg5[%c56_402, %c0_403, %c0_404] : memref<100x1x32xf32, #tpu.memory_space<vmem>>, vector<1x1x32xf32>
    %574 = vector.shape_cast %573 : vector<1x1x32xf32> to vector<1x32xf32>
    %575 = vector.broadcast %574 : vector<1x32xf32> to vector<8x32xf32>
    %576 = arith.addf %572, %575 : vector<8x32xf32>
    %cst_405 = arith.constant 0.000000e+00 : f32
    %577 = vector.broadcast %cst_405 : f32 to vector<8x32xf32>
    %578 = arith.maximumf %576, %577 : vector<8x32xf32>
    %579 = arith.truncf %578 : vector<8x32xf32> to vector<8x32xbf16>
    %c57 = arith.constant 57 : index
    %c0_406 = arith.constant 0 : index
    %c0_407 = arith.constant 0 : index
    %580 = vector.load %arg4[%c57, %c0_406, %c0_407] : memref<100x32x32xbf16, #tpu.memory_space<vmem>>, vector<1x32x32xbf16>
    %581 = vector.shape_cast %580 : vector<1x32x32xbf16> to vector<32x32xbf16>
    %cst_408 = arith.constant dense<0.000000e+00> : vector<8x32xf32>
    %582 = tpu.matmul %579, %581, %cst_408 {dimension_numbers = #tpu.dot_dimension_numbers<[1], [0], [0], [1], [0, 0, 1, 1], [], []>} : vector<8x32xbf16>, vector<32x32xbf16>, vector<8x32xf32> -> vector<8x32xf32>
    %c57_409 = arith.constant 57 : index
    %c0_410 = arith.constant 0 : index
    %c0_411 = arith.constant 0 : index
    %583 = vector.load %arg5[%c57_409, %c0_410, %c0_411] : memref<100x1x32xf32, #tpu.memory_space<vmem>>, vector<1x1x32xf32>
    %584 = vector.shape_cast %583 : vector<1x1x32xf32> to vector<1x32xf32>
    %585 = vector.broadcast %584 : vector<1x32xf32> to vector<8x32xf32>
    %586 = arith.addf %582, %585 : vector<8x32xf32>
    %cst_412 = arith.constant 0.000000e+00 : f32
    %587 = vector.broadcast %cst_412 : f32 to vector<8x32xf32>
    %588 = arith.maximumf %586, %587 : vector<8x32xf32>
    %589 = arith.truncf %588 : vector<8x32xf32> to vector<8x32xbf16>
    %c58 = arith.constant 58 : index
    %c0_413 = arith.constant 0 : index
    %c0_414 = arith.constant 0 : index
    %590 = vector.load %arg4[%c58, %c0_413, %c0_414] : memref<100x32x32xbf16, #tpu.memory_space<vmem>>, vector<1x32x32xbf16>
    %591 = vector.shape_cast %590 : vector<1x32x32xbf16> to vector<32x32xbf16>
    %cst_415 = arith.constant dense<0.000000e+00> : vector<8x32xf32>
    %592 = tpu.matmul %589, %591, %cst_415 {dimension_numbers = #tpu.dot_dimension_numbers<[1], [0], [0], [1], [0, 0, 1, 1], [], []>} : vector<8x32xbf16>, vector<32x32xbf16>, vector<8x32xf32> -> vector<8x32xf32>
    %c58_416 = arith.constant 58 : index
    %c0_417 = arith.constant 0 : index
    %c0_418 = arith.constant 0 : index
    %593 = vector.load %arg5[%c58_416, %c0_417, %c0_418] : memref<100x1x32xf32, #tpu.memory_space<vmem>>, vector<1x1x32xf32>
    %594 = vector.shape_cast %593 : vector<1x1x32xf32> to vector<1x32xf32>
    %595 = vector.broadcast %594 : vector<1x32xf32> to vector<8x32xf32>
    %596 = arith.addf %592, %595 : vector<8x32xf32>
    %cst_419 = arith.constant 0.000000e+00 : f32
    %597 = vector.broadcast %cst_419 : f32 to vector<8x32xf32>
    %598 = arith.maximumf %596, %597 : vector<8x32xf32>
    %599 = arith.truncf %598 : vector<8x32xf32> to vector<8x32xbf16>
    %c59 = arith.constant 59 : index
    %c0_420 = arith.constant 0 : index
    %c0_421 = arith.constant 0 : index
    %600 = vector.load %arg4[%c59, %c0_420, %c0_421] : memref<100x32x32xbf16, #tpu.memory_space<vmem>>, vector<1x32x32xbf16>
    %601 = vector.shape_cast %600 : vector<1x32x32xbf16> to vector<32x32xbf16>
    %cst_422 = arith.constant dense<0.000000e+00> : vector<8x32xf32>
    %602 = tpu.matmul %599, %601, %cst_422 {dimension_numbers = #tpu.dot_dimension_numbers<[1], [0], [0], [1], [0, 0, 1, 1], [], []>} : vector<8x32xbf16>, vector<32x32xbf16>, vector<8x32xf32> -> vector<8x32xf32>
    %c59_423 = arith.constant 59 : index
    %c0_424 = arith.constant 0 : index
    %c0_425 = arith.constant 0 : index
    %603 = vector.load %arg5[%c59_423, %c0_424, %c0_425] : memref<100x1x32xf32, #tpu.memory_space<vmem>>, vector<1x1x32xf32>
    %604 = vector.shape_cast %603 : vector<1x1x32xf32> to vector<1x32xf32>
    %605 = vector.broadcast %604 : vector<1x32xf32> to vector<8x32xf32>
    %606 = arith.addf %602, %605 : vector<8x32xf32>
    %cst_426 = arith.constant 0.000000e+00 : f32
    %607 = vector.broadcast %cst_426 : f32 to vector<8x32xf32>
    %608 = arith.maximumf %606, %607 : vector<8x32xf32>
    %609 = arith.truncf %608 : vector<8x32xf32> to vector<8x32xbf16>
    %c60 = arith.constant 60 : index
    %c0_427 = arith.constant 0 : index
    %c0_428 = arith.constant 0 : index
    %610 = vector.load %arg4[%c60, %c0_427, %c0_428] : memref<100x32x32xbf16, #tpu.memory_space<vmem>>, vector<1x32x32xbf16>
    %611 = vector.shape_cast %610 : vector<1x32x32xbf16> to vector<32x32xbf16>
    %cst_429 = arith.constant dense<0.000000e+00> : vector<8x32xf32>
    %612 = tpu.matmul %609, %611, %cst_429 {dimension_numbers = #tpu.dot_dimension_numbers<[1], [0], [0], [1], [0, 0, 1, 1], [], []>} : vector<8x32xbf16>, vector<32x32xbf16>, vector<8x32xf32> -> vector<8x32xf32>
    %c60_430 = arith.constant 60 : index
    %c0_431 = arith.constant 0 : index
    %c0_432 = arith.constant 0 : index
    %613 = vector.load %arg5[%c60_430, %c0_431, %c0_432] : memref<100x1x32xf32, #tpu.memory_space<vmem>>, vector<1x1x32xf32>
    %614 = vector.shape_cast %613 : vector<1x1x32xf32> to vector<1x32xf32>
    %615 = vector.broadcast %614 : vector<1x32xf32> to vector<8x32xf32>
    %616 = arith.addf %612, %615 : vector<8x32xf32>
    %cst_433 = arith.constant 0.000000e+00 : f32
    %617 = vector.broadcast %cst_433 : f32 to vector<8x32xf32>
    %618 = arith.maximumf %616, %617 : vector<8x32xf32>
    %619 = arith.truncf %618 : vector<8x32xf32> to vector<8x32xbf16>
    %c61 = arith.constant 61 : index
    %c0_434 = arith.constant 0 : index
    %c0_435 = arith.constant 0 : index
    %620 = vector.load %arg4[%c61, %c0_434, %c0_435] : memref<100x32x32xbf16, #tpu.memory_space<vmem>>, vector<1x32x32xbf16>
    %621 = vector.shape_cast %620 : vector<1x32x32xbf16> to vector<32x32xbf16>
    %cst_436 = arith.constant dense<0.000000e+00> : vector<8x32xf32>
    %622 = tpu.matmul %619, %621, %cst_436 {dimension_numbers = #tpu.dot_dimension_numbers<[1], [0], [0], [1], [0, 0, 1, 1], [], []>} : vector<8x32xbf16>, vector<32x32xbf16>, vector<8x32xf32> -> vector<8x32xf32>
    %c61_437 = arith.constant 61 : index
    %c0_438 = arith.constant 0 : index
    %c0_439 = arith.constant 0 : index
    %623 = vector.load %arg5[%c61_437, %c0_438, %c0_439] : memref<100x1x32xf32, #tpu.memory_space<vmem>>, vector<1x1x32xf32>
    %624 = vector.shape_cast %623 : vector<1x1x32xf32> to vector<1x32xf32>
    %625 = vector.broadcast %624 : vector<1x32xf32> to vector<8x32xf32>
    %626 = arith.addf %622, %625 : vector<8x32xf32>
    %cst_440 = arith.constant 0.000000e+00 : f32
    %627 = vector.broadcast %cst_440 : f32 to vector<8x32xf32>
    %628 = arith.maximumf %626, %627 : vector<8x32xf32>
    %629 = arith.truncf %628 : vector<8x32xf32> to vector<8x32xbf16>
    %c62 = arith.constant 62 : index
    %c0_441 = arith.constant 0 : index
    %c0_442 = arith.constant 0 : index
    %630 = vector.load %arg4[%c62, %c0_441, %c0_442] : memref<100x32x32xbf16, #tpu.memory_space<vmem>>, vector<1x32x32xbf16>
    %631 = vector.shape_cast %630 : vector<1x32x32xbf16> to vector<32x32xbf16>
    %cst_443 = arith.constant dense<0.000000e+00> : vector<8x32xf32>
    %632 = tpu.matmul %629, %631, %cst_443 {dimension_numbers = #tpu.dot_dimension_numbers<[1], [0], [0], [1], [0, 0, 1, 1], [], []>} : vector<8x32xbf16>, vector<32x32xbf16>, vector<8x32xf32> -> vector<8x32xf32>
    %c62_444 = arith.constant 62 : index
    %c0_445 = arith.constant 0 : index
    %c0_446 = arith.constant 0 : index
    %633 = vector.load %arg5[%c62_444, %c0_445, %c0_446] : memref<100x1x32xf32, #tpu.memory_space<vmem>>, vector<1x1x32xf32>
    %634 = vector.shape_cast %633 : vector<1x1x32xf32> to vector<1x32xf32>
    %635 = vector.broadcast %634 : vector<1x32xf32> to vector<8x32xf32>
    %636 = arith.addf %632, %635 : vector<8x32xf32>
    %cst_447 = arith.constant 0.000000e+00 : f32
    %637 = vector.broadcast %cst_447 : f32 to vector<8x32xf32>
    %638 = arith.maximumf %636, %637 : vector<8x32xf32>
    %639 = arith.truncf %638 : vector<8x32xf32> to vector<8x32xbf16>
    %c63 = arith.constant 63 : index
    %c0_448 = arith.constant 0 : index
    %c0_449 = arith.constant 0 : index
    %640 = vector.load %arg4[%c63, %c0_448, %c0_449] : memref<100x32x32xbf16, #tpu.memory_space<vmem>>, vector<1x32x32xbf16>
    %641 = vector.shape_cast %640 : vector<1x32x32xbf16> to vector<32x32xbf16>
    %cst_450 = arith.constant dense<0.000000e+00> : vector<8x32xf32>
    %642 = tpu.matmul %639, %641, %cst_450 {dimension_numbers = #tpu.dot_dimension_numbers<[1], [0], [0], [1], [0, 0, 1, 1], [], []>} : vector<8x32xbf16>, vector<32x32xbf16>, vector<8x32xf32> -> vector<8x32xf32>
    %c63_451 = arith.constant 63 : index
    %c0_452 = arith.constant 0 : index
    %c0_453 = arith.constant 0 : index
    %643 = vector.load %arg5[%c63_451, %c0_452, %c0_453] : memref<100x1x32xf32, #tpu.memory_space<vmem>>, vector<1x1x32xf32>
    %644 = vector.shape_cast %643 : vector<1x1x32xf32> to vector<1x32xf32>
    %645 = vector.broadcast %644 : vector<1x32xf32> to vector<8x32xf32>
    %646 = arith.addf %642, %645 : vector<8x32xf32>
    %cst_454 = arith.constant 0.000000e+00 : f32
    %647 = vector.broadcast %cst_454 : f32 to vector<8x32xf32>
    %648 = arith.maximumf %646, %647 : vector<8x32xf32>
    %649 = arith.truncf %648 : vector<8x32xf32> to vector<8x32xbf16>
    %c64 = arith.constant 64 : index
    %c0_455 = arith.constant 0 : index
    %c0_456 = arith.constant 0 : index
    %650 = vector.load %arg4[%c64, %c0_455, %c0_456] : memref<100x32x32xbf16, #tpu.memory_space<vmem>>, vector<1x32x32xbf16>
    %651 = vector.shape_cast %650 : vector<1x32x32xbf16> to vector<32x32xbf16>
    %cst_457 = arith.constant dense<0.000000e+00> : vector<8x32xf32>
    %652 = tpu.matmul %649, %651, %cst_457 {dimension_numbers = #tpu.dot_dimension_numbers<[1], [0], [0], [1], [0, 0, 1, 1], [], []>} : vector<8x32xbf16>, vector<32x32xbf16>, vector<8x32xf32> -> vector<8x32xf32>
    %c64_458 = arith.constant 64 : index
    %c0_459 = arith.constant 0 : index
    %c0_460 = arith.constant 0 : index
    %653 = vector.load %arg5[%c64_458, %c0_459, %c0_460] : memref<100x1x32xf32, #tpu.memory_space<vmem>>, vector<1x1x32xf32>
    %654 = vector.shape_cast %653 : vector<1x1x32xf32> to vector<1x32xf32>
    %655 = vector.broadcast %654 : vector<1x32xf32> to vector<8x32xf32>
    %656 = arith.addf %652, %655 : vector<8x32xf32>
    %cst_461 = arith.constant 0.000000e+00 : f32
    %657 = vector.broadcast %cst_461 : f32 to vector<8x32xf32>
    %658 = arith.maximumf %656, %657 : vector<8x32xf32>
    %659 = arith.truncf %658 : vector<8x32xf32> to vector<8x32xbf16>
    %c65 = arith.constant 65 : index
    %c0_462 = arith.constant 0 : index
    %c0_463 = arith.constant 0 : index
    %660 = vector.load %arg4[%c65, %c0_462, %c0_463] : memref<100x32x32xbf16, #tpu.memory_space<vmem>>, vector<1x32x32xbf16>
    %661 = vector.shape_cast %660 : vector<1x32x32xbf16> to vector<32x32xbf16>
    %cst_464 = arith.constant dense<0.000000e+00> : vector<8x32xf32>
    %662 = tpu.matmul %659, %661, %cst_464 {dimension_numbers = #tpu.dot_dimension_numbers<[1], [0], [0], [1], [0, 0, 1, 1], [], []>} : vector<8x32xbf16>, vector<32x32xbf16>, vector<8x32xf32> -> vector<8x32xf32>
    %c65_465 = arith.constant 65 : index
    %c0_466 = arith.constant 0 : index
    %c0_467 = arith.constant 0 : index
    %663 = vector.load %arg5[%c65_465, %c0_466, %c0_467] : memref<100x1x32xf32, #tpu.memory_space<vmem>>, vector<1x1x32xf32>
    %664 = vector.shape_cast %663 : vector<1x1x32xf32> to vector<1x32xf32>
    %665 = vector.broadcast %664 : vector<1x32xf32> to vector<8x32xf32>
    %666 = arith.addf %662, %665 : vector<8x32xf32>
    %cst_468 = arith.constant 0.000000e+00 : f32
    %667 = vector.broadcast %cst_468 : f32 to vector<8x32xf32>
    %668 = arith.maximumf %666, %667 : vector<8x32xf32>
    %669 = arith.truncf %668 : vector<8x32xf32> to vector<8x32xbf16>
    %c66 = arith.constant 66 : index
    %c0_469 = arith.constant 0 : index
    %c0_470 = arith.constant 0 : index
    %670 = vector.load %arg4[%c66, %c0_469, %c0_470] : memref<100x32x32xbf16, #tpu.memory_space<vmem>>, vector<1x32x32xbf16>
    %671 = vector.shape_cast %670 : vector<1x32x32xbf16> to vector<32x32xbf16>
    %cst_471 = arith.constant dense<0.000000e+00> : vector<8x32xf32>
    %672 = tpu.matmul %669, %671, %cst_471 {dimension_numbers = #tpu.dot_dimension_numbers<[1], [0], [0], [1], [0, 0, 1, 1], [], []>} : vector<8x32xbf16>, vector<32x32xbf16>, vector<8x32xf32> -> vector<8x32xf32>
    %c66_472 = arith.constant 66 : index
    %c0_473 = arith.constant 0 : index
    %c0_474 = arith.constant 0 : index
    %673 = vector.load %arg5[%c66_472, %c0_473, %c0_474] : memref<100x1x32xf32, #tpu.memory_space<vmem>>, vector<1x1x32xf32>
    %674 = vector.shape_cast %673 : vector<1x1x32xf32> to vector<1x32xf32>
    %675 = vector.broadcast %674 : vector<1x32xf32> to vector<8x32xf32>
    %676 = arith.addf %672, %675 : vector<8x32xf32>
    %cst_475 = arith.constant 0.000000e+00 : f32
    %677 = vector.broadcast %cst_475 : f32 to vector<8x32xf32>
    %678 = arith.maximumf %676, %677 : vector<8x32xf32>
    %679 = arith.truncf %678 : vector<8x32xf32> to vector<8x32xbf16>
    %c67 = arith.constant 67 : index
    %c0_476 = arith.constant 0 : index
    %c0_477 = arith.constant 0 : index
    %680 = vector.load %arg4[%c67, %c0_476, %c0_477] : memref<100x32x32xbf16, #tpu.memory_space<vmem>>, vector<1x32x32xbf16>
    %681 = vector.shape_cast %680 : vector<1x32x32xbf16> to vector<32x32xbf16>
    %cst_478 = arith.constant dense<0.000000e+00> : vector<8x32xf32>
    %682 = tpu.matmul %679, %681, %cst_478 {dimension_numbers = #tpu.dot_dimension_numbers<[1], [0], [0], [1], [0, 0, 1, 1], [], []>} : vector<8x32xbf16>, vector<32x32xbf16>, vector<8x32xf32> -> vector<8x32xf32>
    %c67_479 = arith.constant 67 : index
    %c0_480 = arith.constant 0 : index
    %c0_481 = arith.constant 0 : index
    %683 = vector.load %arg5[%c67_479, %c0_480, %c0_481] : memref<100x1x32xf32, #tpu.memory_space<vmem>>, vector<1x1x32xf32>
    %684 = vector.shape_cast %683 : vector<1x1x32xf32> to vector<1x32xf32>
    %685 = vector.broadcast %684 : vector<1x32xf32> to vector<8x32xf32>
    %686 = arith.addf %682, %685 : vector<8x32xf32>
    %cst_482 = arith.constant 0.000000e+00 : f32
    %687 = vector.broadcast %cst_482 : f32 to vector<8x32xf32>
    %688 = arith.maximumf %686, %687 : vector<8x32xf32>
    %689 = arith.truncf %688 : vector<8x32xf32> to vector<8x32xbf16>
    %c68 = arith.constant 68 : index
    %c0_483 = arith.constant 0 : index
    %c0_484 = arith.constant 0 : index
    %690 = vector.load %arg4[%c68, %c0_483, %c0_484] : memref<100x32x32xbf16, #tpu.memory_space<vmem>>, vector<1x32x32xbf16>
    %691 = vector.shape_cast %690 : vector<1x32x32xbf16> to vector<32x32xbf16>
    %cst_485 = arith.constant dense<0.000000e+00> : vector<8x32xf32>
    %692 = tpu.matmul %689, %691, %cst_485 {dimension_numbers = #tpu.dot_dimension_numbers<[1], [0], [0], [1], [0, 0, 1, 1], [], []>} : vector<8x32xbf16>, vector<32x32xbf16>, vector<8x32xf32> -> vector<8x32xf32>
    %c68_486 = arith.constant 68 : index
    %c0_487 = arith.constant 0 : index
    %c0_488 = arith.constant 0 : index
    %693 = vector.load %arg5[%c68_486, %c0_487, %c0_488] : memref<100x1x32xf32, #tpu.memory_space<vmem>>, vector<1x1x32xf32>
    %694 = vector.shape_cast %693 : vector<1x1x32xf32> to vector<1x32xf32>
    %695 = vector.broadcast %694 : vector<1x32xf32> to vector<8x32xf32>
    %696 = arith.addf %692, %695 : vector<8x32xf32>
    %cst_489 = arith.constant 0.000000e+00 : f32
    %697 = vector.broadcast %cst_489 : f32 to vector<8x32xf32>
    %698 = arith.maximumf %696, %697 : vector<8x32xf32>
    %699 = arith.truncf %698 : vector<8x32xf32> to vector<8x32xbf16>
    %c69 = arith.constant 69 : index
    %c0_490 = arith.constant 0 : index
    %c0_491 = arith.constant 0 : index
    %700 = vector.load %arg4[%c69, %c0_490, %c0_491] : memref<100x32x32xbf16, #tpu.memory_space<vmem>>, vector<1x32x32xbf16>
    %701 = vector.shape_cast %700 : vector<1x32x32xbf16> to vector<32x32xbf16>
    %cst_492 = arith.constant dense<0.000000e+00> : vector<8x32xf32>
    %702 = tpu.matmul %699, %701, %cst_492 {dimension_numbers = #tpu.dot_dimension_numbers<[1], [0], [0], [1], [0, 0, 1, 1], [], []>} : vector<8x32xbf16>, vector<32x32xbf16>, vector<8x32xf32> -> vector<8x32xf32>
    %c69_493 = arith.constant 69 : index
    %c0_494 = arith.constant 0 : index
    %c0_495 = arith.constant 0 : index
    %703 = vector.load %arg5[%c69_493, %c0_494, %c0_495] : memref<100x1x32xf32, #tpu.memory_space<vmem>>, vector<1x1x32xf32>
    %704 = vector.shape_cast %703 : vector<1x1x32xf32> to vector<1x32xf32>
    %705 = vector.broadcast %704 : vector<1x32xf32> to vector<8x32xf32>
    %706 = arith.addf %702, %705 : vector<8x32xf32>
    %cst_496 = arith.constant 0.000000e+00 : f32
    %707 = vector.broadcast %cst_496 : f32 to vector<8x32xf32>
    %708 = arith.maximumf %706, %707 : vector<8x32xf32>
    %709 = arith.truncf %708 : vector<8x32xf32> to vector<8x32xbf16>
    %c70 = arith.constant 70 : index
    %c0_497 = arith.constant 0 : index
    %c0_498 = arith.constant 0 : index
    %710 = vector.load %arg4[%c70, %c0_497, %c0_498] : memref<100x32x32xbf16, #tpu.memory_space<vmem>>, vector<1x32x32xbf16>
    %711 = vector.shape_cast %710 : vector<1x32x32xbf16> to vector<32x32xbf16>
    %cst_499 = arith.constant dense<0.000000e+00> : vector<8x32xf32>
    %712 = tpu.matmul %709, %711, %cst_499 {dimension_numbers = #tpu.dot_dimension_numbers<[1], [0], [0], [1], [0, 0, 1, 1], [], []>} : vector<8x32xbf16>, vector<32x32xbf16>, vector<8x32xf32> -> vector<8x32xf32>
    %c70_500 = arith.constant 70 : index
    %c0_501 = arith.constant 0 : index
    %c0_502 = arith.constant 0 : index
    %713 = vector.load %arg5[%c70_500, %c0_501, %c0_502] : memref<100x1x32xf32, #tpu.memory_space<vmem>>, vector<1x1x32xf32>
    %714 = vector.shape_cast %713 : vector<1x1x32xf32> to vector<1x32xf32>
    %715 = vector.broadcast %714 : vector<1x32xf32> to vector<8x32xf32>
    %716 = arith.addf %712, %715 : vector<8x32xf32>
    %cst_503 = arith.constant 0.000000e+00 : f32
    %717 = vector.broadcast %cst_503 : f32 to vector<8x32xf32>
    %718 = arith.maximumf %716, %717 : vector<8x32xf32>
    %719 = arith.truncf %718 : vector<8x32xf32> to vector<8x32xbf16>
    %c71 = arith.constant 71 : index
    %c0_504 = arith.constant 0 : index
    %c0_505 = arith.constant 0 : index
    %720 = vector.load %arg4[%c71, %c0_504, %c0_505] : memref<100x32x32xbf16, #tpu.memory_space<vmem>>, vector<1x32x32xbf16>
    %721 = vector.shape_cast %720 : vector<1x32x32xbf16> to vector<32x32xbf16>
    %cst_506 = arith.constant dense<0.000000e+00> : vector<8x32xf32>
    %722 = tpu.matmul %719, %721, %cst_506 {dimension_numbers = #tpu.dot_dimension_numbers<[1], [0], [0], [1], [0, 0, 1, 1], [], []>} : vector<8x32xbf16>, vector<32x32xbf16>, vector<8x32xf32> -> vector<8x32xf32>
    %c71_507 = arith.constant 71 : index
    %c0_508 = arith.constant 0 : index
    %c0_509 = arith.constant 0 : index
    %723 = vector.load %arg5[%c71_507, %c0_508, %c0_509] : memref<100x1x32xf32, #tpu.memory_space<vmem>>, vector<1x1x32xf32>
    %724 = vector.shape_cast %723 : vector<1x1x32xf32> to vector<1x32xf32>
    %725 = vector.broadcast %724 : vector<1x32xf32> to vector<8x32xf32>
    %726 = arith.addf %722, %725 : vector<8x32xf32>
    %cst_510 = arith.constant 0.000000e+00 : f32
    %727 = vector.broadcast %cst_510 : f32 to vector<8x32xf32>
    %728 = arith.maximumf %726, %727 : vector<8x32xf32>
    %729 = arith.truncf %728 : vector<8x32xf32> to vector<8x32xbf16>
    %c72 = arith.constant 72 : index
    %c0_511 = arith.constant 0 : index
    %c0_512 = arith.constant 0 : index
    %730 = vector.load %arg4[%c72, %c0_511, %c0_512] : memref<100x32x32xbf16, #tpu.memory_space<vmem>>, vector<1x32x32xbf16>
    %731 = vector.shape_cast %730 : vector<1x32x32xbf16> to vector<32x32xbf16>
    %cst_513 = arith.constant dense<0.000000e+00> : vector<8x32xf32>
    %732 = tpu.matmul %729, %731, %cst_513 {dimension_numbers = #tpu.dot_dimension_numbers<[1], [0], [0], [1], [0, 0, 1, 1], [], []>} : vector<8x32xbf16>, vector<32x32xbf16>, vector<8x32xf32> -> vector<8x32xf32>
    %c72_514 = arith.constant 72 : index
    %c0_515 = arith.constant 0 : index
    %c0_516 = arith.constant 0 : index
    %733 = vector.load %arg5[%c72_514, %c0_515, %c0_516] : memref<100x1x32xf32, #tpu.memory_space<vmem>>, vector<1x1x32xf32>
    %734 = vector.shape_cast %733 : vector<1x1x32xf32> to vector<1x32xf32>
    %735 = vector.broadcast %734 : vector<1x32xf32> to vector<8x32xf32>
    %736 = arith.addf %732, %735 : vector<8x32xf32>
    %cst_517 = arith.constant 0.000000e+00 : f32
    %737 = vector.broadcast %cst_517 : f32 to vector<8x32xf32>
    %738 = arith.maximumf %736, %737 : vector<8x32xf32>
    %739 = arith.truncf %738 : vector<8x32xf32> to vector<8x32xbf16>
    %c73 = arith.constant 73 : index
    %c0_518 = arith.constant 0 : index
    %c0_519 = arith.constant 0 : index
    %740 = vector.load %arg4[%c73, %c0_518, %c0_519] : memref<100x32x32xbf16, #tpu.memory_space<vmem>>, vector<1x32x32xbf16>
    %741 = vector.shape_cast %740 : vector<1x32x32xbf16> to vector<32x32xbf16>
    %cst_520 = arith.constant dense<0.000000e+00> : vector<8x32xf32>
    %742 = tpu.matmul %739, %741, %cst_520 {dimension_numbers = #tpu.dot_dimension_numbers<[1], [0], [0], [1], [0, 0, 1, 1], [], []>} : vector<8x32xbf16>, vector<32x32xbf16>, vector<8x32xf32> -> vector<8x32xf32>
    %c73_521 = arith.constant 73 : index
    %c0_522 = arith.constant 0 : index
    %c0_523 = arith.constant 0 : index
    %743 = vector.load %arg5[%c73_521, %c0_522, %c0_523] : memref<100x1x32xf32, #tpu.memory_space<vmem>>, vector<1x1x32xf32>
    %744 = vector.shape_cast %743 : vector<1x1x32xf32> to vector<1x32xf32>
    %745 = vector.broadcast %744 : vector<1x32xf32> to vector<8x32xf32>
    %746 = arith.addf %742, %745 : vector<8x32xf32>
    %cst_524 = arith.constant 0.000000e+00 : f32
    %747 = vector.broadcast %cst_524 : f32 to vector<8x32xf32>
    %748 = arith.maximumf %746, %747 : vector<8x32xf32>
    %749 = arith.truncf %748 : vector<8x32xf32> to vector<8x32xbf16>
    %c74 = arith.constant 74 : index
    %c0_525 = arith.constant 0 : index
    %c0_526 = arith.constant 0 : index
    %750 = vector.load %arg4[%c74, %c0_525, %c0_526] : memref<100x32x32xbf16, #tpu.memory_space<vmem>>, vector<1x32x32xbf16>
    %751 = vector.shape_cast %750 : vector<1x32x32xbf16> to vector<32x32xbf16>
    %cst_527 = arith.constant dense<0.000000e+00> : vector<8x32xf32>
    %752 = tpu.matmul %749, %751, %cst_527 {dimension_numbers = #tpu.dot_dimension_numbers<[1], [0], [0], [1], [0, 0, 1, 1], [], []>} : vector<8x32xbf16>, vector<32x32xbf16>, vector<8x32xf32> -> vector<8x32xf32>
    %c74_528 = arith.constant 74 : index
    %c0_529 = arith.constant 0 : index
    %c0_530 = arith.constant 0 : index
    %753 = vector.load %arg5[%c74_528, %c0_529, %c0_530] : memref<100x1x32xf32, #tpu.memory_space<vmem>>, vector<1x1x32xf32>
    %754 = vector.shape_cast %753 : vector<1x1x32xf32> to vector<1x32xf32>
    %755 = vector.broadcast %754 : vector<1x32xf32> to vector<8x32xf32>
    %756 = arith.addf %752, %755 : vector<8x32xf32>
    %cst_531 = arith.constant 0.000000e+00 : f32
    %757 = vector.broadcast %cst_531 : f32 to vector<8x32xf32>
    %758 = arith.maximumf %756, %757 : vector<8x32xf32>
    %759 = arith.truncf %758 : vector<8x32xf32> to vector<8x32xbf16>
    %c75 = arith.constant 75 : index
    %c0_532 = arith.constant 0 : index
    %c0_533 = arith.constant 0 : index
    %760 = vector.load %arg4[%c75, %c0_532, %c0_533] : memref<100x32x32xbf16, #tpu.memory_space<vmem>>, vector<1x32x32xbf16>
    %761 = vector.shape_cast %760 : vector<1x32x32xbf16> to vector<32x32xbf16>
    %cst_534 = arith.constant dense<0.000000e+00> : vector<8x32xf32>
    %762 = tpu.matmul %759, %761, %cst_534 {dimension_numbers = #tpu.dot_dimension_numbers<[1], [0], [0], [1], [0, 0, 1, 1], [], []>} : vector<8x32xbf16>, vector<32x32xbf16>, vector<8x32xf32> -> vector<8x32xf32>
    %c75_535 = arith.constant 75 : index
    %c0_536 = arith.constant 0 : index
    %c0_537 = arith.constant 0 : index
    %763 = vector.load %arg5[%c75_535, %c0_536, %c0_537] : memref<100x1x32xf32, #tpu.memory_space<vmem>>, vector<1x1x32xf32>
    %764 = vector.shape_cast %763 : vector<1x1x32xf32> to vector<1x32xf32>
    %765 = vector.broadcast %764 : vector<1x32xf32> to vector<8x32xf32>
    %766 = arith.addf %762, %765 : vector<8x32xf32>
    %cst_538 = arith.constant 0.000000e+00 : f32
    %767 = vector.broadcast %cst_538 : f32 to vector<8x32xf32>
    %768 = arith.maximumf %766, %767 : vector<8x32xf32>
    %769 = arith.truncf %768 : vector<8x32xf32> to vector<8x32xbf16>
    %c76 = arith.constant 76 : index
    %c0_539 = arith.constant 0 : index
    %c0_540 = arith.constant 0 : index
    %770 = vector.load %arg4[%c76, %c0_539, %c0_540] : memref<100x32x32xbf16, #tpu.memory_space<vmem>>, vector<1x32x32xbf16>
    %771 = vector.shape_cast %770 : vector<1x32x32xbf16> to vector<32x32xbf16>
    %cst_541 = arith.constant dense<0.000000e+00> : vector<8x32xf32>
    %772 = tpu.matmul %769, %771, %cst_541 {dimension_numbers = #tpu.dot_dimension_numbers<[1], [0], [0], [1], [0, 0, 1, 1], [], []>} : vector<8x32xbf16>, vector<32x32xbf16>, vector<8x32xf32> -> vector<8x32xf32>
    %c76_542 = arith.constant 76 : index
    %c0_543 = arith.constant 0 : index
    %c0_544 = arith.constant 0 : index
    %773 = vector.load %arg5[%c76_542, %c0_543, %c0_544] : memref<100x1x32xf32, #tpu.memory_space<vmem>>, vector<1x1x32xf32>
    %774 = vector.shape_cast %773 : vector<1x1x32xf32> to vector<1x32xf32>
    %775 = vector.broadcast %774 : vector<1x32xf32> to vector<8x32xf32>
    %776 = arith.addf %772, %775 : vector<8x32xf32>
    %cst_545 = arith.constant 0.000000e+00 : f32
    %777 = vector.broadcast %cst_545 : f32 to vector<8x32xf32>
    %778 = arith.maximumf %776, %777 : vector<8x32xf32>
    %779 = arith.truncf %778 : vector<8x32xf32> to vector<8x32xbf16>
    %c77 = arith.constant 77 : index
    %c0_546 = arith.constant 0 : index
    %c0_547 = arith.constant 0 : index
    %780 = vector.load %arg4[%c77, %c0_546, %c0_547] : memref<100x32x32xbf16, #tpu.memory_space<vmem>>, vector<1x32x32xbf16>
    %781 = vector.shape_cast %780 : vector<1x32x32xbf16> to vector<32x32xbf16>
    %cst_548 = arith.constant dense<0.000000e+00> : vector<8x32xf32>
    %782 = tpu.matmul %779, %781, %cst_548 {dimension_numbers = #tpu.dot_dimension_numbers<[1], [0], [0], [1], [0, 0, 1, 1], [], []>} : vector<8x32xbf16>, vector<32x32xbf16>, vector<8x32xf32> -> vector<8x32xf32>
    %c77_549 = arith.constant 77 : index
    %c0_550 = arith.constant 0 : index
    %c0_551 = arith.constant 0 : index
    %783 = vector.load %arg5[%c77_549, %c0_550, %c0_551] : memref<100x1x32xf32, #tpu.memory_space<vmem>>, vector<1x1x32xf32>
    %784 = vector.shape_cast %783 : vector<1x1x32xf32> to vector<1x32xf32>
    %785 = vector.broadcast %784 : vector<1x32xf32> to vector<8x32xf32>
    %786 = arith.addf %782, %785 : vector<8x32xf32>
    %cst_552 = arith.constant 0.000000e+00 : f32
    %787 = vector.broadcast %cst_552 : f32 to vector<8x32xf32>
    %788 = arith.maximumf %786, %787 : vector<8x32xf32>
    %789 = arith.truncf %788 : vector<8x32xf32> to vector<8x32xbf16>
    %c78 = arith.constant 78 : index
    %c0_553 = arith.constant 0 : index
    %c0_554 = arith.constant 0 : index
    %790 = vector.load %arg4[%c78, %c0_553, %c0_554] : memref<100x32x32xbf16, #tpu.memory_space<vmem>>, vector<1x32x32xbf16>
    %791 = vector.shape_cast %790 : vector<1x32x32xbf16> to vector<32x32xbf16>
    %cst_555 = arith.constant dense<0.000000e+00> : vector<8x32xf32>
    %792 = tpu.matmul %789, %791, %cst_555 {dimension_numbers = #tpu.dot_dimension_numbers<[1], [0], [0], [1], [0, 0, 1, 1], [], []>} : vector<8x32xbf16>, vector<32x32xbf16>, vector<8x32xf32> -> vector<8x32xf32>
    %c78_556 = arith.constant 78 : index
    %c0_557 = arith.constant 0 : index
    %c0_558 = arith.constant 0 : index
    %793 = vector.load %arg5[%c78_556, %c0_557, %c0_558] : memref<100x1x32xf32, #tpu.memory_space<vmem>>, vector<1x1x32xf32>
    %794 = vector.shape_cast %793 : vector<1x1x32xf32> to vector<1x32xf32>
    %795 = vector.broadcast %794 : vector<1x32xf32> to vector<8x32xf32>
    %796 = arith.addf %792, %795 : vector<8x32xf32>
    %cst_559 = arith.constant 0.000000e+00 : f32
    %797 = vector.broadcast %cst_559 : f32 to vector<8x32xf32>
    %798 = arith.maximumf %796, %797 : vector<8x32xf32>
    %799 = arith.truncf %798 : vector<8x32xf32> to vector<8x32xbf16>
    %c79 = arith.constant 79 : index
    %c0_560 = arith.constant 0 : index
    %c0_561 = arith.constant 0 : index
    %800 = vector.load %arg4[%c79, %c0_560, %c0_561] : memref<100x32x32xbf16, #tpu.memory_space<vmem>>, vector<1x32x32xbf16>
    %801 = vector.shape_cast %800 : vector<1x32x32xbf16> to vector<32x32xbf16>
    %cst_562 = arith.constant dense<0.000000e+00> : vector<8x32xf32>
    %802 = tpu.matmul %799, %801, %cst_562 {dimension_numbers = #tpu.dot_dimension_numbers<[1], [0], [0], [1], [0, 0, 1, 1], [], []>} : vector<8x32xbf16>, vector<32x32xbf16>, vector<8x32xf32> -> vector<8x32xf32>
    %c79_563 = arith.constant 79 : index
    %c0_564 = arith.constant 0 : index
    %c0_565 = arith.constant 0 : index
    %803 = vector.load %arg5[%c79_563, %c0_564, %c0_565] : memref<100x1x32xf32, #tpu.memory_space<vmem>>, vector<1x1x32xf32>
    %804 = vector.shape_cast %803 : vector<1x1x32xf32> to vector<1x32xf32>
    %805 = vector.broadcast %804 : vector<1x32xf32> to vector<8x32xf32>
    %806 = arith.addf %802, %805 : vector<8x32xf32>
    %cst_566 = arith.constant 0.000000e+00 : f32
    %807 = vector.broadcast %cst_566 : f32 to vector<8x32xf32>
    %808 = arith.maximumf %806, %807 : vector<8x32xf32>
    %809 = arith.truncf %808 : vector<8x32xf32> to vector<8x32xbf16>
    %c80 = arith.constant 80 : index
    %c0_567 = arith.constant 0 : index
    %c0_568 = arith.constant 0 : index
    %810 = vector.load %arg4[%c80, %c0_567, %c0_568] : memref<100x32x32xbf16, #tpu.memory_space<vmem>>, vector<1x32x32xbf16>
    %811 = vector.shape_cast %810 : vector<1x32x32xbf16> to vector<32x32xbf16>
    %cst_569 = arith.constant dense<0.000000e+00> : vector<8x32xf32>
    %812 = tpu.matmul %809, %811, %cst_569 {dimension_numbers = #tpu.dot_dimension_numbers<[1], [0], [0], [1], [0, 0, 1, 1], [], []>} : vector<8x32xbf16>, vector<32x32xbf16>, vector<8x32xf32> -> vector<8x32xf32>
    %c80_570 = arith.constant 80 : index
    %c0_571 = arith.constant 0 : index
    %c0_572 = arith.constant 0 : index
    %813 = vector.load %arg5[%c80_570, %c0_571, %c0_572] : memref<100x1x32xf32, #tpu.memory_space<vmem>>, vector<1x1x32xf32>
    %814 = vector.shape_cast %813 : vector<1x1x32xf32> to vector<1x32xf32>
    %815 = vector.broadcast %814 : vector<1x32xf32> to vector<8x32xf32>
    %816 = arith.addf %812, %815 : vector<8x32xf32>
    %cst_573 = arith.constant 0.000000e+00 : f32
    %817 = vector.broadcast %cst_573 : f32 to vector<8x32xf32>
    %818 = arith.maximumf %816, %817 : vector<8x32xf32>
    %819 = arith.truncf %818 : vector<8x32xf32> to vector<8x32xbf16>
    %c81 = arith.constant 81 : index
    %c0_574 = arith.constant 0 : index
    %c0_575 = arith.constant 0 : index
    %820 = vector.load %arg4[%c81, %c0_574, %c0_575] : memref<100x32x32xbf16, #tpu.memory_space<vmem>>, vector<1x32x32xbf16>
    %821 = vector.shape_cast %820 : vector<1x32x32xbf16> to vector<32x32xbf16>
    %cst_576 = arith.constant dense<0.000000e+00> : vector<8x32xf32>
    %822 = tpu.matmul %819, %821, %cst_576 {dimension_numbers = #tpu.dot_dimension_numbers<[1], [0], [0], [1], [0, 0, 1, 1], [], []>} : vector<8x32xbf16>, vector<32x32xbf16>, vector<8x32xf32> -> vector<8x32xf32>
    %c81_577 = arith.constant 81 : index
    %c0_578 = arith.constant 0 : index
    %c0_579 = arith.constant 0 : index
    %823 = vector.load %arg5[%c81_577, %c0_578, %c0_579] : memref<100x1x32xf32, #tpu.memory_space<vmem>>, vector<1x1x32xf32>
    %824 = vector.shape_cast %823 : vector<1x1x32xf32> to vector<1x32xf32>
    %825 = vector.broadcast %824 : vector<1x32xf32> to vector<8x32xf32>
    %826 = arith.addf %822, %825 : vector<8x32xf32>
    %cst_580 = arith.constant 0.000000e+00 : f32
    %827 = vector.broadcast %cst_580 : f32 to vector<8x32xf32>
    %828 = arith.maximumf %826, %827 : vector<8x32xf32>
    %829 = arith.truncf %828 : vector<8x32xf32> to vector<8x32xbf16>
    %c82 = arith.constant 82 : index
    %c0_581 = arith.constant 0 : index
    %c0_582 = arith.constant 0 : index
    %830 = vector.load %arg4[%c82, %c0_581, %c0_582] : memref<100x32x32xbf16, #tpu.memory_space<vmem>>, vector<1x32x32xbf16>
    %831 = vector.shape_cast %830 : vector<1x32x32xbf16> to vector<32x32xbf16>
    %cst_583 = arith.constant dense<0.000000e+00> : vector<8x32xf32>
    %832 = tpu.matmul %829, %831, %cst_583 {dimension_numbers = #tpu.dot_dimension_numbers<[1], [0], [0], [1], [0, 0, 1, 1], [], []>} : vector<8x32xbf16>, vector<32x32xbf16>, vector<8x32xf32> -> vector<8x32xf32>
    %c82_584 = arith.constant 82 : index
    %c0_585 = arith.constant 0 : index
    %c0_586 = arith.constant 0 : index
    %833 = vector.load %arg5[%c82_584, %c0_585, %c0_586] : memref<100x1x32xf32, #tpu.memory_space<vmem>>, vector<1x1x32xf32>
    %834 = vector.shape_cast %833 : vector<1x1x32xf32> to vector<1x32xf32>
    %835 = vector.broadcast %834 : vector<1x32xf32> to vector<8x32xf32>
    %836 = arith.addf %832, %835 : vector<8x32xf32>
    %cst_587 = arith.constant 0.000000e+00 : f32
    %837 = vector.broadcast %cst_587 : f32 to vector<8x32xf32>
    %838 = arith.maximumf %836, %837 : vector<8x32xf32>
    %839 = arith.truncf %838 : vector<8x32xf32> to vector<8x32xbf16>
    %c83 = arith.constant 83 : index
    %c0_588 = arith.constant 0 : index
    %c0_589 = arith.constant 0 : index
    %840 = vector.load %arg4[%c83, %c0_588, %c0_589] : memref<100x32x32xbf16, #tpu.memory_space<vmem>>, vector<1x32x32xbf16>
    %841 = vector.shape_cast %840 : vector<1x32x32xbf16> to vector<32x32xbf16>
    %cst_590 = arith.constant dense<0.000000e+00> : vector<8x32xf32>
    %842 = tpu.matmul %839, %841, %cst_590 {dimension_numbers = #tpu.dot_dimension_numbers<[1], [0], [0], [1], [0, 0, 1, 1], [], []>} : vector<8x32xbf16>, vector<32x32xbf16>, vector<8x32xf32> -> vector<8x32xf32>
    %c83_591 = arith.constant 83 : index
    %c0_592 = arith.constant 0 : index
    %c0_593 = arith.constant 0 : index
    %843 = vector.load %arg5[%c83_591, %c0_592, %c0_593] : memref<100x1x32xf32, #tpu.memory_space<vmem>>, vector<1x1x32xf32>
    %844 = vector.shape_cast %843 : vector<1x1x32xf32> to vector<1x32xf32>
    %845 = vector.broadcast %844 : vector<1x32xf32> to vector<8x32xf32>
    %846 = arith.addf %842, %845 : vector<8x32xf32>
    %cst_594 = arith.constant 0.000000e+00 : f32
    %847 = vector.broadcast %cst_594 : f32 to vector<8x32xf32>
    %848 = arith.maximumf %846, %847 : vector<8x32xf32>
    %849 = arith.truncf %848 : vector<8x32xf32> to vector<8x32xbf16>
    %c84 = arith.constant 84 : index
    %c0_595 = arith.constant 0 : index
    %c0_596 = arith.constant 0 : index
    %850 = vector.load %arg4[%c84, %c0_595, %c0_596] : memref<100x32x32xbf16, #tpu.memory_space<vmem>>, vector<1x32x32xbf16>
    %851 = vector.shape_cast %850 : vector<1x32x32xbf16> to vector<32x32xbf16>
    %cst_597 = arith.constant dense<0.000000e+00> : vector<8x32xf32>
    %852 = tpu.matmul %849, %851, %cst_597 {dimension_numbers = #tpu.dot_dimension_numbers<[1], [0], [0], [1], [0, 0, 1, 1], [], []>} : vector<8x32xbf16>, vector<32x32xbf16>, vector<8x32xf32> -> vector<8x32xf32>
    %c84_598 = arith.constant 84 : index
    %c0_599 = arith.constant 0 : index
    %c0_600 = arith.constant 0 : index
    %853 = vector.load %arg5[%c84_598, %c0_599, %c0_600] : memref<100x1x32xf32, #tpu.memory_space<vmem>>, vector<1x1x32xf32>
    %854 = vector.shape_cast %853 : vector<1x1x32xf32> to vector<1x32xf32>
    %855 = vector.broadcast %854 : vector<1x32xf32> to vector<8x32xf32>
    %856 = arith.addf %852, %855 : vector<8x32xf32>
    %cst_601 = arith.constant 0.000000e+00 : f32
    %857 = vector.broadcast %cst_601 : f32 to vector<8x32xf32>
    %858 = arith.maximumf %856, %857 : vector<8x32xf32>
    %859 = arith.truncf %858 : vector<8x32xf32> to vector<8x32xbf16>
    %c85 = arith.constant 85 : index
    %c0_602 = arith.constant 0 : index
    %c0_603 = arith.constant 0 : index
    %860 = vector.load %arg4[%c85, %c0_602, %c0_603] : memref<100x32x32xbf16, #tpu.memory_space<vmem>>, vector<1x32x32xbf16>
    %861 = vector.shape_cast %860 : vector<1x32x32xbf16> to vector<32x32xbf16>
    %cst_604 = arith.constant dense<0.000000e+00> : vector<8x32xf32>
    %862 = tpu.matmul %859, %861, %cst_604 {dimension_numbers = #tpu.dot_dimension_numbers<[1], [0], [0], [1], [0, 0, 1, 1], [], []>} : vector<8x32xbf16>, vector<32x32xbf16>, vector<8x32xf32> -> vector<8x32xf32>
    %c85_605 = arith.constant 85 : index
    %c0_606 = arith.constant 0 : index
    %c0_607 = arith.constant 0 : index
    %863 = vector.load %arg5[%c85_605, %c0_606, %c0_607] : memref<100x1x32xf32, #tpu.memory_space<vmem>>, vector<1x1x32xf32>
    %864 = vector.shape_cast %863 : vector<1x1x32xf32> to vector<1x32xf32>
    %865 = vector.broadcast %864 : vector<1x32xf32> to vector<8x32xf32>
    %866 = arith.addf %862, %865 : vector<8x32xf32>
    %cst_608 = arith.constant 0.000000e+00 : f32
    %867 = vector.broadcast %cst_608 : f32 to vector<8x32xf32>
    %868 = arith.maximumf %866, %867 : vector<8x32xf32>
    %869 = arith.truncf %868 : vector<8x32xf32> to vector<8x32xbf16>
    %c86 = arith.constant 86 : index
    %c0_609 = arith.constant 0 : index
    %c0_610 = arith.constant 0 : index
    %870 = vector.load %arg4[%c86, %c0_609, %c0_610] : memref<100x32x32xbf16, #tpu.memory_space<vmem>>, vector<1x32x32xbf16>
    %871 = vector.shape_cast %870 : vector<1x32x32xbf16> to vector<32x32xbf16>
    %cst_611 = arith.constant dense<0.000000e+00> : vector<8x32xf32>
    %872 = tpu.matmul %869, %871, %cst_611 {dimension_numbers = #tpu.dot_dimension_numbers<[1], [0], [0], [1], [0, 0, 1, 1], [], []>} : vector<8x32xbf16>, vector<32x32xbf16>, vector<8x32xf32> -> vector<8x32xf32>
    %c86_612 = arith.constant 86 : index
    %c0_613 = arith.constant 0 : index
    %c0_614 = arith.constant 0 : index
    %873 = vector.load %arg5[%c86_612, %c0_613, %c0_614] : memref<100x1x32xf32, #tpu.memory_space<vmem>>, vector<1x1x32xf32>
    %874 = vector.shape_cast %873 : vector<1x1x32xf32> to vector<1x32xf32>
    %875 = vector.broadcast %874 : vector<1x32xf32> to vector<8x32xf32>
    %876 = arith.addf %872, %875 : vector<8x32xf32>
    %cst_615 = arith.constant 0.000000e+00 : f32
    %877 = vector.broadcast %cst_615 : f32 to vector<8x32xf32>
    %878 = arith.maximumf %876, %877 : vector<8x32xf32>
    %879 = arith.truncf %878 : vector<8x32xf32> to vector<8x32xbf16>
    %c87 = arith.constant 87 : index
    %c0_616 = arith.constant 0 : index
    %c0_617 = arith.constant 0 : index
    %880 = vector.load %arg4[%c87, %c0_616, %c0_617] : memref<100x32x32xbf16, #tpu.memory_space<vmem>>, vector<1x32x32xbf16>
    %881 = vector.shape_cast %880 : vector<1x32x32xbf16> to vector<32x32xbf16>
    %cst_618 = arith.constant dense<0.000000e+00> : vector<8x32xf32>
    %882 = tpu.matmul %879, %881, %cst_618 {dimension_numbers = #tpu.dot_dimension_numbers<[1], [0], [0], [1], [0, 0, 1, 1], [], []>} : vector<8x32xbf16>, vector<32x32xbf16>, vector<8x32xf32> -> vector<8x32xf32>
    %c87_619 = arith.constant 87 : index
    %c0_620 = arith.constant 0 : index
    %c0_621 = arith.constant 0 : index
    %883 = vector.load %arg5[%c87_619, %c0_620, %c0_621] : memref<100x1x32xf32, #tpu.memory_space<vmem>>, vector<1x1x32xf32>
    %884 = vector.shape_cast %883 : vector<1x1x32xf32> to vector<1x32xf32>
    %885 = vector.broadcast %884 : vector<1x32xf32> to vector<8x32xf32>
    %886 = arith.addf %882, %885 : vector<8x32xf32>
    %cst_622 = arith.constant 0.000000e+00 : f32
    %887 = vector.broadcast %cst_622 : f32 to vector<8x32xf32>
    %888 = arith.maximumf %886, %887 : vector<8x32xf32>
    %889 = arith.truncf %888 : vector<8x32xf32> to vector<8x32xbf16>
    %c88 = arith.constant 88 : index
    %c0_623 = arith.constant 0 : index
    %c0_624 = arith.constant 0 : index
    %890 = vector.load %arg4[%c88, %c0_623, %c0_624] : memref<100x32x32xbf16, #tpu.memory_space<vmem>>, vector<1x32x32xbf16>
    %891 = vector.shape_cast %890 : vector<1x32x32xbf16> to vector<32x32xbf16>
    %cst_625 = arith.constant dense<0.000000e+00> : vector<8x32xf32>
    %892 = tpu.matmul %889, %891, %cst_625 {dimension_numbers = #tpu.dot_dimension_numbers<[1], [0], [0], [1], [0, 0, 1, 1], [], []>} : vector<8x32xbf16>, vector<32x32xbf16>, vector<8x32xf32> -> vector<8x32xf32>
    %c88_626 = arith.constant 88 : index
    %c0_627 = arith.constant 0 : index
    %c0_628 = arith.constant 0 : index
    %893 = vector.load %arg5[%c88_626, %c0_627, %c0_628] : memref<100x1x32xf32, #tpu.memory_space<vmem>>, vector<1x1x32xf32>
    %894 = vector.shape_cast %893 : vector<1x1x32xf32> to vector<1x32xf32>
    %895 = vector.broadcast %894 : vector<1x32xf32> to vector<8x32xf32>
    %896 = arith.addf %892, %895 : vector<8x32xf32>
    %cst_629 = arith.constant 0.000000e+00 : f32
    %897 = vector.broadcast %cst_629 : f32 to vector<8x32xf32>
    %898 = arith.maximumf %896, %897 : vector<8x32xf32>
    %899 = arith.truncf %898 : vector<8x32xf32> to vector<8x32xbf16>
    %c89 = arith.constant 89 : index
    %c0_630 = arith.constant 0 : index
    %c0_631 = arith.constant 0 : index
    %900 = vector.load %arg4[%c89, %c0_630, %c0_631] : memref<100x32x32xbf16, #tpu.memory_space<vmem>>, vector<1x32x32xbf16>
    %901 = vector.shape_cast %900 : vector<1x32x32xbf16> to vector<32x32xbf16>
    %cst_632 = arith.constant dense<0.000000e+00> : vector<8x32xf32>
    %902 = tpu.matmul %899, %901, %cst_632 {dimension_numbers = #tpu.dot_dimension_numbers<[1], [0], [0], [1], [0, 0, 1, 1], [], []>} : vector<8x32xbf16>, vector<32x32xbf16>, vector<8x32xf32> -> vector<8x32xf32>
    %c89_633 = arith.constant 89 : index
    %c0_634 = arith.constant 0 : index
    %c0_635 = arith.constant 0 : index
    %903 = vector.load %arg5[%c89_633, %c0_634, %c0_635] : memref<100x1x32xf32, #tpu.memory_space<vmem>>, vector<1x1x32xf32>
    %904 = vector.shape_cast %903 : vector<1x1x32xf32> to vector<1x32xf32>
    %905 = vector.broadcast %904 : vector<1x32xf32> to vector<8x32xf32>
    %906 = arith.addf %902, %905 : vector<8x32xf32>
    %cst_636 = arith.constant 0.000000e+00 : f32
    %907 = vector.broadcast %cst_636 : f32 to vector<8x32xf32>
    %908 = arith.maximumf %906, %907 : vector<8x32xf32>
    %909 = arith.truncf %908 : vector<8x32xf32> to vector<8x32xbf16>
    %c90 = arith.constant 90 : index
    %c0_637 = arith.constant 0 : index
    %c0_638 = arith.constant 0 : index
    %910 = vector.load %arg4[%c90, %c0_637, %c0_638] : memref<100x32x32xbf16, #tpu.memory_space<vmem>>, vector<1x32x32xbf16>
    %911 = vector.shape_cast %910 : vector<1x32x32xbf16> to vector<32x32xbf16>
    %cst_639 = arith.constant dense<0.000000e+00> : vector<8x32xf32>
    %912 = tpu.matmul %909, %911, %cst_639 {dimension_numbers = #tpu.dot_dimension_numbers<[1], [0], [0], [1], [0, 0, 1, 1], [], []>} : vector<8x32xbf16>, vector<32x32xbf16>, vector<8x32xf32> -> vector<8x32xf32>
    %c90_640 = arith.constant 90 : index
    %c0_641 = arith.constant 0 : index
    %c0_642 = arith.constant 0 : index
    %913 = vector.load %arg5[%c90_640, %c0_641, %c0_642] : memref<100x1x32xf32, #tpu.memory_space<vmem>>, vector<1x1x32xf32>
    %914 = vector.shape_cast %913 : vector<1x1x32xf32> to vector<1x32xf32>
    %915 = vector.broadcast %914 : vector<1x32xf32> to vector<8x32xf32>
    %916 = arith.addf %912, %915 : vector<8x32xf32>
    %cst_643 = arith.constant 0.000000e+00 : f32
    %917 = vector.broadcast %cst_643 : f32 to vector<8x32xf32>
    %918 = arith.maximumf %916, %917 : vector<8x32xf32>
    %919 = arith.truncf %918 : vector<8x32xf32> to vector<8x32xbf16>
    %c91 = arith.constant 91 : index
    %c0_644 = arith.constant 0 : index
    %c0_645 = arith.constant 0 : index
    %920 = vector.load %arg4[%c91, %c0_644, %c0_645] : memref<100x32x32xbf16, #tpu.memory_space<vmem>>, vector<1x32x32xbf16>
    %921 = vector.shape_cast %920 : vector<1x32x32xbf16> to vector<32x32xbf16>
    %cst_646 = arith.constant dense<0.000000e+00> : vector<8x32xf32>
    %922 = tpu.matmul %919, %921, %cst_646 {dimension_numbers = #tpu.dot_dimension_numbers<[1], [0], [0], [1], [0, 0, 1, 1], [], []>} : vector<8x32xbf16>, vector<32x32xbf16>, vector<8x32xf32> -> vector<8x32xf32>
    %c91_647 = arith.constant 91 : index
    %c0_648 = arith.constant 0 : index
    %c0_649 = arith.constant 0 : index
    %923 = vector.load %arg5[%c91_647, %c0_648, %c0_649] : memref<100x1x32xf32, #tpu.memory_space<vmem>>, vector<1x1x32xf32>
    %924 = vector.shape_cast %923 : vector<1x1x32xf32> to vector<1x32xf32>
    %925 = vector.broadcast %924 : vector<1x32xf32> to vector<8x32xf32>
    %926 = arith.addf %922, %925 : vector<8x32xf32>
    %cst_650 = arith.constant 0.000000e+00 : f32
    %927 = vector.broadcast %cst_650 : f32 to vector<8x32xf32>
    %928 = arith.maximumf %926, %927 : vector<8x32xf32>
    %929 = arith.truncf %928 : vector<8x32xf32> to vector<8x32xbf16>
    %c92 = arith.constant 92 : index
    %c0_651 = arith.constant 0 : index
    %c0_652 = arith.constant 0 : index
    %930 = vector.load %arg4[%c92, %c0_651, %c0_652] : memref<100x32x32xbf16, #tpu.memory_space<vmem>>, vector<1x32x32xbf16>
    %931 = vector.shape_cast %930 : vector<1x32x32xbf16> to vector<32x32xbf16>
    %cst_653 = arith.constant dense<0.000000e+00> : vector<8x32xf32>
    %932 = tpu.matmul %929, %931, %cst_653 {dimension_numbers = #tpu.dot_dimension_numbers<[1], [0], [0], [1], [0, 0, 1, 1], [], []>} : vector<8x32xbf16>, vector<32x32xbf16>, vector<8x32xf32> -> vector<8x32xf32>
    %c92_654 = arith.constant 92 : index
    %c0_655 = arith.constant 0 : index
    %c0_656 = arith.constant 0 : index
    %933 = vector.load %arg5[%c92_654, %c0_655, %c0_656] : memref<100x1x32xf32, #tpu.memory_space<vmem>>, vector<1x1x32xf32>
    %934 = vector.shape_cast %933 : vector<1x1x32xf32> to vector<1x32xf32>
    %935 = vector.broadcast %934 : vector<1x32xf32> to vector<8x32xf32>
    %936 = arith.addf %932, %935 : vector<8x32xf32>
    %cst_657 = arith.constant 0.000000e+00 : f32
    %937 = vector.broadcast %cst_657 : f32 to vector<8x32xf32>
    %938 = arith.maximumf %936, %937 : vector<8x32xf32>
    %939 = arith.truncf %938 : vector<8x32xf32> to vector<8x32xbf16>
    %c93 = arith.constant 93 : index
    %c0_658 = arith.constant 0 : index
    %c0_659 = arith.constant 0 : index
    %940 = vector.load %arg4[%c93, %c0_658, %c0_659] : memref<100x32x32xbf16, #tpu.memory_space<vmem>>, vector<1x32x32xbf16>
    %941 = vector.shape_cast %940 : vector<1x32x32xbf16> to vector<32x32xbf16>
    %cst_660 = arith.constant dense<0.000000e+00> : vector<8x32xf32>
    %942 = tpu.matmul %939, %941, %cst_660 {dimension_numbers = #tpu.dot_dimension_numbers<[1], [0], [0], [1], [0, 0, 1, 1], [], []>} : vector<8x32xbf16>, vector<32x32xbf16>, vector<8x32xf32> -> vector<8x32xf32>
    %c93_661 = arith.constant 93 : index
    %c0_662 = arith.constant 0 : index
    %c0_663 = arith.constant 0 : index
    %943 = vector.load %arg5[%c93_661, %c0_662, %c0_663] : memref<100x1x32xf32, #tpu.memory_space<vmem>>, vector<1x1x32xf32>
    %944 = vector.shape_cast %943 : vector<1x1x32xf32> to vector<1x32xf32>
    %945 = vector.broadcast %944 : vector<1x32xf32> to vector<8x32xf32>
    %946 = arith.addf %942, %945 : vector<8x32xf32>
    %cst_664 = arith.constant 0.000000e+00 : f32
    %947 = vector.broadcast %cst_664 : f32 to vector<8x32xf32>
    %948 = arith.maximumf %946, %947 : vector<8x32xf32>
    %949 = arith.truncf %948 : vector<8x32xf32> to vector<8x32xbf16>
    %c94 = arith.constant 94 : index
    %c0_665 = arith.constant 0 : index
    %c0_666 = arith.constant 0 : index
    %950 = vector.load %arg4[%c94, %c0_665, %c0_666] : memref<100x32x32xbf16, #tpu.memory_space<vmem>>, vector<1x32x32xbf16>
    %951 = vector.shape_cast %950 : vector<1x32x32xbf16> to vector<32x32xbf16>
    %cst_667 = arith.constant dense<0.000000e+00> : vector<8x32xf32>
    %952 = tpu.matmul %949, %951, %cst_667 {dimension_numbers = #tpu.dot_dimension_numbers<[1], [0], [0], [1], [0, 0, 1, 1], [], []>} : vector<8x32xbf16>, vector<32x32xbf16>, vector<8x32xf32> -> vector<8x32xf32>
    %c94_668 = arith.constant 94 : index
    %c0_669 = arith.constant 0 : index
    %c0_670 = arith.constant 0 : index
    %953 = vector.load %arg5[%c94_668, %c0_669, %c0_670] : memref<100x1x32xf32, #tpu.memory_space<vmem>>, vector<1x1x32xf32>
    %954 = vector.shape_cast %953 : vector<1x1x32xf32> to vector<1x32xf32>
    %955 = vector.broadcast %954 : vector<1x32xf32> to vector<8x32xf32>
    %956 = arith.addf %952, %955 : vector<8x32xf32>
    %cst_671 = arith.constant 0.000000e+00 : f32
    %957 = vector.broadcast %cst_671 : f32 to vector<8x32xf32>
    %958 = arith.maximumf %956, %957 : vector<8x32xf32>
    %959 = arith.truncf %958 : vector<8x32xf32> to vector<8x32xbf16>
    %c95 = arith.constant 95 : index
    %c0_672 = arith.constant 0 : index
    %c0_673 = arith.constant 0 : index
    %960 = vector.load %arg4[%c95, %c0_672, %c0_673] : memref<100x32x32xbf16, #tpu.memory_space<vmem>>, vector<1x32x32xbf16>
    %961 = vector.shape_cast %960 : vector<1x32x32xbf16> to vector<32x32xbf16>
    %cst_674 = arith.constant dense<0.000000e+00> : vector<8x32xf32>
    %962 = tpu.matmul %959, %961, %cst_674 {dimension_numbers = #tpu.dot_dimension_numbers<[1], [0], [0], [1], [0, 0, 1, 1], [], []>} : vector<8x32xbf16>, vector<32x32xbf16>, vector<8x32xf32> -> vector<8x32xf32>
    %c95_675 = arith.constant 95 : index
    %c0_676 = arith.constant 0 : index
    %c0_677 = arith.constant 0 : index
    %963 = vector.load %arg5[%c95_675, %c0_676, %c0_677] : memref<100x1x32xf32, #tpu.memory_space<vmem>>, vector<1x1x32xf32>
    %964 = vector.shape_cast %963 : vector<1x1x32xf32> to vector<1x32xf32>
    %965 = vector.broadcast %964 : vector<1x32xf32> to vector<8x32xf32>
    %966 = arith.addf %962, %965 : vector<8x32xf32>
    %cst_678 = arith.constant 0.000000e+00 : f32
    %967 = vector.broadcast %cst_678 : f32 to vector<8x32xf32>
    %968 = arith.maximumf %966, %967 : vector<8x32xf32>
    %969 = arith.truncf %968 : vector<8x32xf32> to vector<8x32xbf16>
    %c96 = arith.constant 96 : index
    %c0_679 = arith.constant 0 : index
    %c0_680 = arith.constant 0 : index
    %970 = vector.load %arg4[%c96, %c0_679, %c0_680] : memref<100x32x32xbf16, #tpu.memory_space<vmem>>, vector<1x32x32xbf16>
    %971 = vector.shape_cast %970 : vector<1x32x32xbf16> to vector<32x32xbf16>
    %cst_681 = arith.constant dense<0.000000e+00> : vector<8x32xf32>
    %972 = tpu.matmul %969, %971, %cst_681 {dimension_numbers = #tpu.dot_dimension_numbers<[1], [0], [0], [1], [0, 0, 1, 1], [], []>} : vector<8x32xbf16>, vector<32x32xbf16>, vector<8x32xf32> -> vector<8x32xf32>
    %c96_682 = arith.constant 96 : index
    %c0_683 = arith.constant 0 : index
    %c0_684 = arith.constant 0 : index
    %973 = vector.load %arg5[%c96_682, %c0_683, %c0_684] : memref<100x1x32xf32, #tpu.memory_space<vmem>>, vector<1x1x32xf32>
    %974 = vector.shape_cast %973 : vector<1x1x32xf32> to vector<1x32xf32>
    %975 = vector.broadcast %974 : vector<1x32xf32> to vector<8x32xf32>
    %976 = arith.addf %972, %975 : vector<8x32xf32>
    %cst_685 = arith.constant 0.000000e+00 : f32
    %977 = vector.broadcast %cst_685 : f32 to vector<8x32xf32>
    %978 = arith.maximumf %976, %977 : vector<8x32xf32>
    %979 = arith.truncf %978 : vector<8x32xf32> to vector<8x32xbf16>
    %c97 = arith.constant 97 : index
    %c0_686 = arith.constant 0 : index
    %c0_687 = arith.constant 0 : index
    %980 = vector.load %arg4[%c97, %c0_686, %c0_687] : memref<100x32x32xbf16, #tpu.memory_space<vmem>>, vector<1x32x32xbf16>
    %981 = vector.shape_cast %980 : vector<1x32x32xbf16> to vector<32x32xbf16>
    %cst_688 = arith.constant dense<0.000000e+00> : vector<8x32xf32>
    %982 = tpu.matmul %979, %981, %cst_688 {dimension_numbers = #tpu.dot_dimension_numbers<[1], [0], [0], [1], [0, 0, 1, 1], [], []>} : vector<8x32xbf16>, vector<32x32xbf16>, vector<8x32xf32> -> vector<8x32xf32>
    %c97_689 = arith.constant 97 : index
    %c0_690 = arith.constant 0 : index
    %c0_691 = arith.constant 0 : index
    %983 = vector.load %arg5[%c97_689, %c0_690, %c0_691] : memref<100x1x32xf32, #tpu.memory_space<vmem>>, vector<1x1x32xf32>
    %984 = vector.shape_cast %983 : vector<1x1x32xf32> to vector<1x32xf32>
    %985 = vector.broadcast %984 : vector<1x32xf32> to vector<8x32xf32>
    %986 = arith.addf %982, %985 : vector<8x32xf32>
    %cst_692 = arith.constant 0.000000e+00 : f32
    %987 = vector.broadcast %cst_692 : f32 to vector<8x32xf32>
    %988 = arith.maximumf %986, %987 : vector<8x32xf32>
    %989 = arith.truncf %988 : vector<8x32xf32> to vector<8x32xbf16>
    %c98 = arith.constant 98 : index
    %c0_693 = arith.constant 0 : index
    %c0_694 = arith.constant 0 : index
    %990 = vector.load %arg4[%c98, %c0_693, %c0_694] : memref<100x32x32xbf16, #tpu.memory_space<vmem>>, vector<1x32x32xbf16>
    %991 = vector.shape_cast %990 : vector<1x32x32xbf16> to vector<32x32xbf16>
    %cst_695 = arith.constant dense<0.000000e+00> : vector<8x32xf32>
    %992 = tpu.matmul %989, %991, %cst_695 {dimension_numbers = #tpu.dot_dimension_numbers<[1], [0], [0], [1], [0, 0, 1, 1], [], []>} : vector<8x32xbf16>, vector<32x32xbf16>, vector<8x32xf32> -> vector<8x32xf32>
    %c98_696 = arith.constant 98 : index
    %c0_697 = arith.constant 0 : index
    %c0_698 = arith.constant 0 : index
    %993 = vector.load %arg5[%c98_696, %c0_697, %c0_698] : memref<100x1x32xf32, #tpu.memory_space<vmem>>, vector<1x1x32xf32>
    %994 = vector.shape_cast %993 : vector<1x1x32xf32> to vector<1x32xf32>
    %995 = vector.broadcast %994 : vector<1x32xf32> to vector<8x32xf32>
    %996 = arith.addf %992, %995 : vector<8x32xf32>
    %cst_699 = arith.constant 0.000000e+00 : f32
    %997 = vector.broadcast %cst_699 : f32 to vector<8x32xf32>
    %998 = arith.maximumf %996, %997 : vector<8x32xf32>
    %999 = arith.truncf %998 : vector<8x32xf32> to vector<8x32xbf16>
    %c99 = arith.constant 99 : index
    %c0_700 = arith.constant 0 : index
    %c0_701 = arith.constant 0 : index
    %1000 = vector.load %arg4[%c99, %c0_700, %c0_701] : memref<100x32x32xbf16, #tpu.memory_space<vmem>>, vector<1x32x32xbf16>
    %1001 = vector.shape_cast %1000 : vector<1x32x32xbf16> to vector<32x32xbf16>
    %cst_702 = arith.constant dense<0.000000e+00> : vector<8x32xf32>
    %1002 = tpu.matmul %999, %1001, %cst_702 {dimension_numbers = #tpu.dot_dimension_numbers<[1], [0], [0], [1], [0, 0, 1, 1], [], []>} : vector<8x32xbf16>, vector<32x32xbf16>, vector<8x32xf32> -> vector<8x32xf32>
    %c99_703 = arith.constant 99 : index
    %c0_704 = arith.constant 0 : index
    %c0_705 = arith.constant 0 : index
    %1003 = vector.load %arg5[%c99_703, %c0_704, %c0_705] : memref<100x1x32xf32, #tpu.memory_space<vmem>>, vector<1x1x32xf32>
    %1004 = vector.shape_cast %1003 : vector<1x1x32xf32> to vector<1x32xf32>
    %1005 = vector.broadcast %1004 : vector<1x32xf32> to vector<8x32xf32>
    %1006 = arith.addf %1002, %1005 : vector<8x32xf32>
    %cst_706 = arith.constant 0.000000e+00 : f32
    %1007 = vector.broadcast %cst_706 : f32 to vector<8x32xf32>
    %1008 = arith.maximumf %1006, %1007 : vector<8x32xf32>
    %1009 = arith.truncf %1008 : vector<8x32xf32> to vector<8x32xbf16>
    %c0_707 = arith.constant 0 : index
    %c0_708 = arith.constant 0 : index
    %1010 = vector.load %arg6[%c0_707, %c0_708] : memref<32x16xbf16, #tpu.memory_space<vmem>>, vector<32x16xbf16>
    %cst_709 = arith.constant dense<0.000000e+00> : vector<8x16xf32>
    %1011 = tpu.matmul %1009, %1010, %cst_709 {dimension_numbers = #tpu.dot_dimension_numbers<[1], [0], [0], [1], [0, 0, 1, 1], [], []>} : vector<8x32xbf16>, vector<32x16xbf16>, vector<8x16xf32> -> vector<8x16xf32>
    %c0_710 = arith.constant 0 : index
    %c0_711 = arith.constant 0 : index
    %1012 = vector.load %arg7[%c0_710, %c0_711] : memref<1x16xf32, #tpu.memory_space<vmem>>, vector<1x16xf32>
    %1013 = vector.broadcast %1012 : vector<1x16xf32> to vector<8x16xf32>
    %1014 = arith.addf %1011, %1013 : vector<8x16xf32>
    %c0_712 = arith.constant 0 : index
    %c0_713 = arith.constant 0 : index
    %1015 = vector.load %arg8[%c0_712, %c0_713] : memref<8x16xf32, #tpu.memory_space<vmem>>, vector<8x16xf32>
    tpu.vector_store %arg8[%c0_712, %c0_713], %1014 {strides = array<i32>} : memref<8x16xf32, #tpu.memory_space<vmem>>, vector<8x16xf32>,
    return
  }
  func.func @transform_0(%arg0: i32) -> (i32, i32) {
    %c0_i32 = arith.constant 0 : i32
    %c0_i32_0 = arith.constant 0 : i32
    return %arg0, %c0_i32 : i32, i32
  }
  func.func @transform_1(%arg0: i32) -> (i32, i32) {
    %c0_i32 = arith.constant 0 : i32
    %c0_i32_0 = arith.constant 0 : i32
    %c0_i32_1 = arith.constant 0 : i32
    return %c0_i32, %c0_i32_0 : i32, i32
  }
  func.func @transform_2(%arg0: i32) -> (i32, i32) {
    %c0_i32 = arith.constant 0 : i32
    %c0_i32_0 = arith.constant 0 : i32
    %c0_i32_1 = arith.constant 0 : i32
    return %c0_i32, %c0_i32_0 : i32, i32
  }
  func.func @transform_3(%arg0: i32) -> (i32, i32, i32) {
    %c0_i32 = arith.constant 0 : i32
    %c0_i32_0 = arith.constant 0 : i32
    %c0_i32_1 = arith.constant 0 : i32
    %c0_i32_2 = arith.constant 0 : i32
    return %c0_i32, %c0_i32_0, %c0_i32_1 : i32, i32, i32
  }
  func.func @transform_4(%arg0: i32) -> (i32, i32, i32) {
    %c0_i32 = arith.constant 0 : i32
    %c0_i32_0 = arith.constant 0 : i32
    %c0_i32_1 = arith.constant 0 : i32
    %c0_i32_2 = arith.constant 0 : i32
    return %c0_i32, %c0_i32_0, %c0_i32_1 : i32, i32, i32
  }
  func.func @transform_5(%arg0: i32) -> (i32, i32) {
    %c0_i32 = arith.constant 0 : i32
    %c0_i32_0 = arith.constant 0 : i32
    %c0_i32_1 = arith.constant 0 : i32
    return %c0_i32, %c0_i32_0 : i32, i32
  }
  func.func @transform_6(%arg0: i32) -> (i32, i32) {
    %c0_i32 = arith.constant 0 : i32
    %c0_i32_0 = arith.constant 0 : i32
    %c0_i32_1 = arith.constant 0 : i32
    return %c0_i32, %c0_i32_0 : i32, i32
  }
  func.func @transform_7(%arg0: i32) -> (i32, i32) {
    %c0_i32 = arith.constant 0 : i32
    %c0_i32_0 = arith.constant 0 : i32
    return %arg0, %c0_i32 : i32, i32
  }
}

</mosaic_0001>

<bundles_post_ra>
// kernel: tpu_custom_call.1
= control target key start
LH: loop header
LB: loop body
LE: loop exit
PB: predicated region body
PF: predicated region fallthrough
CT: control target
= control target key end

     0   :  { %vm42_vm0 = vcmask 1043456   ;;  %v9418_v2 = vmov 0.0   ;;  %vm9419_vm1 = vmmov 0   ;;  %vm38_vm2 = vcmask 64512   ;;  %s10899_s0 = inlined_call_operand.vmem [shape: f32[8,8], index: 0, kind: input, shape index: {}]   ;;  %s10900_s1 = inlined_call_operand.vmem [shape: bf16[8,32], index: 1, kind: input, shape index: {}]   ;;  %s10901_s2 = inlined_call_operand.vmem [shape: f32[1,32], index: 2, kind: input, shape index: {}]   ;;  %s10902_s3 = inlined_call_operand.vmem [shape: bf16[100,32,32], index: 3, kind: input, shape index: {}]   ;;  %s10903_s4 = inlined_call_operand.vmem [shape: f32[100,1,32], index: 4, kind: input, shape index: {}]   ;;  %s10904_s5 = inlined_call_operand.vmem [shape: bf16[32,16], index: 5, kind: input, shape index: {}]   ;;  %s10905_s6 = inlined_call_operand.vmem [shape: f32[1,16], index: 6, kind: input, shape index: {}]   ;;  %s10906_s7 = inlined_call_operand.hbm [shape: f32[8,16], index: 7, kind: output, shape index: {}]  }
   0x1   :  { %v30_v0 = vld [vmem:[%s10900_s1] sm:$0xf]  ;;  %8375 = vmatprep.subr.bf16.mxu0 %v9418_v2  ;;  %8377 = vmatprep.mubr.msk.bf16.mxu0 %vm9419_vm1, %v9418_v2  ;;  %v9193_v6 = vld [vmem:[%s10902_s3 + $0x8] sm:$0xff]   ;;  %v9194_v7 = vld [vmem:[%s10902_s3 + $0x10] sm:$0xff]  }
   0x2   :  { %v28_v1 = vld [vmem:[%s10899_s0] sm:$0xff]  ;;  %v44_v3 = vsel %vm42_vm0, %v30_v0, 0  ;;  %8381 = vmatprep.subr.bf16.mxu1 %v9418_v2  ;;  %8385 = vmatprep.mubr.msk.bf16.mxu1 %vm9419_vm1, %v9418_v2 }
   0x3   :  { %v29_v4 = vpack.c.bf16 %v28_v1, %v28_v1  ;;  %8376 = vmatpush3.bf16.msra.mxu0 %v44_v3  ;;  %v9192_v5 = vld [vmem:[%s10902_s3] sm:$0xff]  }
   0x4   :  { %8389 = vmatprep.subr.bf16.mxu0 %v9418_v2  ;;  %8382 = vmatpush3.bf16.msra.mxu1 %v9192_v5 }
   0x5   :  { %8383 = vmatprep.subr.bf16.mxu1 %v9418_v2 }
   0x6   :  { %8378 = vmatmul.mubr.msk.bf16.vlgmr.msra.gmra.mrb[0].mxu0 %vm38_vm2, %v29_v4 }
   0x7   :  { %8393 = vmatprep.mubr.msk.bf16.mxu0 %vm9419_vm1, %v9418_v2  ;;  %8390 = vmatpush3.bf16.msra.mxu0 %v9194_v7 }
   0x8   :  { %8384 = vmatpush3.bf16.msra.mxu1 %v9193_v6  ;;  %8391 = vmatprep.subr.bf16.mxu0 %v9418_v2 }
   0x9   :  { %8397 = vmatprep.subr.bf16.mxu1 %v9418_v2 }
   0xa   :  { %12 = vsyncpa [#allocation3], 0  ;;  %v7169_v8 = vld [vmem:[%s10901_s2] ss:$0 sm:$0xff]  ;;  %vm111_vm3 = vcmask 261120   ;;  %v9195_v16 = vld [vmem:[%s10902_s3 + $0x18] sm:$0xff]  }
   0xb   :  { %8392 = vmatpush3.bf16.msra.mxu0 %v9195_v16  ;;  %v9196_v17 = vld [vmem:[%s10902_s3 + $0x20] sm:$0xff]   ;;  %v9197_v26 = vld [vmem:[%s10902_s3 + $0x28] sm:$0xff]   ;;  %v9198_v27 = vld [vmem:[%s10902_s3 + $0x30] sm:$0xff]   ;;  %s9420_s12 = smov [#allocation2]   ;;  %vm7153_vm4 = vcmask 130048  }
   0xc   :  { %8405 = vmatprep.subr.bf16.mxu0 %v9418_v2  ;;  %v7171_v18 = vld [vmem:[%s10903_s4] ss:$0 sm:$0xff]  ;;  %v7180_v28 = vld [vmem:[%s10903_s4 + $0x1] ss:$0 sm:$0xff]  ;;  %v9199_v36 = vld [vmem:[%s10902_s3 + $0x38] sm:$0xff]  }
   0xd   :  { %v9200_v37 = vld [vmem:[%s10902_s3 + $0x40] sm:$0xff]   ;;  %v9201_v46 = vld [vmem:[%s10902_s3 + $0x48] sm:$0xff]   ;;  %v9202_v47 = vld [vmem:[%s10902_s3 + $0x50] sm:$0xff]  }
   0xe   :  { %v7189_v38 = vld [vmem:[%s10903_s4 + $0x2] ss:$0 sm:$0xff]  ;;  %v7198_v48 = vld [vmem:[%s10903_s4 + $0x3] ss:$0 sm:$0xff]  ;;  %v9203_v56 = vld [vmem:[%s10902_s3 + $0x58] sm:$0xff]  }
   0xf   :  { %v9204_v57 = vld [vmem:[%s10902_s3 + $0x60] sm:$0xff]   ;;  %v9205_v3 = vld [vmem:[%s10902_s3 + $0x68] sm:$0xff]   ;;  %v9206_v4 = vld [vmem:[%s10902_s3 + $0x70] sm:$0xff]  }
  0x10   :  { %v7207_v58 = vld [vmem:[%s10903_s4 + $0x4] ss:$0 sm:$0xff]  ;;  %v7216_v5 = vld [vmem:[%s10903_s4 + $0x5] ss:$0 sm:$0xff] }
  0xd9   :  { %v80_v9 = vpop.f32.mrb[0].mxu0 }
  0xda   :  { %v81_v10 = vadd.f32 %v7169_v8, %v80_v9  ;;  %v8379_v11 = vpop.f32.mrb[1].mxu0 }
  0xdb   :  { %v83_v12 = vpop.f32.mrb[2].mxu0 }
  0xdc   :  { %v86_v13 = vmax.f32 %v81_v10, 0.0  ;;  %v8380_v14 = vpop.f32.mrb[3].mxu0 }
  0xdd   :  { %v9208_v14 = vld [vmem:[%s10902_s3 + $0x80] sm:$0xff]  }
  0xde   :  { %v87_v15 = vpack.c.bf16 %v86_v13, %v86_v13  ;;  %v9207_v13 = vld [vmem:[%s10902_s3 + $0x78] sm:$0xff]  }
  0xe0   :  { %8386 = vmatmul.mubr.msk.bf16.vlgmr.msra.gmra.mrb[0].mxu1 %vm111_vm3, %v87_v15  ;;  %v7225_v15 = vld [vmem:[%s10903_s4 + $0x6] ss:$0 sm:$0xff] }
  0xe1   :  { %8401 = vmatprep.mubr.msk.bf16.mxu1 %vm9419_vm1, %v9418_v2  ;;  %8398 = vmatpush3.bf16.msra.mxu1 %v9196_v17 }
  0xe2   :  { %8399 = vmatprep.subr.bf16.mxu1 %v9418_v2 }
  0xe5   :  { %8400 = vmatpush3.bf16.msra.mxu1 %v9197_v26 }
  0xe6   :  { %8413 = vmatprep.subr.bf16.mxu1 %v9418_v2 }
 0x1b3   :  { %v149_v19 = vpop.f32.mrb[0].mxu1 }
 0x1b4   :  { %v150_v20 = vadd.f32 %v7171_v18, %v149_v19  ;;  %v8387_v21 = vpop.f32.mrb[1].mxu1 }
 0x1b5   :  { %v152_v22 = vpop.f32.mrb[2].mxu1 }
 0x1b6   :  { %v155_v23 = vmax.f32 %v150_v20, 0.0  ;;  %v8388_v24 = vpop.f32.mrb[3].mxu1 }
 0x1b7   :  { %v9210_v24 = vld [vmem:[%s10902_s3 + $0x90] sm:$0xff]  }
 0x1b8   :  { %v156_v25 = vpack.c.bf16 %v155_v23, %v155_v23  ;;  %v9209_v23 = vld [vmem:[%s10902_s3 + $0x88] sm:$0xff]  }
 0x1ba   :  { %8394 = vmatmul.mubr.msk.bf16.vlgmr.msra.gmra.mrb[4].mxu0 %vm111_vm3, %v156_v25  ;;  %v7234_v25 = vld [vmem:[%s10903_s4 + $0x7] ss:$0 sm:$0xff] }
 0x1bb   :  { %8409 = vmatprep.mubr.msk.bf16.mxu0 %vm9419_vm1, %v9418_v2  ;;  %8406 = vmatpush3.bf16.msra.mxu0 %v9198_v27 }
 0x1bc   :  { %8407 = vmatprep.subr.bf16.mxu0 %v9418_v2 }
 0x1bf   :  { %8408 = vmatpush3.bf16.msra.mxu0 %v9199_v36 }
 0x1c0   :  { %8421 = vmatprep.subr.bf16.mxu0 %v9418_v2 }
 0x28d   :  { %v219_v29 = vpop.f32.mrb[4].mxu0 }
 0x28e   :  { %v220_v30 = vadd.f32 %v7180_v28, %v219_v29  ;;  %v8395_v31 = vpop.f32.mrb[5].mxu0 }
 0x28f   :  { %v222_v32 = vpop.f32.mrb[6].mxu0 }
 0x290   :  { %v225_v33 = vmax.f32 %v220_v30, 0.0  ;;  %v8396_v34 = vpop.f32.mrb[7].mxu0 }
 0x291   :  { %v9212_v34 = vld [vmem:[%s10902_s3 + $0xa0] sm:$0xff]  }
 0x292   :  { %v226_v35 = vpack.c.bf16 %v225_v33, %v225_v33  ;;  %v9211_v33 = vld [vmem:[%s10902_s3 + $0x98] sm:$0xff]  }
 0x294   :  { %8402 = vmatmul.mubr.msk.bf16.vlgmr.msra.gmra.mrb[4].mxu1 %vm111_vm3, %v226_v35  ;;  %v7243_v35 = vld [vmem:[%s10903_s4 + $0x8] ss:$0 sm:$0xff] }
 0x295   :  { %8417 = vmatprep.mubr.msk.bf16.mxu1 %vm9419_vm1, %v9418_v2  ;;  %8414 = vmatpush3.bf16.msra.mxu1 %v9200_v37 }
 0x296   :  { %8415 = vmatprep.subr.bf16.mxu1 %v9418_v2 }
 0x299   :  { %8416 = vmatpush3.bf16.msra.mxu1 %v9201_v46 }
 0x29a   :  { %8429 = vmatprep.subr.bf16.mxu1 %v9418_v2 }
 0x367   :  { %v289_v39 = vpop.f32.mrb[4].mxu1 }
 0x368   :  { %v290_v40 = vadd.f32 %v7189_v38, %v289_v39  ;;  %v8403_v41 = vpop.f32.mrb[5].mxu1 }
 0x369   :  { %v292_v42 = vpop.f32.mrb[6].mxu1 }
 0x36a   :  { %v295_v43 = vmax.f32 %v290_v40, 0.0  ;;  %v8404_v44 = vpop.f32.mrb[7].mxu1 }
 0x36b   :  { %v9214_v44 = vld [vmem:[%s10902_s3 + $0xb0] sm:$0xff]  }
 0x36c   :  { %v296_v45 = vpack.c.bf16 %v295_v43, %v295_v43  ;;  %v9213_v43 = vld [vmem:[%s10902_s3 + $0xa8] sm:$0xff]  }
 0x36e   :  { %8410 = vmatmul.mubr.msk.bf16.vlgmr.msra.gmra.mrb[8].mxu0 %vm111_vm3, %v296_v45  ;;  %v7252_v45 = vld [vmem:[%s10903_s4 + $0x9] ss:$0 sm:$0xff] }
 0x36f   :  { %8425 = vmatprep.mubr.msk.bf16.mxu0 %vm9419_vm1, %v9418_v2  ;;  %8422 = vmatpush3.bf16.msra.mxu0 %v9202_v47 }
 0x370   :  { %8423 = vmatprep.subr.bf16.mxu0 %v9418_v2 }
 0x373   :  { %8424 = vmatpush3.bf16.msra.mxu0 %v9203_v56 }
 0x374   :  { %8437 = vmatprep.subr.bf16.mxu0 %v9418_v2 }
 0x441   :  { %v359_v49 = vpop.f32.mrb[8].mxu0 }
 0x442   :  { %v360_v50 = vadd.f32 %v7198_v48, %v359_v49  ;;  %v8411_v51 = vpop.f32.mrb[9].mxu0 }
 0x443   :  { %v362_v52 = vpop.f32.mrb[10].mxu0 }
 0x444   :  { %v365_v53 = vmax.f32 %v360_v50, 0.0  ;;  %v8412_v54 = vpop.f32.mrb[11].mxu0 }
 0x445   :  { %v9216_v54 = vld [vmem:[%s10902_s3 + $0xc0] sm:$0xff]  }
 0x446   :  { %v366_v55 = vpack.c.bf16 %v365_v53, %v365_v53  ;;  %v9215_v53 = vld [vmem:[%s10902_s3 + $0xb8] sm:$0xff]  }
 0x448   :  { %8418 = vmatmul.mubr.msk.bf16.vlgmr.msra.gmra.mrb[8].mxu1 %vm111_vm3, %v366_v55  ;;  %v7261_v55 = vld [vmem:[%s10903_s4 + $0xa] ss:$0 sm:$0xff] }
 0x449   :  { %8433 = vmatprep.mubr.msk.bf16.mxu1 %vm9419_vm1, %v9418_v2  ;;  %8430 = vmatpush3.bf16.msra.mxu1 %v9204_v57 }
 0x44a   :  { %8431 = vmatprep.subr.bf16.mxu1 %v9418_v2 }
 0x44d   :  { %8432 = vmatpush3.bf16.msra.mxu1 %v9205_v3 }
 0x44e   :  { %8445 = vmatprep.subr.bf16.mxu1 %v9418_v2 }
 0x51b   :  { %v429_v59 = vpop.f32.mrb[8].mxu1 }
 0x51c   :  { %v430_v60 = vadd.f32 %v7207_v58, %v429_v59  ;;  %v8419_v61 = vpop.f32.mrb[9].mxu1 }
 0x51d   :  { %v432_v62 = vpop.f32.mrb[10].mxu1 }
 0x51e   :  { %v435_v63 = vmax.f32 %v430_v60, 0.0  ;;  %v8420_v0 = vpop.f32.mrb[11].mxu1 }
 0x51f   :  { %v9218_v0 = vld [vmem:[%s10902_s3 + $0xd0] sm:$0xff]  }
 0x520   :  { %v436_v1 = vpack.c.bf16 %v435_v63, %v435_v63  ;;  %v9217_v63 = vld [vmem:[%s10902_s3 + $0xc8] sm:$0xff]  }
 0x522   :  { %8426 = vmatmul.mubr.msk.bf16.vlgmr.msra.gmra.mrb[12].mxu0 %vm111_vm3, %v436_v1  ;;  %v7270_v1 = vld [vmem:[%s10903_s4 + $0xb] ss:$0 sm:$0xff] }
 0x523   :  { %8441 = vmatprep.mubr.msk.bf16.mxu0 %vm9419_vm1, %v9418_v2  ;;  %8438 = vmatpush3.bf16.msra.mxu0 %v9206_v4 }
 0x524   :  { %8439 = vmatprep.subr.bf16.mxu0 %v9418_v2 }
 0x527   :  { %8440 = vmatpush3.bf16.msra.mxu0 %v9207_v13 }
 0x528   :  { %8453 = vmatprep.subr.bf16.mxu0 %v9418_v2 }
 0x5f5   :  { %v499_v6 = vpop.f32.mrb[12].mxu0 }
 0x5f6   :  { %v500_v7 = vadd.f32 %v7216_v5, %v499_v6  ;;  %v8427_v8 = vpop.f32.mrb[13].mxu0 }
 0x5f7   :  { %v502_v9 = vpop.f32.mrb[14].mxu0 }
 0x5f8   :  { %v505_v10 = vmax.f32 %v500_v7, 0.0  ;;  %v8428_v11 = vpop.f32.mrb[15].mxu0 }
 0x5f9   :  { %v9220_v11 = vld [vmem:[%s10902_s3 + $0xe0] sm:$0xff]  }
 0x5fa   :  { %v506_v12 = vpack.c.bf16 %v505_v10, %v505_v10  ;;  %v9219_v10 = vld [vmem:[%s10902_s3 + $0xd8] sm:$0xff]  }
 0x5fc   :  { %8434 = vmatmul.mubr.msk.bf16.vlgmr.msra.gmra.mrb[12].mxu1 %vm111_vm3, %v506_v12  ;;  %v7279_v12 = vld [vmem:[%s10903_s4 + $0xc] ss:$0 sm:$0xff] }
 0x5fd   :  { %8449 = vmatprep.mubr.msk.bf16.mxu1 %vm9419_vm1, %v9418_v2  ;;  %8446 = vmatpush3.bf16.msra.mxu1 %v9208_v14 }
 0x5fe   :  { %8447 = vmatprep.subr.bf16.mxu1 %v9418_v2 }
 0x601   :  { %8448 = vmatpush3.bf16.msra.mxu1 %v9209_v23 }
 0x602   :  { %8461 = vmatprep.subr.bf16.mxu1 %v9418_v2 }
 0x6cf   :  { %v569_v16 = vpop.f32.mrb[12].mxu1 }
 0x6d0   :  { %v570_v17 = vadd.f32 %v7225_v15, %v569_v16  ;;  %v8435_v18 = vpop.f32.mrb[13].mxu1 }
 0x6d1   :  { %v572_v19 = vpop.f32.mrb[14].mxu1 }
 0x6d2   :  { %v575_v20 = vmax.f32 %v570_v17, 0.0  ;;  %v8436_v21 = vpop.f32.mrb[15].mxu1 }
 0x6d3   :  { %v9222_v21 = vld [vmem:[%s10902_s3 + $0xf0] sm:$0xff]  }
 0x6d4   :  { %v576_v22 = vpack.c.bf16 %v575_v20, %v575_v20  ;;  %v9221_v20 = vld [vmem:[%s10902_s3 + $0xe8] sm:$0xff]  }
 0x6d6   :  { %8442 = vmatmul.mubr.msk.bf16.vlgmr.msra.gmra.mrb[16].mxu0 %vm111_vm3, %v576_v22  ;;  %v7288_v22 = vld [vmem:[%s10903_s4 + $0xd] ss:$0 sm:$0xff] }
 0x6d7   :  { %8457 = vmatprep.mubr.msk.bf16.mxu0 %vm9419_vm1, %v9418_v2  ;;  %8454 = vmatpush3.bf16.msra.mxu0 %v9210_v24 }
 0x6d8   :  { %8455 = vmatprep.subr.bf16.mxu0 %v9418_v2 }
 0x6db   :  { %8456 = vmatpush3.bf16.msra.mxu0 %v9211_v33 }
 0x6dc   :  { %8469 = vmatprep.subr.bf16.mxu0 %v9418_v2 }
 0x7a9   :  { %v639_v26 = vpop.f32.mrb[16].mxu0 }
 0x7aa   :  { %v640_v27 = vadd.f32 %v7234_v25, %v639_v26  ;;  %v8443_v28 = vpop.f32.mrb[17].mxu0 }
 0x7ab   :  { %v642_v29 = vpop.f32.mrb[18].mxu0 }
 0x7ac   :  { %v645_v30 = vmax.f32 %v640_v27, 0.0  ;;  %v8444_v31 = vpop.f32.mrb[19].mxu0 }
 0x7ad   :  { %v9224_v31 = vld [vmem:[%s10902_s3 + $0x100] sm:$0xff]  }
 0x7ae   :  { %v646_v32 = vpack.c.bf16 %v645_v30, %v645_v30  ;;  %v9223_v30 = vld [vmem:[%s10902_s3 + $0xf8] sm:$0xff]  }
 0x7b0   :  { %8450 = vmatmul.mubr.msk.bf16.vlgmr.msra.gmra.mrb[16].mxu1 %vm111_vm3, %v646_v32  ;;  %v7297_v32 = vld [vmem:[%s10903_s4 + $0xe] ss:$0 sm:$0xff] }
 0x7b1   :  { %8465 = vmatprep.mubr.msk.bf16.mxu1 %vm9419_vm1, %v9418_v2  ;;  %8462 = vmatpush3.bf16.msra.mxu1 %v9212_v34 }
 0x7b2   :  { %8463 = vmatprep.subr.bf16.mxu1 %v9418_v2 }
 0x7b5   :  { %8464 = vmatpush3.bf16.msra.mxu1 %v9213_v43 }
 0x7b6   :  { %8477 = vmatprep.subr.bf16.mxu1 %v9418_v2 }
 0x883   :  { %v709_v36 = vpop.f32.mrb[16].mxu1 }
 0x884   :  { %v710_v37 = vadd.f32 %v7243_v35, %v709_v36  ;;  %v8451_v38 = vpop.f32.mrb[17].mxu1 }
 0x885   :  { %v712_v39 = vpop.f32.mrb[18].mxu1 }
 0x886   :  { %v715_v40 = vmax.f32 %v710_v37, 0.0  ;;  %v8452_v41 = vpop.f32.mrb[19].mxu1 }
 0x887   :  { %v9226_v41 = vld [vmem:[%s10902_s3 + $0x110] sm:$0xff]  }
 0x888   :  { %v716_v42 = vpack.c.bf16 %v715_v40, %v715_v40  ;;  %v9225_v40 = vld [vmem:[%s10902_s3 + $0x108] sm:$0xff]  }
 0x88a   :  { %8458 = vmatmul.mubr.msk.bf16.vlgmr.msra.gmra.mrb[20].mxu0 %vm111_vm3, %v716_v42  ;;  %v7306_v42 = vld [vmem:[%s10903_s4 + $0xf] ss:$0 sm:$0xff] }
 0x88b   :  { %8473 = vmatprep.mubr.msk.bf16.mxu0 %vm9419_vm1, %v9418_v2  ;;  %8470 = vmatpush3.bf16.msra.mxu0 %v9214_v44 }
 0x88c   :  { %8471 = vmatprep.subr.bf16.mxu0 %v9418_v2 }
 0x88f   :  { %8472 = vmatpush3.bf16.msra.mxu0 %v9215_v53 }
 0x890   :  { %8485 = vmatprep.subr.bf16.mxu0 %v9418_v2 }
 0x95d   :  { %v779_v46 = vpop.f32.mrb[20].mxu0 }
 0x95e   :  { %v780_v47 = vadd.f32 %v7252_v45, %v779_v46  ;;  %v8459_v48 = vpop.f32.mrb[21].mxu0 }
 0x95f   :  { %v782_v49 = vpop.f32.mrb[22].mxu0 }
 0x960   :  { %v785_v50 = vmax.f32 %v780_v47, 0.0  ;;  %v8460_v51 = vpop.f32.mrb[23].mxu0 }
 0x961   :  { %v9228_v51 = vld [vmem:[%s10902_s3 + $0x120] sm:$0xff]  }
 0x962   :  { %v786_v52 = vpack.c.bf16 %v785_v50, %v785_v50  ;;  %v9227_v50 = vld [vmem:[%s10902_s3 + $0x118] sm:$0xff]  }
 0x964   :  { %8466 = vmatmul.mubr.msk.bf16.vlgmr.msra.gmra.mrb[20].mxu1 %vm111_vm3, %v786_v52  ;;  %v7315_v52 = vld [vmem:[%s10903_s4 + $0x10] ss:$0 sm:$0xff] }
 0x965   :  { %8481 = vmatprep.mubr.msk.bf16.mxu1 %vm9419_vm1, %v9418_v2  ;;  %8478 = vmatpush3.bf16.msra.mxu1 %v9216_v54 }
 0x966   :  { %8479 = vmatprep.subr.bf16.mxu1 %v9418_v2 }
 0x969   :  { %8480 = vmatpush3.bf16.msra.mxu1 %v9217_v63 }
 0x96a   :  { %8493 = vmatprep.subr.bf16.mxu1 %v9418_v2 }
 0xa37   :  { %v849_v56 = vpop.f32.mrb[20].mxu1 }
 0xa38   :  { %v850_v57 = vadd.f32 %v7261_v55, %v849_v56  ;;  %v8467_v58 = vpop.f32.mrb[21].mxu1 }
 0xa39   :  { %v852_v59 = vpop.f32.mrb[22].mxu1 }
 0xa3a   :  { %v855_v60 = vmax.f32 %v850_v57, 0.0  ;;  %v8468_v61 = vpop.f32.mrb[23].mxu1 }
 0xa3b   :  { %v9230_v61 = vld [vmem:[%s10902_s3 + $0x130] sm:$0xff]  }
 0xa3c   :  { %v856_v62 = vpack.c.bf16 %v855_v60, %v855_v60  ;;  %v9229_v60 = vld [vmem:[%s10902_s3 + $0x128] sm:$0xff]  }
 0xa3e   :  { %8474 = vmatmul.mubr.msk.bf16.vlgmr.msra.gmra.mrb[24].mxu0 %vm111_vm3, %v856_v62  ;;  %v7324_v62 = vld [vmem:[%s10903_s4 + $0x11] ss:$0 sm:$0xff] }
 0xa3f   :  { %8489 = vmatprep.mubr.msk.bf16.mxu0 %vm9419_vm1, %v9418_v2  ;;  %8486 = vmatpush3.bf16.msra.mxu0 %v9218_v0 }
 0xa40   :  { %8487 = vmatprep.subr.bf16.mxu0 %v9418_v2 }
 0xa43   :  { %8488 = vmatpush3.bf16.msra.mxu0 %v9219_v10 }
 0xa44   :  { %8501 = vmatprep.subr.bf16.mxu0 %v9418_v2 }
 0xb11   :  { %v919_v3 = vpop.f32.mrb[24].mxu0 }
 0xb12   :  { %v920_v4 = vadd.f32 %v7270_v1, %v919_v3  ;;  %v8475_v5 = vpop.f32.mrb[25].mxu0 }
 0xb13   :  { %v922_v6 = vpop.f32.mrb[26].mxu0 }
 0xb14   :  { %v925_v7 = vmax.f32 %v920_v4, 0.0  ;;  %v8476_v8 = vpop.f32.mrb[27].mxu0 }
 0xb15   :  { %v9232_v8 = vld [vmem:[%s10902_s3 + $0x140] sm:$0xff]  }
 0xb16   :  { %v926_v9 = vpack.c.bf16 %v925_v7, %v925_v7  ;;  %v9231_v7 = vld [vmem:[%s10902_s3 + $0x138] sm:$0xff]  }
 0xb18   :  { %8482 = vmatmul.mubr.msk.bf16.vlgmr.msra.gmra.mrb[24].mxu1 %vm111_vm3, %v926_v9  ;;  %v7333_v9 = vld [vmem:[%s10903_s4 + $0x12] ss:$0 sm:$0xff] }
 0xb19   :  { %8497 = vmatprep.mubr.msk.bf16.mxu1 %vm9419_vm1, %v9418_v2  ;;  %8494 = vmatpush3.bf16.msra.mxu1 %v9220_v11 }
 0xb1a   :  { %8495 = vmatprep.subr.bf16.mxu1 %v9418_v2 }
 0xb1d   :  { %8496 = vmatpush3.bf16.msra.mxu1 %v9221_v20 }
 0xb1e   :  { %8509 = vmatprep.subr.bf16.mxu1 %v9418_v2 }
 0xbeb   :  { %v989_v13 = vpop.f32.mrb[24].mxu1 }
 0xbec   :  { %v990_v14 = vadd.f32 %v7279_v12, %v989_v13  ;;  %v8483_v15 = vpop.f32.mrb[25].mxu1 }
 0xbed   :  { %v992_v16 = vpop.f32.mrb[26].mxu1 }
 0xbee   :  { %v995_v17 = vmax.f32 %v990_v14, 0.0  ;;  %v8484_v18 = vpop.f32.mrb[27].mxu1 }
 0xbef   :  { %v9234_v18 = vld [vmem:[%s10902_s3 + $0x150] sm:$0xff]  }
 0xbf0   :  { %v996_v19 = vpack.c.bf16 %v995_v17, %v995_v17  ;;  %v9233_v17 = vld [vmem:[%s10902_s3 + $0x148] sm:$0xff]  }
 0xbf2   :  { %8490 = vmatmul.mubr.msk.bf16.vlgmr.msra.gmra.mrb[28].mxu0 %vm111_vm3, %v996_v19  ;;  %v7342_v19 = vld [vmem:[%s10903_s4 + $0x13] ss:$0 sm:$0xff] }
 0xbf3   :  { %8505 = vmatprep.mubr.msk.bf16.mxu0 %vm9419_vm1, %v9418_v2  ;;  %8502 = vmatpush3.bf16.msra.mxu0 %v9222_v21 }
 0xbf4   :  { %8503 = vmatprep.subr.bf16.mxu0 %v9418_v2 }
 0xbf7   :  { %8504 = vmatpush3.bf16.msra.mxu0 %v9223_v30 }
 0xbf8   :  { %8517 = vmatprep.subr.bf16.mxu0 %v9418_v2 }
 0xcc5   :  { %v1059_v23 = vpop.f32.mrb[28].mxu0 }
 0xcc6   :  { %v1060_v24 = vadd.f32 %v7288_v22, %v1059_v23  ;;  %v8491_v25 = vpop.f32.mrb[29].mxu0 }
 0xcc7   :  { %v1062_v26 = vpop.f32.mrb[30].mxu0 }
 0xcc8   :  { %v1065_v27 = vmax.f32 %v1060_v24, 0.0  ;;  %v8492_v28 = vpop.f32.mrb[31].mxu0 }
 0xcc9   :  { %v9236_v28 = vld [vmem:[%s10902_s3 + $0x160] sm:$0xff]  }
 0xcca   :  { %v1066_v29 = vpack.c.bf16 %v1065_v27, %v1065_v27  ;;  %v9235_v27 = vld [vmem:[%s10902_s3 + $0x158] sm:$0xff]  }
 0xccc   :  { %8498 = vmatmul.mubr.msk.bf16.vlgmr.msra.gmra.mrb[28].mxu1 %vm111_vm3, %v1066_v29  ;;  %v7351_v29 = vld [vmem:[%s10903_s4 + $0x14] ss:$0 sm:$0xff] }
 0xccd   :  { %8513 = vmatprep.mubr.msk.bf16.mxu1 %vm9419_vm1, %v9418_v2  ;;  %8510 = vmatpush3.bf16.msra.mxu1 %v9224_v31 }
 0xcce   :  { %8511 = vmatprep.subr.bf16.mxu1 %v9418_v2 }
 0xcd1   :  { %8512 = vmatpush3.bf16.msra.mxu1 %v9225_v40 }
 0xcd2   :  { %8525 = vmatprep.subr.bf16.mxu1 %v9418_v2 }
 0xd9f   :  { %v1129_v33 = vpop.f32.mrb[28].mxu1 }
 0xda0   :  { %v1130_v34 = vadd.f32 %v7297_v32, %v1129_v33  ;;  %v8499_v35 = vpop.f32.mrb[29].mxu1 }
 0xda1   :  { %v1132_v36 = vpop.f32.mrb[30].mxu1 }
 0xda2   :  { %v1135_v37 = vmax.f32 %v1130_v34, 0.0  ;;  %v8500_v38 = vpop.f32.mrb[31].mxu1 }
 0xda3   :  { %v9238_v38 = vld [vmem:[%s10902_s3 + $0x170] sm:$0xff]  }
 0xda4   :  { %v1136_v39 = vpack.c.bf16 %v1135_v37, %v1135_v37  ;;  %v9237_v37 = vld [vmem:[%s10902_s3 + $0x168] sm:$0xff]  }
 0xda6   :  { %8506 = vmatmul.mubr.msk.bf16.vlgmr.msra.gmra.mrb[32].mxu0 %vm111_vm3, %v1136_v39  ;;  %v7360_v39 = vld [vmem:[%s10903_s4 + $0x15] ss:$0 sm:$0xff] }
 0xda7   :  { %8521 = vmatprep.mubr.msk.bf16.mxu0 %vm9419_vm1, %v9418_v2  ;;  %8518 = vmatpush3.bf16.msra.mxu0 %v9226_v41 }
 0xda8   :  { %8519 = vmatprep.subr.bf16.mxu0 %v9418_v2 }
 0xdab   :  { %8520 = vmatpush3.bf16.msra.mxu0 %v9227_v50 }
 0xdac   :  { %8533 = vmatprep.subr.bf16.mxu0 %v9418_v2 }
 0xe79   :  { %v1199_v43 = vpop.f32.mrb[32].mxu0 }
 0xe7a   :  { %v1200_v44 = vadd.f32 %v7306_v42, %v1199_v43  ;;  %v8507_v45 = vpop.f32.mrb[33].mxu0 }
 0xe7b   :  { %v1202_v46 = vpop.f32.mrb[34].mxu0 }
 0xe7c   :  { %v1205_v47 = vmax.f32 %v1200_v44, 0.0  ;;  %v8508_v48 = vpop.f32.mrb[35].mxu0 }
 0xe7d   :  { %v9240_v48 = vld [vmem:[%s10902_s3 + $0x180] sm:$0xff]  }
 0xe7e   :  { %v1206_v49 = vpack.c.bf16 %v1205_v47, %v1205_v47  ;;  %v9239_v47 = vld [vmem:[%s10902_s3 + $0x178] sm:$0xff]  }
 0xe80   :  { %8514 = vmatmul.mubr.msk.bf16.vlgmr.msra.gmra.mrb[32].mxu1 %vm111_vm3, %v1206_v49  ;;  %v7369_v49 = vld [vmem:[%s10903_s4 + $0x16] ss:$0 sm:$0xff] }
 0xe81   :  { %8529 = vmatprep.mubr.msk.bf16.mxu1 %vm9419_vm1, %v9418_v2  ;;  %8526 = vmatpush3.bf16.msra.mxu1 %v9228_v51 }
 0xe82   :  { %8527 = vmatprep.subr.bf16.mxu1 %v9418_v2 }
 0xe85   :  { %8528 = vmatpush3.bf16.msra.mxu1 %v9229_v60 }
 0xe86   :  { %8541 = vmatprep.subr.bf16.mxu1 %v9418_v2 }
 0xf53   :  { %v1269_v53 = vpop.f32.mrb[32].mxu1 }
 0xf54   :  { %v1270_v54 = vadd.f32 %v7315_v52, %v1269_v53  ;;  %v8515_v55 = vpop.f32.mrb[33].mxu1 }
 0xf55   :  { %v1272_v56 = vpop.f32.mrb[34].mxu1 }
 0xf56   :  { %v1275_v57 = vmax.f32 %v1270_v54, 0.0  ;;  %v8516_v58 = vpop.f32.mrb[35].mxu1 }
 0xf57   :  { %v9242_v58 = vld [vmem:[%s10902_s3 + $0x190] sm:$0xff]  }
 0xf58   :  { %v1276_v59 = vpack.c.bf16 %v1275_v57, %v1275_v57  ;;  %v9241_v57 = vld [vmem:[%s10902_s3 + $0x188] sm:$0xff]  }
 0xf5a   :  { %8522 = vmatmul.mubr.msk.bf16.vlgmr.msra.gmra.mrb[36].mxu0 %vm111_vm3, %v1276_v59  ;;  %v7378_v59 = vld [vmem:[%s10903_s4 + $0x17] ss:$0 sm:$0xff] }
 0xf5b   :  { %8537 = vmatprep.mubr.msk.bf16.mxu0 %vm9419_vm1, %v9418_v2  ;;  %8534 = vmatpush3.bf16.msra.mxu0 %v9230_v61 }
 0xf5c   :  { %8535 = vmatprep.subr.bf16.mxu0 %v9418_v2 }
 0xf5f   :  { %8536 = vmatpush3.bf16.msra.mxu0 %v9231_v7 }
 0xf60   :  { %8549 = vmatprep.subr.bf16.mxu0 %v9418_v2 }
0x102d   :  { %v1339_v63 = vpop.f32.mrb[36].mxu0 }
0x102e   :  { %v1340_v0 = vadd.f32 %v7324_v62, %v1339_v63  ;;  %v8523_v1 = vpop.f32.mrb[37].mxu0 }
0x102f   :  { %v1342_v3 = vpop.f32.mrb[38].mxu0 }
0x1030   :  { %v1345_v4 = vmax.f32 %v1340_v0, 0.0  ;;  %v8524_v5 = vpop.f32.mrb[39].mxu0 }
0x1031   :  { %v9244_v5 = vld [vmem:[%s10902_s3 + $0x1a0] sm:$0xff]  }
0x1032   :  { %v1346_v6 = vpack.c.bf16 %v1345_v4, %v1345_v4  ;;  %v9243_v4 = vld [vmem:[%s10902_s3 + $0x198] sm:$0xff]  }
0x1034   :  { %8530 = vmatmul.mubr.msk.bf16.vlgmr.msra.gmra.mrb[36].mxu1 %vm111_vm3, %v1346_v6  ;;  %v7387_v6 = vld [vmem:[%s10903_s4 + $0x18] ss:$0 sm:$0xff] }
0x1035   :  { %8545 = vmatprep.mubr.msk.bf16.mxu1 %vm9419_vm1, %v9418_v2  ;;  %8542 = vmatpush3.bf16.msra.mxu1 %v9232_v8 }
0x1036   :  { %8543 = vmatprep.subr.bf16.mxu1 %v9418_v2 }
0x1039   :  { %8544 = vmatpush3.bf16.msra.mxu1 %v9233_v17 }
0x103a   :  { %8557 = vmatprep.subr.bf16.mxu1 %v9418_v2 }
0x1107   :  { %v1409_v10 = vpop.f32.mrb[36].mxu1 }
0x1108   :  { %v1410_v11 = vadd.f32 %v7333_v9, %v1409_v10  ;;  %v8531_v12 = vpop.f32.mrb[37].mxu1 }
0x1109   :  { %v1412_v13 = vpop.f32.mrb[38].mxu1 }
0x110a   :  { %v1415_v14 = vmax.f32 %v1410_v11, 0.0  ;;  %v8532_v15 = vpop.f32.mrb[39].mxu1 }
0x110b   :  { %v9246_v15 = vld [vmem:[%s10902_s3 + $0x1b0] sm:$0xff]  }
0x110c   :  { %v1416_v16 = vpack.c.bf16 %v1415_v14, %v1415_v14  ;;  %v9245_v14 = vld [vmem:[%s10902_s3 + $0x1a8] sm:$0xff]  }
0x110e   :  { %8538 = vmatmul.mubr.msk.bf16.vlgmr.msra.gmra.mrb[40].mxu0 %vm111_vm3, %v1416_v16  ;;  %v7396_v16 = vld [vmem:[%s10903_s4 + $0x19] ss:$0 sm:$0xff] }
0x110f   :  { %8553 = vmatprep.mubr.msk.bf16.mxu0 %vm9419_vm1, %v9418_v2  ;;  %8550 = vmatpush3.bf16.msra.mxu0 %v9234_v18 }
0x1110   :  { %8551 = vmatprep.subr.bf16.mxu0 %v9418_v2 }
0x1113   :  { %8552 = vmatpush3.bf16.msra.mxu0 %v9235_v27 }
0x1114   :  { %8565 = vmatprep.subr.bf16.mxu0 %v9418_v2 }
0x11e1   :  { %v1479_v20 = vpop.f32.mrb[40].mxu0 }
0x11e2   :  { %v1480_v21 = vadd.f32 %v7342_v19, %v1479_v20  ;;  %v8539_v22 = vpop.f32.mrb[41].mxu0 }
0x11e3   :  { %v1482_v23 = vpop.f32.mrb[42].mxu0 }
0x11e4   :  { %v1485_v24 = vmax.f32 %v1480_v21, 0.0  ;;  %v8540_v25 = vpop.f32.mrb[43].mxu0 }
0x11e5   :  { %v9248_v25 = vld [vmem:[%s10902_s3 + $0x1c0] sm:$0xff]  }
0x11e6   :  { %v1486_v26 = vpack.c.bf16 %v1485_v24, %v1485_v24  ;;  %v9247_v24 = vld [vmem:[%s10902_s3 + $0x1b8] sm:$0xff]  }
0x11e8   :  { %8546 = vmatmul.mubr.msk.bf16.vlgmr.msra.gmra.mrb[40].mxu1 %vm111_vm3, %v1486_v26  ;;  %v7405_v26 = vld [vmem:[%s10903_s4 + $0x1a] ss:$0 sm:$0xff] }
0x11e9   :  { %8561 = vmatprep.mubr.msk.bf16.mxu1 %vm9419_vm1, %v9418_v2  ;;  %8558 = vmatpush3.bf16.msra.mxu1 %v9236_v28 }
0x11ea   :  { %8559 = vmatprep.subr.bf16.mxu1 %v9418_v2 }
0x11ed   :  { %8560 = vmatpush3.bf16.msra.mxu1 %v9237_v37 }
0x11ee   :  { %8573 = vmatprep.subr.bf16.mxu1 %v9418_v2 }
0x12bb   :  { %v1549_v30 = vpop.f32.mrb[40].mxu1 }
0x12bc   :  { %v1550_v31 = vadd.f32 %v7351_v29, %v1549_v30  ;;  %v8547_v32 = vpop.f32.mrb[41].mxu1 }
0x12bd   :  { %v1552_v33 = vpop.f32.mrb[42].mxu1 }
0x12be   :  { %v1555_v34 = vmax.f32 %v1550_v31, 0.0  ;;  %v8548_v35 = vpop.f32.mrb[43].mxu1 }
0x12bf   :  { %v9250_v35 = vld [vmem:[%s10902_s3 + $0x1d0] sm:$0xff]  }
0x12c0   :  { %v1556_v36 = vpack.c.bf16 %v1555_v34, %v1555_v34  ;;  %v9249_v34 = vld [vmem:[%s10902_s3 + $0x1c8] sm:$0xff]  }
0x12c2   :  { %8554 = vmatmul.mubr.msk.bf16.vlgmr.msra.gmra.mrb[44].mxu0 %vm111_vm3, %v1556_v36  ;;  %v7414_v36 = vld [vmem:[%s10903_s4 + $0x1b] ss:$0 sm:$0xff] }
0x12c3   :  { %8569 = vmatprep.mubr.msk.bf16.mxu0 %vm9419_vm1, %v9418_v2  ;;  %8566 = vmatpush3.bf16.msra.mxu0 %v9238_v38 }
0x12c4   :  { %8567 = vmatprep.subr.bf16.mxu0 %v9418_v2 }
0x12c7   :  { %8568 = vmatpush3.bf16.msra.mxu0 %v9239_v47 }
0x12c8   :  { %8581 = vmatprep.subr.bf16.mxu0 %v9418_v2 }
0x1395   :  { %v1619_v40 = vpop.f32.mrb[44].mxu0 }
0x1396   :  { %v1620_v41 = vadd.f32 %v7360_v39, %v1619_v40  ;;  %v8555_v42 = vpop.f32.mrb[45].mxu0 }
0x1397   :  { %v1622_v43 = vpop.f32.mrb[46].mxu0 }
0x1398   :  { %v1625_v44 = vmax.f32 %v1620_v41, 0.0  ;;  %v8556_v45 = vpop.f32.mrb[47].mxu0 }
0x1399   :  { %v9252_v45 = vld [vmem:[%s10902_s3 + $0x1e0] sm:$0xff]  }
0x139a   :  { %v1626_v46 = vpack.c.bf16 %v1625_v44, %v1625_v44  ;;  %v9251_v44 = vld [vmem:[%s10902_s3 + $0x1d8] sm:$0xff]  }
0x139c   :  { %8562 = vmatmul.mubr.msk.bf16.vlgmr.msra.gmra.mrb[44].mxu1 %vm111_vm3, %v1626_v46  ;;  %v7423_v46 = vld [vmem:[%s10903_s4 + $0x1c] ss:$0 sm:$0xff] }
0x139d   :  { %8577 = vmatprep.mubr.msk.bf16.mxu1 %vm9419_vm1, %v9418_v2  ;;  %8574 = vmatpush3.bf16.msra.mxu1 %v9240_v48 }
0x139e   :  { %8575 = vmatprep.subr.bf16.mxu1 %v9418_v2 }
0x13a1   :  { %8576 = vmatpush3.bf16.msra.mxu1 %v9241_v57 }
0x13a2   :  { %8589 = vmatprep.subr.bf16.mxu1 %v9418_v2 }
0x146f   :  { %v1689_v50 = vpop.f32.mrb[44].mxu1 }
0x1470   :  { %v1690_v51 = vadd.f32 %v7369_v49, %v1689_v50  ;;  %v8563_v52 = vpop.f32.mrb[45].mxu1 }
0x1471   :  { %v1692_v53 = vpop.f32.mrb[46].mxu1 }
0x1472   :  { %v1695_v54 = vmax.f32 %v1690_v51, 0.0  ;;  %v8564_v55 = vpop.f32.mrb[47].mxu1 }
0x1473   :  { %v9254_v55 = vld [vmem:[%s10902_s3 + $0x1f0] sm:$0xff]  }
0x1474   :  { %v1696_v56 = vpack.c.bf16 %v1695_v54, %v1695_v54  ;;  %v9253_v54 = vld [vmem:[%s10902_s3 + $0x1e8] sm:$0xff]  }
0x1476   :  { %8570 = vmatmul.mubr.msk.bf16.vlgmr.msra.gmra.mrb[48].mxu0 %vm111_vm3, %v1696_v56  ;;  %v7432_v56 = vld [vmem:[%s10903_s4 + $0x1d] ss:$0 sm:$0xff] }
0x1477   :  { %8585 = vmatprep.mubr.msk.bf16.mxu0 %vm9419_vm1, %v9418_v2  ;;  %8582 = vmatpush3.bf16.msra.mxu0 %v9242_v58 }
0x1478   :  { %8583 = vmatprep.subr.bf16.mxu0 %v9418_v2 }
0x147b   :  { %8584 = vmatpush3.bf16.msra.mxu0 %v9243_v4 }
0x147c   :  { %8597 = vmatprep.subr.bf16.mxu0 %v9418_v2 }
0x1549   :  { %v1759_v60 = vpop.f32.mrb[48].mxu0 }
0x154a   :  { %v1760_v61 = vadd.f32 %v7378_v59, %v1759_v60  ;;  %v8571_v62 = vpop.f32.mrb[49].mxu0 }
0x154b   :  { %v1762_v63 = vpop.f32.mrb[50].mxu0 }
0x154c   :  { %v1765_v0 = vmax.f32 %v1760_v61, 0.0  ;;  %v8572_v1 = vpop.f32.mrb[51].mxu0 }
0x154d   :  { %v9256_v1 = vld [vmem:[%s10902_s3 + $0x200] sm:$0xff]  }
0x154e   :  { %v1766_v3 = vpack.c.bf16 %v1765_v0, %v1765_v0  ;;  %v9255_v0 = vld [vmem:[%s10902_s3 + $0x1f8] sm:$0xff]  }
0x1550   :  { %8578 = vmatmul.mubr.msk.bf16.vlgmr.msra.gmra.mrb[48].mxu1 %vm111_vm3, %v1766_v3  ;;  %v7441_v3 = vld [vmem:[%s10903_s4 + $0x1e] ss:$0 sm:$0xff] }
0x1551   :  { %8593 = vmatprep.mubr.msk.bf16.mxu1 %vm9419_vm1, %v9418_v2  ;;  %8590 = vmatpush3.bf16.msra.mxu1 %v9244_v5 }
0x1552   :  { %8591 = vmatprep.subr.bf16.mxu1 %v9418_v2 }
0x1555   :  { %8592 = vmatpush3.bf16.msra.mxu1 %v9245_v14 }
0x1556   :  { %8605 = vmatprep.subr.bf16.mxu1 %v9418_v2 }
0x1623   :  { %v1829_v7 = vpop.f32.mrb[48].mxu1 }
0x1624   :  { %v1830_v8 = vadd.f32 %v7387_v6, %v1829_v7  ;;  %v8579_v9 = vpop.f32.mrb[49].mxu1 }
0x1625   :  { %v1832_v10 = vpop.f32.mrb[50].mxu1 }
0x1626   :  { %v1835_v11 = vmax.f32 %v1830_v8, 0.0  ;;  %v8580_v12 = vpop.f32.mrb[51].mxu1 }
0x1627   :  { %v9258_v12 = vld [vmem:[%s10902_s3 + $0x210] sm:$0xff]  }
0x1628   :  { %v1836_v13 = vpack.c.bf16 %v1835_v11, %v1835_v11  ;;  %v9257_v11 = vld [vmem:[%s10902_s3 + $0x208] sm:$0xff]  }
0x162a   :  { %8586 = vmatmul.mubr.msk.bf16.vlgmr.msra.gmra.mrb[52].mxu0 %vm111_vm3, %v1836_v13  ;;  %v7450_v13 = vld [vmem:[%s10903_s4 + $0x1f] ss:$0 sm:$0xff] }
0x162b   :  { %8601 = vmatprep.mubr.msk.bf16.mxu0 %vm9419_vm1, %v9418_v2  ;;  %8598 = vmatpush3.bf16.msra.mxu0 %v9246_v15 }
0x162c   :  { %8599 = vmatprep.subr.bf16.mxu0 %v9418_v2 }
0x162f   :  { %8600 = vmatpush3.bf16.msra.mxu0 %v9247_v24 }
0x1630   :  { %8613 = vmatprep.subr.bf16.mxu0 %v9418_v2 }
0x16fd   :  { %v1899_v17 = vpop.f32.mrb[52].mxu0 }
0x16fe   :  { %v1900_v18 = vadd.f32 %v7396_v16, %v1899_v17  ;;  %v8587_v19 = vpop.f32.mrb[53].mxu0 }
0x16ff   :  { %v1902_v20 = vpop.f32.mrb[54].mxu0 }
0x1700   :  { %v1905_v21 = vmax.f32 %v1900_v18, 0.0  ;;  %v8588_v22 = vpop.f32.mrb[55].mxu0 }
0x1701   :  { %v9260_v22 = vld [vmem:[%s10902_s3 + $0x220] sm:$0xff]  }
0x1702   :  { %v1906_v23 = vpack.c.bf16 %v1905_v21, %v1905_v21  ;;  %v9259_v21 = vld [vmem:[%s10902_s3 + $0x218] sm:$0xff]  }
0x1704   :  { %8594 = vmatmul.mubr.msk.bf16.vlgmr.msra.gmra.mrb[52].mxu1 %vm111_vm3, %v1906_v23  ;;  %v7459_v23 = vld [vmem:[%s10903_s4 + $0x20] ss:$0 sm:$0xff] }
0x1705   :  { %8609 = vmatprep.mubr.msk.bf16.mxu1 %vm9419_vm1, %v9418_v2  ;;  %8606 = vmatpush3.bf16.msra.mxu1 %v9248_v25 }
0x1706   :  { %8607 = vmatprep.subr.bf16.mxu1 %v9418_v2 }
0x1709   :  { %8608 = vmatpush3.bf16.msra.mxu1 %v9249_v34 }
0x170a   :  { %8621 = vmatprep.subr.bf16.mxu1 %v9418_v2 }
0x17d7   :  { %v1969_v27 = vpop.f32.mrb[52].mxu1 }
0x17d8   :  { %v1970_v28 = vadd.f32 %v7405_v26, %v1969_v27  ;;  %v8595_v29 = vpop.f32.mrb[53].mxu1 }
0x17d9   :  { %v1972_v30 = vpop.f32.mrb[54].mxu1 }
0x17da   :  { %v1975_v31 = vmax.f32 %v1970_v28, 0.0  ;;  %v8596_v32 = vpop.f32.mrb[55].mxu1 }
0x17db   :  { %v9262_v32 = vld [vmem:[%s10902_s3 + $0x230] sm:$0xff]  }
0x17dc   :  { %v1976_v33 = vpack.c.bf16 %v1975_v31, %v1975_v31  ;;  %v9261_v31 = vld [vmem:[%s10902_s3 + $0x228] sm:$0xff]  }
0x17de   :  { %8602 = vmatmul.mubr.msk.bf16.vlgmr.msra.gmra.mrb[56].mxu0 %vm111_vm3, %v1976_v33  ;;  %v7468_v33 = vld [vmem:[%s10903_s4 + $0x21] ss:$0 sm:$0xff] }
0x17df   :  { %8617 = vmatprep.mubr.msk.bf16.mxu0 %vm9419_vm1, %v9418_v2  ;;  %8614 = vmatpush3.bf16.msra.mxu0 %v9250_v35 }
0x17e0   :  { %8615 = vmatprep.subr.bf16.mxu0 %v9418_v2 }
0x17e3   :  { %8616 = vmatpush3.bf16.msra.mxu0 %v9251_v44 }
0x17e4   :  { %8629 = vmatprep.subr.bf16.mxu0 %v9418_v2 }
0x18b1   :  { %v2039_v37 = vpop.f32.mrb[56].mxu0 }
0x18b2   :  { %v2040_v38 = vadd.f32 %v7414_v36, %v2039_v37  ;;  %v8603_v39 = vpop.f32.mrb[57].mxu0 }
0x18b3   :  { %v2042_v40 = vpop.f32.mrb[58].mxu0 }
0x18b4   :  { %v2045_v41 = vmax.f32 %v2040_v38, 0.0  ;;  %v8604_v42 = vpop.f32.mrb[59].mxu0 }
0x18b5   :  { %v9264_v42 = vld [vmem:[%s10902_s3 + $0x240] sm:$0xff]  }
0x18b6   :  { %v2046_v43 = vpack.c.bf16 %v2045_v41, %v2045_v41  ;;  %v9263_v41 = vld [vmem:[%s10902_s3 + $0x238] sm:$0xff]  }
0x18b8   :  { %8610 = vmatmul.mubr.msk.bf16.vlgmr.msra.gmra.mrb[56].mxu1 %vm111_vm3, %v2046_v43  ;;  %v7477_v43 = vld [vmem:[%s10903_s4 + $0x22] ss:$0 sm:$0xff] }
0x18b9   :  { %8625 = vmatprep.mubr.msk.bf16.mxu1 %vm9419_vm1, %v9418_v2  ;;  %8622 = vmatpush3.bf16.msra.mxu1 %v9252_v45 }
0x18ba   :  { %8623 = vmatprep.subr.bf16.mxu1 %v9418_v2 }
0x18bd   :  { %8624 = vmatpush3.bf16.msra.mxu1 %v9253_v54 }
0x18be   :  { %8637 = vmatprep.subr.bf16.mxu1 %v9418_v2 }
0x198b   :  { %v2109_v47 = vpop.f32.mrb[56].mxu1 }
0x198c   :  { %v2110_v48 = vadd.f32 %v7423_v46, %v2109_v47  ;;  %v8611_v49 = vpop.f32.mrb[57].mxu1 }
0x198d   :  { %v2112_v50 = vpop.f32.mrb[58].mxu1 }
0x198e   :  { %v2115_v51 = vmax.f32 %v2110_v48, 0.0  ;;  %v8612_v52 = vpop.f32.mrb[59].mxu1 }
0x198f   :  { %v9266_v52 = vld [vmem:[%s10902_s3 + $0x250] sm:$0xff]  }
0x1990   :  { %v2116_v53 = vpack.c.bf16 %v2115_v51, %v2115_v51  ;;  %v9265_v51 = vld [vmem:[%s10902_s3 + $0x248] sm:$0xff]  }
0x1992   :  { %8618 = vmatmul.mubr.msk.bf16.vlgmr.msra.gmra.mrb[60].mxu0 %vm111_vm3, %v2116_v53  ;;  %v7486_v53 = vld [vmem:[%s10903_s4 + $0x23] ss:$0 sm:$0xff] }
0x1993   :  { %8633 = vmatprep.mubr.msk.bf16.mxu0 %vm9419_vm1, %v9418_v2  ;;  %8630 = vmatpush3.bf16.msra.mxu0 %v9254_v55 }
0x1994   :  { %8631 = vmatprep.subr.bf16.mxu0 %v9418_v2 }
0x1997   :  { %8632 = vmatpush3.bf16.msra.mxu0 %v9255_v0 }
0x1998   :  { %8645 = vmatprep.subr.bf16.mxu0 %v9418_v2 }
0x1a65   :  { %v2179_v57 = vpop.f32.mrb[60].mxu0 }
0x1a66   :  { %v2180_v58 = vadd.f32 %v7432_v56, %v2179_v57  ;;  %v8619_v59 = vpop.f32.mrb[61].mxu0 }
0x1a67   :  { %v2182_v60 = vpop.f32.mrb[62].mxu0 }
0x1a68   :  { %v2185_v61 = vmax.f32 %v2180_v58, 0.0  ;;  %v8620_v62 = vpop.f32.mrb[63].mxu0 }
0x1a69   :  { %v9268_v62 = vld [vmem:[%s10902_s3 + $0x260] sm:$0xff]  }
0x1a6a   :  { %v2186_v63 = vpack.c.bf16 %v2185_v61, %v2185_v61  ;;  %v9267_v61 = vld [vmem:[%s10902_s3 + $0x258] sm:$0xff]  }
0x1a6c   :  { %8626 = vmatmul.mubr.msk.bf16.vlgmr.msra.gmra.mrb[60].mxu1 %vm111_vm3, %v2186_v63  ;;  %v7495_v63 = vld [vmem:[%s10903_s4 + $0x24] ss:$0 sm:$0xff] }
0x1a6d   :  { %8641 = vmatprep.mubr.msk.bf16.mxu1 %vm9419_vm1, %v9418_v2  ;;  %8638 = vmatpush3.bf16.msra.mxu1 %v9256_v1 }
0x1a6e   :  { %8639 = vmatprep.subr.bf16.mxu1 %v9418_v2 }
0x1a71   :  { %8640 = vmatpush3.bf16.msra.mxu1 %v9257_v11 }
0x1a72   :  { %8653 = vmatprep.subr.bf16.mxu1 %v9418_v2 }
0x1b3f   :  { %v2249_v4 = vpop.f32.mrb[60].mxu1 }
0x1b40   :  { %v2250_v5 = vadd.f32 %v7441_v3, %v2249_v4  ;;  %v8627_v6 = vpop.f32.mrb[61].mxu1 }
0x1b41   :  { %v2252_v7 = vpop.f32.mrb[62].mxu1 }
0x1b42   :  { %v2255_v8 = vmax.f32 %v2250_v5, 0.0  ;;  %v8628_v9 = vpop.f32.mrb[63].mxu1 }
0x1b43   :  { %v9270_v9 = vld [vmem:[%s10902_s3 + $0x270] sm:$0xff]  }
0x1b44   :  { %v2256_v10 = vpack.c.bf16 %v2255_v8, %v2255_v8  ;;  %v9269_v8 = vld [vmem:[%s10902_s3 + $0x268] sm:$0xff]  }
0x1b46   :  { %8634 = vmatmul.mubr.msk.bf16.vlgmr.msra.gmra.mrb[64].mxu0 %vm111_vm3, %v2256_v10  ;;  %v7504_v10 = vld [vmem:[%s10903_s4 + $0x25] ss:$0 sm:$0xff] }
0x1b47   :  { %8649 = vmatprep.mubr.msk.bf16.mxu0 %vm9419_vm1, %v9418_v2  ;;  %8646 = vmatpush3.bf16.msra.mxu0 %v9258_v12 }
0x1b48   :  { %8647 = vmatprep.subr.bf16.mxu0 %v9418_v2 }
0x1b4b   :  { %8648 = vmatpush3.bf16.msra.mxu0 %v9259_v21 }
0x1b4c   :  { %8661 = vmatprep.subr.bf16.mxu0 %v9418_v2 }
0x1c19   :  { %v2319_v14 = vpop.f32.mrb[64].mxu0 }
0x1c1a   :  { %v2320_v15 = vadd.f32 %v7450_v13, %v2319_v14  ;;  %v8635_v16 = vpop.f32.mrb[65].mxu0 }
0x1c1b   :  { %v2322_v17 = vpop.f32.mrb[66].mxu0 }
0x1c1c   :  { %v2325_v18 = vmax.f32 %v2320_v15, 0.0  ;;  %v8636_v19 = vpop.f32.mrb[67].mxu0 }
0x1c1d   :  { %v9272_v19 = vld [vmem:[%s10902_s3 + $0x280] sm:$0xff]  }
0x1c1e   :  { %v2326_v20 = vpack.c.bf16 %v2325_v18, %v2325_v18  ;;  %v9271_v18 = vld [vmem:[%s10902_s3 + $0x278] sm:$0xff]  }
0x1c20   :  { %8642 = vmatmul.mubr.msk.bf16.vlgmr.msra.gmra.mrb[64].mxu1 %vm111_vm3, %v2326_v20  ;;  %v7513_v20 = vld [vmem:[%s10903_s4 + $0x26] ss:$0 sm:$0xff] }
0x1c21   :  { %8657 = vmatprep.mubr.msk.bf16.mxu1 %vm9419_vm1, %v9418_v2  ;;  %8654 = vmatpush3.bf16.msra.mxu1 %v9260_v22 }
0x1c22   :  { %8655 = vmatprep.subr.bf16.mxu1 %v9418_v2 }
0x1c25   :  { %8656 = vmatpush3.bf16.msra.mxu1 %v9261_v31 }
0x1c26   :  { %8669 = vmatprep.subr.bf16.mxu1 %v9418_v2 }
0x1cf3   :  { %v2389_v24 = vpop.f32.mrb[64].mxu1 }
0x1cf4   :  { %v2390_v25 = vadd.f32 %v7459_v23, %v2389_v24  ;;  %v8643_v26 = vpop.f32.mrb[65].mxu1 }
0x1cf5   :  { %v2392_v27 = vpop.f32.mrb[66].mxu1 }
0x1cf6   :  { %v2395_v28 = vmax.f32 %v2390_v25, 0.0  ;;  %v8644_v29 = vpop.f32.mrb[67].mxu1 }
0x1cf7   :  { %v9274_v29 = vld [vmem:[%s10902_s3 + $0x290] sm:$0xff]  }
0x1cf8   :  { %v2396_v30 = vpack.c.bf16 %v2395_v28, %v2395_v28  ;;  %v9273_v28 = vld [vmem:[%s10902_s3 + $0x288] sm:$0xff]  }
0x1cfa   :  { %8650 = vmatmul.mubr.msk.bf16.vlgmr.msra.gmra.mrb[68].mxu0 %vm111_vm3, %v2396_v30  ;;  %v7522_v30 = vld [vmem:[%s10903_s4 + $0x27] ss:$0 sm:$0xff] }
0x1cfb   :  { %8665 = vmatprep.mubr.msk.bf16.mxu0 %vm9419_vm1, %v9418_v2  ;;  %8662 = vmatpush3.bf16.msra.mxu0 %v9262_v32 }
0x1cfc   :  { %8663 = vmatprep.subr.bf16.mxu0 %v9418_v2 }
0x1cff   :  { %8664 = vmatpush3.bf16.msra.mxu0 %v9263_v41 }
0x1d00   :  { %8677 = vmatprep.subr.bf16.mxu0 %v9418_v2 }
0x1dcd   :  { %v2459_v34 = vpop.f32.mrb[68].mxu0 }
0x1dce   :  { %v2460_v35 = vadd.f32 %v7468_v33, %v2459_v34  ;;  %v8651_v36 = vpop.f32.mrb[69].mxu0 }
0x1dcf   :  { %v2462_v37 = vpop.f32.mrb[70].mxu0 }
0x1dd0   :  { %v2465_v38 = vmax.f32 %v2460_v35, 0.0  ;;  %v8652_v39 = vpop.f32.mrb[71].mxu0 }
0x1dd1   :  { %v9276_v39 = vld [vmem:[%s10902_s3 + $0x2a0] sm:$0xff]  }
0x1dd2   :  { %v2466_v40 = vpack.c.bf16 %v2465_v38, %v2465_v38  ;;  %v9275_v38 = vld [vmem:[%s10902_s3 + $0x298] sm:$0xff]  }
0x1dd4   :  { %8658 = vmatmul.mubr.msk.bf16.vlgmr.msra.gmra.mrb[68].mxu1 %vm111_vm3, %v2466_v40  ;;  %v7531_v40 = vld [vmem:[%s10903_s4 + $0x28] ss:$0 sm:$0xff] }
0x1dd5   :  { %8673 = vmatprep.mubr.msk.bf16.mxu1 %vm9419_vm1, %v9418_v2  ;;  %8670 = vmatpush3.bf16.msra.mxu1 %v9264_v42 }
0x1dd6   :  { %8671 = vmatprep.subr.bf16.mxu1 %v9418_v2 }
0x1dd9   :  { %8672 = vmatpush3.bf16.msra.mxu1 %v9265_v51 }
0x1dda   :  { %8685 = vmatprep.subr.bf16.mxu1 %v9418_v2 }
0x1ea7   :  { %v2529_v44 = vpop.f32.mrb[68].mxu1 }
0x1ea8   :  { %v2530_v45 = vadd.f32 %v7477_v43, %v2529_v44  ;;  %v8659_v46 = vpop.f32.mrb[69].mxu1 }
0x1ea9   :  { %v2532_v47 = vpop.f32.mrb[70].mxu1 }
0x1eaa   :  { %v2535_v48 = vmax.f32 %v2530_v45, 0.0  ;;  %v8660_v49 = vpop.f32.mrb[71].mxu1 }
0x1eab   :  { %v9278_v49 = vld [vmem:[%s10902_s3 + $0x2b0] sm:$0xff]  }
0x1eac   :  { %v2536_v50 = vpack.c.bf16 %v2535_v48, %v2535_v48  ;;  %v9277_v48 = vld [vmem:[%s10902_s3 + $0x2a8] sm:$0xff]  }
0x1eae   :  { %8666 = vmatmul.mubr.msk.bf16.vlgmr.msra.gmra.mrb[72].mxu0 %vm111_vm3, %v2536_v50  ;;  %v7540_v50 = vld [vmem:[%s10903_s4 + $0x29] ss:$0 sm:$0xff] }
0x1eaf   :  { %8681 = vmatprep.mubr.msk.bf16.mxu0 %vm9419_vm1, %v9418_v2  ;;  %8678 = vmatpush3.bf16.msra.mxu0 %v9266_v52 }
0x1eb0   :  { %8679 = vmatprep.subr.bf16.mxu0 %v9418_v2 }
0x1eb3   :  { %8680 = vmatpush3.bf16.msra.mxu0 %v9267_v61 }
0x1eb4   :  { %8693 = vmatprep.subr.bf16.mxu0 %v9418_v2 }
0x1f81   :  { %v2599_v54 = vpop.f32.mrb[72].mxu0 }
0x1f82   :  { %v2600_v55 = vadd.f32 %v7486_v53, %v2599_v54  ;;  %v8667_v56 = vpop.f32.mrb[73].mxu0 }
0x1f83   :  { %v2602_v57 = vpop.f32.mrb[74].mxu0 }
0x1f84   :  { %v2605_v58 = vmax.f32 %v2600_v55, 0.0  ;;  %v8668_v59 = vpop.f32.mrb[75].mxu0 }
0x1f85   :  { %v9280_v59 = vld [vmem:[%s10902_s3 + $0x2c0] sm:$0xff]  }
0x1f86   :  { %v2606_v60 = vpack.c.bf16 %v2605_v58, %v2605_v58  ;;  %v9279_v58 = vld [vmem:[%s10902_s3 + $0x2b8] sm:$0xff]  }
0x1f88   :  { %8674 = vmatmul.mubr.msk.bf16.vlgmr.msra.gmra.mrb[72].mxu1 %vm111_vm3, %v2606_v60  ;;  %v7549_v60 = vld [vmem:[%s10903_s4 + $0x2a] ss:$0 sm:$0xff] }
0x1f89   :  { %8689 = vmatprep.mubr.msk.bf16.mxu1 %vm9419_vm1, %v9418_v2  ;;  %8686 = vmatpush3.bf16.msra.mxu1 %v9268_v62 }
0x1f8a   :  { %8687 = vmatprep.subr.bf16.mxu1 %v9418_v2 }
0x1f8d   :  { %8688 = vmatpush3.bf16.msra.mxu1 %v9269_v8 }
0x1f8e   :  { %8701 = vmatprep.subr.bf16.mxu1 %v9418_v2 }
0x205b   :  { %v2669_v0 = vpop.f32.mrb[72].mxu1 }
0x205c   :  { %v2670_v1 = vadd.f32 %v7495_v63, %v2669_v0  ;;  %v8675_v3 = vpop.f32.mrb[73].mxu1 }
0x205d   :  { %v2672_v4 = vpop.f32.mrb[74].mxu1 }
0x205e   :  { %v2675_v5 = vmax.f32 %v2670_v1, 0.0  ;;  %v8676_v6 = vpop.f32.mrb[75].mxu1 }
0x205f   :  { %v9282_v6 = vld [vmem:[%s10902_s3 + $0x2d0] sm:$0xff]  }
0x2060   :  { %v2676_v7 = vpack.c.bf16 %v2675_v5, %v2675_v5  ;;  %v9281_v5 = vld [vmem:[%s10902_s3 + $0x2c8] sm:$0xff]  }
0x2062   :  { %8682 = vmatmul.mubr.msk.bf16.vlgmr.msra.gmra.mrb[76].mxu0 %vm111_vm3, %v2676_v7  ;;  %v7558_v7 = vld [vmem:[%s10903_s4 + $0x2b] ss:$0 sm:$0xff] }
0x2063   :  { %8697 = vmatprep.mubr.msk.bf16.mxu0 %vm9419_vm1, %v9418_v2  ;;  %8694 = vmatpush3.bf16.msra.mxu0 %v9270_v9 }
0x2064   :  { %8695 = vmatprep.subr.bf16.mxu0 %v9418_v2 }
0x2067   :  { %8696 = vmatpush3.bf16.msra.mxu0 %v9271_v18 }
0x2068   :  { %8709 = vmatprep.subr.bf16.mxu0 %v9418_v2 }
0x2135   :  { %v2739_v11 = vpop.f32.mrb[76].mxu0 }
0x2136   :  { %v2740_v12 = vadd.f32 %v7504_v10, %v2739_v11  ;;  %v8683_v13 = vpop.f32.mrb[77].mxu0 }
0x2137   :  { %v2742_v14 = vpop.f32.mrb[78].mxu0 }
0x2138   :  { %v2745_v15 = vmax.f32 %v2740_v12, 0.0  ;;  %v8684_v16 = vpop.f32.mrb[79].mxu0 }
0x2139   :  { %v9284_v16 = vld [vmem:[%s10902_s3 + $0x2e0] sm:$0xff]  }
0x213a   :  { %v2746_v17 = vpack.c.bf16 %v2745_v15, %v2745_v15  ;;  %v9283_v15 = vld [vmem:[%s10902_s3 + $0x2d8] sm:$0xff]  }
0x213c   :  { %8690 = vmatmul.mubr.msk.bf16.vlgmr.msra.gmra.mrb[76].mxu1 %vm111_vm3, %v2746_v17  ;;  %v7567_v17 = vld [vmem:[%s10903_s4 + $0x2c] ss:$0 sm:$0xff] }
0x213d   :  { %8705 = vmatprep.mubr.msk.bf16.mxu1 %vm9419_vm1, %v9418_v2  ;;  %8702 = vmatpush3.bf16.msra.mxu1 %v9272_v19 }
0x213e   :  { %8703 = vmatprep.subr.bf16.mxu1 %v9418_v2 }
0x2141   :  { %8704 = vmatpush3.bf16.msra.mxu1 %v9273_v28 }
0x2142   :  { %8717 = vmatprep.subr.bf16.mxu1 %v9418_v2 }
0x220f   :  { %v2809_v21 = vpop.f32.mrb[76].mxu1 }
0x2210   :  { %v2810_v22 = vadd.f32 %v7513_v20, %v2809_v21  ;;  %v8691_v23 = vpop.f32.mrb[77].mxu1 }
0x2211   :  { %v2812_v24 = vpop.f32.mrb[78].mxu1 }
0x2212   :  { %v2815_v25 = vmax.f32 %v2810_v22, 0.0  ;;  %v8692_v26 = vpop.f32.mrb[79].mxu1 }
0x2213   :  { %v9286_v26 = vld [vmem:[%s10902_s3 + $0x2f0] sm:$0xff]  }
0x2214   :  { %v2816_v27 = vpack.c.bf16 %v2815_v25, %v2815_v25  ;;  %v9285_v25 = vld [vmem:[%s10902_s3 + $0x2e8] sm:$0xff]  }
0x2216   :  { %8698 = vmatmul.mubr.msk.bf16.vlgmr.msra.gmra.mrb[80].mxu0 %vm111_vm3, %v2816_v27  ;;  %v7576_v27 = vld [vmem:[%s10903_s4 + $0x2d] ss:$0 sm:$0xff] }
0x2217   :  { %8713 = vmatprep.mubr.msk.bf16.mxu0 %vm9419_vm1, %v9418_v2  ;;  %8710 = vmatpush3.bf16.msra.mxu0 %v9274_v29 }
0x2218   :  { %8711 = vmatprep.subr.bf16.mxu0 %v9418_v2 }
0x221b   :  { %8712 = vmatpush3.bf16.msra.mxu0 %v9275_v38 }
0x221c   :  { %8725 = vmatprep.subr.bf16.mxu0 %v9418_v2 }
0x22e9   :  { %v2879_v31 = vpop.f32.mrb[80].mxu0 }
0x22ea   :  { %v2880_v32 = vadd.f32 %v7522_v30, %v2879_v31  ;;  %v8699_v33 = vpop.f32.mrb[81].mxu0 }
0x22eb   :  { %v2882_v34 = vpop.f32.mrb[82].mxu0 }
0x22ec   :  { %v2885_v35 = vmax.f32 %v2880_v32, 0.0  ;;  %v8700_v36 = vpop.f32.mrb[83].mxu0 }
0x22ed   :  { %v9288_v36 = vld [vmem:[%s10902_s3 + $0x300] sm:$0xff]  }
0x22ee   :  { %v2886_v37 = vpack.c.bf16 %v2885_v35, %v2885_v35  ;;  %v9287_v35 = vld [vmem:[%s10902_s3 + $0x2f8] sm:$0xff]  }
0x22f0   :  { %8706 = vmatmul.mubr.msk.bf16.vlgmr.msra.gmra.mrb[80].mxu1 %vm111_vm3, %v2886_v37  ;;  %v7585_v37 = vld [vmem:[%s10903_s4 + $0x2e] ss:$0 sm:$0xff] }
0x22f1   :  { %8721 = vmatprep.mubr.msk.bf16.mxu1 %vm9419_vm1, %v9418_v2  ;;  %8718 = vmatpush3.bf16.msra.mxu1 %v9276_v39 }
0x22f2   :  { %8719 = vmatprep.subr.bf16.mxu1 %v9418_v2 }
0x22f5   :  { %8720 = vmatpush3.bf16.msra.mxu1 %v9277_v48 }
0x22f6   :  { %8733 = vmatprep.subr.bf16.mxu1 %v9418_v2 }
0x23c3   :  { %v2949_v41 = vpop.f32.mrb[80].mxu1 }
0x23c4   :  { %v2950_v42 = vadd.f32 %v7531_v40, %v2949_v41  ;;  %v8707_v43 = vpop.f32.mrb[81].mxu1 }
0x23c5   :  { %v2952_v44 = vpop.f32.mrb[82].mxu1 }
0x23c6   :  { %v2955_v45 = vmax.f32 %v2950_v42, 0.0  ;;  %v8708_v46 = vpop.f32.mrb[83].mxu1 }
0x23c7   :  { %v9290_v46 = vld [vmem:[%s10902_s3 + $0x310] sm:$0xff]  }
0x23c8   :  { %v2956_v47 = vpack.c.bf16 %v2955_v45, %v2955_v45  ;;  %v9289_v45 = vld [vmem:[%s10902_s3 + $0x308] sm:$0xff]  }
0x23ca   :  { %8714 = vmatmul.mubr.msk.bf16.vlgmr.msra.gmra.mrb[84].mxu0 %vm111_vm3, %v2956_v47  ;;  %v7594_v47 = vld [vmem:[%s10903_s4 + $0x2f] ss:$0 sm:$0xff] }
0x23cb   :  { %8729 = vmatprep.mubr.msk.bf16.mxu0 %vm9419_vm1, %v9418_v2  ;;  %8726 = vmatpush3.bf16.msra.mxu0 %v9278_v49 }
0x23cc   :  { %8727 = vmatprep.subr.bf16.mxu0 %v9418_v2 }
0x23cf   :  { %8728 = vmatpush3.bf16.msra.mxu0 %v9279_v58 }
0x23d0   :  { %8741 = vmatprep.subr.bf16.mxu0 %v9418_v2 }
0x249d   :  { %v3019_v51 = vpop.f32.mrb[84].mxu0 }
0x249e   :  { %v3020_v52 = vadd.f32 %v7540_v50, %v3019_v51  ;;  %v8715_v53 = vpop.f32.mrb[85].mxu0 }
0x249f   :  { %v3022_v54 = vpop.f32.mrb[86].mxu0 }
0x24a0   :  { %v3025_v55 = vmax.f32 %v3020_v52, 0.0  ;;  %v8716_v56 = vpop.f32.mrb[87].mxu0 }
0x24a1   :  { %v9292_v56 = vld [vmem:[%s10902_s3 + $0x320] sm:$0xff]  }
0x24a2   :  { %v3026_v57 = vpack.c.bf16 %v3025_v55, %v3025_v55  ;;  %v9291_v55 = vld [vmem:[%s10902_s3 + $0x318] sm:$0xff]  }
0x24a4   :  { %8722 = vmatmul.mubr.msk.bf16.vlgmr.msra.gmra.mrb[84].mxu1 %vm111_vm3, %v3026_v57  ;;  %v7603_v57 = vld [vmem:[%s10903_s4 + $0x30] ss:$0 sm:$0xff] }
0x24a5   :  { %8737 = vmatprep.mubr.msk.bf16.mxu1 %vm9419_vm1, %v9418_v2  ;;  %8734 = vmatpush3.bf16.msra.mxu1 %v9280_v59 }
0x24a6   :  { %8735 = vmatprep.subr.bf16.mxu1 %v9418_v2 }
0x24a9   :  { %8736 = vmatpush3.bf16.msra.mxu1 %v9281_v5 }
0x24aa   :  { %8749 = vmatprep.subr.bf16.mxu1 %v9418_v2 }
0x2577   :  { %v3089_v61 = vpop.f32.mrb[84].mxu1 }
0x2578   :  { %v3090_v62 = vadd.f32 %v7549_v60, %v3089_v61  ;;  %v8723_v63 = vpop.f32.mrb[85].mxu1 }
0x2579   :  { %v3092_v0 = vpop.f32.mrb[86].mxu1 }
0x257a   :  { %v3095_v1 = vmax.f32 %v3090_v62, 0.0  ;;  %v8724_v3 = vpop.f32.mrb[87].mxu1 }
0x257b   :  { %v9294_v3 = vld [vmem:[%s10902_s3 + $0x330] sm:$0xff]  }
0x257c   :  { %v3096_v4 = vpack.c.bf16 %v3095_v1, %v3095_v1  ;;  %v9293_v1 = vld [vmem:[%s10902_s3 + $0x328] sm:$0xff]  }
0x257e   :  { %8730 = vmatmul.mubr.msk.bf16.vlgmr.msra.gmra.mrb[88].mxu0 %vm111_vm3, %v3096_v4  ;;  %v7612_v4 = vld [vmem:[%s10903_s4 + $0x31] ss:$0 sm:$0xff] }
0x257f   :  { %8745 = vmatprep.mubr.msk.bf16.mxu0 %vm9419_vm1, %v9418_v2  ;;  %8742 = vmatpush3.bf16.msra.mxu0 %v9282_v6 }
0x2580   :  { %8743 = vmatprep.subr.bf16.mxu0 %v9418_v2 }
0x2583   :  { %8744 = vmatpush3.bf16.msra.mxu0 %v9283_v15 }
0x2584   :  { %8757 = vmatprep.subr.bf16.mxu0 %v9418_v2 }
0x2651   :  { %v3159_v8 = vpop.f32.mrb[88].mxu0 }
0x2652   :  { %v3160_v9 = vadd.f32 %v7558_v7, %v3159_v8  ;;  %v8731_v10 = vpop.f32.mrb[89].mxu0 }
0x2653   :  { %v3162_v11 = vpop.f32.mrb[90].mxu0 }
0x2654   :  { %v3165_v12 = vmax.f32 %v3160_v9, 0.0  ;;  %v8732_v13 = vpop.f32.mrb[91].mxu0 }
0x2655   :  { %v9296_v13 = vld [vmem:[%s10902_s3 + $0x340] sm:$0xff]  }
0x2656   :  { %v3166_v14 = vpack.c.bf16 %v3165_v12, %v3165_v12  ;;  %v9295_v12 = vld [vmem:[%s10902_s3 + $0x338] sm:$0xff]  }
0x2658   :  { %8738 = vmatmul.mubr.msk.bf16.vlgmr.msra.gmra.mrb[88].mxu1 %vm111_vm3, %v3166_v14  ;;  %v7621_v14 = vld [vmem:[%s10903_s4 + $0x32] ss:$0 sm:$0xff] }
0x2659   :  { %8753 = vmatprep.mubr.msk.bf16.mxu1 %vm9419_vm1, %v9418_v2  ;;  %8750 = vmatpush3.bf16.msra.mxu1 %v9284_v16 }
0x265a   :  { %8751 = vmatprep.subr.bf16.mxu1 %v9418_v2 }
0x265d   :  { %8752 = vmatpush3.bf16.msra.mxu1 %v9285_v25 }
0x265e   :  { %8765 = vmatprep.subr.bf16.mxu1 %v9418_v2 }
0x272b   :  { %v3229_v18 = vpop.f32.mrb[88].mxu1 }
0x272c   :  { %v3230_v19 = vadd.f32 %v7567_v17, %v3229_v18  ;;  %v8739_v20 = vpop.f32.mrb[89].mxu1 }
0x272d   :  { %v3232_v21 = vpop.f32.mrb[90].mxu1 }
0x272e   :  { %v3235_v22 = vmax.f32 %v3230_v19, 0.0  ;;  %v8740_v23 = vpop.f32.mrb[91].mxu1 }
0x272f   :  { %v9298_v23 = vld [vmem:[%s10902_s3 + $0x350] sm:$0xff]  }
0x2730   :  { %v3236_v24 = vpack.c.bf16 %v3235_v22, %v3235_v22  ;;  %v9297_v22 = vld [vmem:[%s10902_s3 + $0x348] sm:$0xff]  }
0x2732   :  { %8746 = vmatmul.mubr.msk.bf16.vlgmr.msra.gmra.mrb[92].mxu0 %vm111_vm3, %v3236_v24  ;;  %v7630_v24 = vld [vmem:[%s10903_s4 + $0x33] ss:$0 sm:$0xff] }
0x2733   :  { %8761 = vmatprep.mubr.msk.bf16.mxu0 %vm9419_vm1, %v9418_v2  ;;  %8758 = vmatpush3.bf16.msra.mxu0 %v9286_v26 }
0x2734   :  { %8759 = vmatprep.subr.bf16.mxu0 %v9418_v2 }
0x2737   :  { %8760 = vmatpush3.bf16.msra.mxu0 %v9287_v35 }
0x2738   :  { %8773 = vmatprep.subr.bf16.mxu0 %v9418_v2 }
0x2805   :  { %v3299_v28 = vpop.f32.mrb[92].mxu0 }
0x2806   :  { %v3300_v29 = vadd.f32 %v7576_v27, %v3299_v28  ;;  %v8747_v30 = vpop.f32.mrb[93].mxu0 }
0x2807   :  { %v3302_v31 = vpop.f32.mrb[94].mxu0 }
0x2808   :  { %v3305_v32 = vmax.f32 %v3300_v29, 0.0  ;;  %v8748_v33 = vpop.f32.mrb[95].mxu0 }
0x2809   :  { %v9300_v33 = vld [vmem:[%s10902_s3 + $0x360] sm:$0xff]  }
0x280a   :  { %v3306_v34 = vpack.c.bf16 %v3305_v32, %v3305_v32  ;;  %v9299_v32 = vld [vmem:[%s10902_s3 + $0x358] sm:$0xff]  }
0x280c   :  { %8754 = vmatmul.mubr.msk.bf16.vlgmr.msra.gmra.mrb[92].mxu1 %vm111_vm3, %v3306_v34  ;;  %v7639_v34 = vld [vmem:[%s10903_s4 + $0x34] ss:$0 sm:$0xff] }
0x280d   :  { %8769 = vmatprep.mubr.msk.bf16.mxu1 %vm9419_vm1, %v9418_v2  ;;  %8766 = vmatpush3.bf16.msra.mxu1 %v9288_v36 }
0x280e   :  { %8767 = vmatprep.subr.bf16.mxu1 %v9418_v2 }
0x2811   :  { %8768 = vmatpush3.bf16.msra.mxu1 %v9289_v45 }
0x2812   :  { %8781 = vmatprep.subr.bf16.mxu1 %v9418_v2 }
0x28df   :  { %v3369_v38 = vpop.f32.mrb[92].mxu1 }
0x28e0   :  { %v3370_v39 = vadd.f32 %v7585_v37, %v3369_v38  ;;  %v8755_v40 = vpop.f32.mrb[93].mxu1 }
0x28e1   :  { %v3372_v41 = vpop.f32.mrb[94].mxu1 }
0x28e2   :  { %v3375_v42 = vmax.f32 %v3370_v39, 0.0  ;;  %v8756_v43 = vpop.f32.mrb[95].mxu1 }
0x28e3   :  { %v9302_v43 = vld [vmem:[%s10902_s3 + $0x370] sm:$0xff]  }
0x28e4   :  { %v3376_v44 = vpack.c.bf16 %v3375_v42, %v3375_v42  ;;  %v9301_v42 = vld [vmem:[%s10902_s3 + $0x368] sm:$0xff]  }
0x28e6   :  { %8762 = vmatmul.mubr.msk.bf16.vlgmr.msra.gmra.mrb[96].mxu0 %vm111_vm3, %v3376_v44  ;;  %v7648_v44 = vld [vmem:[%s10903_s4 + $0x35] ss:$0 sm:$0xff] }
0x28e7   :  { %8777 = vmatprep.mubr.msk.bf16.mxu0 %vm9419_vm1, %v9418_v2  ;;  %8774 = vmatpush3.bf16.msra.mxu0 %v9290_v46 }
0x28e8   :  { %8775 = vmatprep.subr.bf16.mxu0 %v9418_v2 }
0x28eb   :  { %8776 = vmatpush3.bf16.msra.mxu0 %v9291_v55 }
0x28ec   :  { %8789 = vmatprep.subr.bf16.mxu0 %v9418_v2 }
0x29b9   :  { %v3439_v48 = vpop.f32.mrb[96].mxu0 }
0x29ba   :  { %v3440_v49 = vadd.f32 %v7594_v47, %v3439_v48  ;;  %v8763_v50 = vpop.f32.mrb[97].mxu0 }
0x29bb   :  { %v3442_v51 = vpop.f32.mrb[98].mxu0 }
0x29bc   :  { %v3445_v52 = vmax.f32 %v3440_v49, 0.0  ;;  %v8764_v53 = vpop.f32.mrb[99].mxu0 }
0x29bd   :  { %v9304_v53 = vld [vmem:[%s10902_s3 + $0x380] sm:$0xff]  }
0x29be   :  { %v3446_v54 = vpack.c.bf16 %v3445_v52, %v3445_v52  ;;  %v9303_v52 = vld [vmem:[%s10902_s3 + $0x378] sm:$0xff]  }
0x29c0   :  { %8770 = vmatmul.mubr.msk.bf16.vlgmr.msra.gmra.mrb[96].mxu1 %vm111_vm3, %v3446_v54  ;;  %v7657_v54 = vld [vmem:[%s10903_s4 + $0x36] ss:$0 sm:$0xff] }
0x29c1   :  { %8785 = vmatprep.mubr.msk.bf16.mxu1 %vm9419_vm1, %v9418_v2  ;;  %8782 = vmatpush3.bf16.msra.mxu1 %v9292_v56 }
0x29c2   :  { %8783 = vmatprep.subr.bf16.mxu1 %v9418_v2 }
0x29c5   :  { %8784 = vmatpush3.bf16.msra.mxu1 %v9293_v1 }
0x29c6   :  { %8797 = vmatprep.subr.bf16.mxu1 %v9418_v2 }
0x2a93   :  { %v3509_v58 = vpop.f32.mrb[96].mxu1 }
0x2a94   :  { %v3510_v59 = vadd.f32 %v7603_v57, %v3509_v58  ;;  %v8771_v60 = vpop.f32.mrb[97].mxu1 }
0x2a95   :  { %v3512_v61 = vpop.f32.mrb[98].mxu1 }
0x2a96   :  { %v3515_v62 = vmax.f32 %v3510_v59, 0.0  ;;  %v8772_v63 = vpop.f32.mrb[99].mxu1 }
0x2a97   :  { %v9306_v63 = vld [vmem:[%s10902_s3 + $0x390] sm:$0xff]  }
0x2a98   :  { %v3516_v0 = vpack.c.bf16 %v3515_v62, %v3515_v62  ;;  %v9305_v62 = vld [vmem:[%s10902_s3 + $0x388] sm:$0xff]  }
0x2a9a   :  { %8778 = vmatmul.mubr.msk.bf16.vlgmr.msra.gmra.mrb[100].mxu0 %vm111_vm3, %v3516_v0  ;;  %v7666_v0 = vld [vmem:[%s10903_s4 + $0x37] ss:$0 sm:$0xff] }
0x2a9b   :  { %8793 = vmatprep.mubr.msk.bf16.mxu0 %vm9419_vm1, %v9418_v2  ;;  %8790 = vmatpush3.bf16.msra.mxu0 %v9294_v3 }
0x2a9c   :  { %8791 = vmatprep.subr.bf16.mxu0 %v9418_v2 }
0x2a9f   :  { %8792 = vmatpush3.bf16.msra.mxu0 %v9295_v12 }
0x2aa0   :  { %8805 = vmatprep.subr.bf16.mxu0 %v9418_v2 }
0x2b6d   :  { %v3579_v5 = vpop.f32.mrb[100].mxu0 }
0x2b6e   :  { %v3580_v6 = vadd.f32 %v7612_v4, %v3579_v5  ;;  %v8779_v7 = vpop.f32.mrb[101].mxu0 }
0x2b6f   :  { %v3582_v8 = vpop.f32.mrb[102].mxu0 }
0x2b70   :  { %v3585_v9 = vmax.f32 %v3580_v6, 0.0  ;;  %v8780_v10 = vpop.f32.mrb[103].mxu0 }
0x2b71   :  { %v9308_v10 = vld [vmem:[%s10902_s3 + $0x3a0] sm:$0xff]  }
0x2b72   :  { %v3586_v11 = vpack.c.bf16 %v3585_v9, %v3585_v9  ;;  %v9307_v9 = vld [vmem:[%s10902_s3 + $0x398] sm:$0xff]  }
0x2b74   :  { %8786 = vmatmul.mubr.msk.bf16.vlgmr.msra.gmra.mrb[100].mxu1 %vm111_vm3, %v3586_v11  ;;  %v7675_v11 = vld [vmem:[%s10903_s4 + $0x38] ss:$0 sm:$0xff] }
0x2b75   :  { %8801 = vmatprep.mubr.msk.bf16.mxu1 %vm9419_vm1, %v9418_v2  ;;  %8798 = vmatpush3.bf16.msra.mxu1 %v9296_v13 }
0x2b76   :  { %8799 = vmatprep.subr.bf16.mxu1 %v9418_v2 }
0x2b79   :  { %8800 = vmatpush3.bf16.msra.mxu1 %v9297_v22 }
0x2b7a   :  { %8813 = vmatprep.subr.bf16.mxu1 %v9418_v2 }
0x2c47   :  { %v3649_v15 = vpop.f32.mrb[100].mxu1 }
0x2c48   :  { %v3650_v16 = vadd.f32 %v7621_v14, %v3649_v15  ;;  %v8787_v17 = vpop.f32.mrb[101].mxu1 }
0x2c49   :  { %v3652_v18 = vpop.f32.mrb[102].mxu1 }
0x2c4a   :  { %v3655_v19 = vmax.f32 %v3650_v16, 0.0  ;;  %v8788_v20 = vpop.f32.mrb[103].mxu1 }
0x2c4b   :  { %v9310_v20 = vld [vmem:[%s10902_s3 + $0x3b0] sm:$0xff]  }
0x2c4c   :  { %v3656_v21 = vpack.c.bf16 %v3655_v19, %v3655_v19  ;;  %v9309_v19 = vld [vmem:[%s10902_s3 + $0x3a8] sm:$0xff]  }
0x2c4e   :  { %8794 = vmatmul.mubr.msk.bf16.vlgmr.msra.gmra.mrb[104].mxu0 %vm111_vm3, %v3656_v21  ;;  %v7684_v21 = vld [vmem:[%s10903_s4 + $0x39] ss:$0 sm:$0xff] }
0x2c4f   :  { %8809 = vmatprep.mubr.msk.bf16.mxu0 %vm9419_vm1, %v9418_v2  ;;  %8806 = vmatpush3.bf16.msra.mxu0 %v9298_v23 }
0x2c50   :  { %8807 = vmatprep.subr.bf16.mxu0 %v9418_v2 }
0x2c53   :  { %8808 = vmatpush3.bf16.msra.mxu0 %v9299_v32 }
0x2c54   :  { %8821 = vmatprep.subr.bf16.mxu0 %v9418_v2 }
0x2d21   :  { %v3719_v25 = vpop.f32.mrb[104].mxu0 }
0x2d22   :  { %v3720_v26 = vadd.f32 %v7630_v24, %v3719_v25  ;;  %v8795_v27 = vpop.f32.mrb[105].mxu0 }
0x2d23   :  { %v3722_v28 = vpop.f32.mrb[106].mxu0 }
0x2d24   :  { %v3725_v29 = vmax.f32 %v3720_v26, 0.0  ;;  %v8796_v30 = vpop.f32.mrb[107].mxu0 }
0x2d25   :  { %v9312_v30 = vld [vmem:[%s10902_s3 + $0x3c0] sm:$0xff]  }
0x2d26   :  { %v3726_v31 = vpack.c.bf16 %v3725_v29, %v3725_v29  ;;  %v9311_v29 = vld [vmem:[%s10902_s3 + $0x3b8] sm:$0xff]  }
0x2d28   :  { %8802 = vmatmul.mubr.msk.bf16.vlgmr.msra.gmra.mrb[104].mxu1 %vm111_vm3, %v3726_v31  ;;  %v7693_v31 = vld [vmem:[%s10903_s4 + $0x3a] ss:$0 sm:$0xff] }
0x2d29   :  { %8817 = vmatprep.mubr.msk.bf16.mxu1 %vm9419_vm1, %v9418_v2  ;;  %8814 = vmatpush3.bf16.msra.mxu1 %v9300_v33 }
0x2d2a   :  { %8815 = vmatprep.subr.bf16.mxu1 %v9418_v2 }
0x2d2d   :  { %8816 = vmatpush3.bf16.msra.mxu1 %v9301_v42 }
0x2d2e   :  { %8829 = vmatprep.subr.bf16.mxu1 %v9418_v2 }
0x2dfb   :  { %v3789_v35 = vpop.f32.mrb[104].mxu1 }
0x2dfc   :  { %v3790_v36 = vadd.f32 %v7639_v34, %v3789_v35  ;;  %v8803_v37 = vpop.f32.mrb[105].mxu1 }
0x2dfd   :  { %v3792_v38 = vpop.f32.mrb[106].mxu1 }
0x2dfe   :  { %v3795_v39 = vmax.f32 %v3790_v36, 0.0  ;;  %v8804_v40 = vpop.f32.mrb[107].mxu1 }
0x2dff   :  { %v9314_v40 = vld [vmem:[%s10902_s3 + $0x3d0] sm:$0xff]  }
0x2e00   :  { %v3796_v41 = vpack.c.bf16 %v3795_v39, %v3795_v39  ;;  %v9313_v39 = vld [vmem:[%s10902_s3 + $0x3c8] sm:$0xff]  }
0x2e02   :  { %8810 = vmatmul.mubr.msk.bf16.vlgmr.msra.gmra.mrb[108].mxu0 %vm111_vm3, %v3796_v41  ;;  %v7702_v41 = vld [vmem:[%s10903_s4 + $0x3b] ss:$0 sm:$0xff] }
0x2e03   :  { %8825 = vmatprep.mubr.msk.bf16.mxu0 %vm9419_vm1, %v9418_v2  ;;  %8822 = vmatpush3.bf16.msra.mxu0 %v9302_v43 }
0x2e04   :  { %8823 = vmatprep.subr.bf16.mxu0 %v9418_v2 }
0x2e07   :  { %8824 = vmatpush3.bf16.msra.mxu0 %v9303_v52 }
0x2e08   :  { %8837 = vmatprep.subr.bf16.mxu0 %v9418_v2 }
0x2ed5   :  { %v3859_v45 = vpop.f32.mrb[108].mxu0 }
0x2ed6   :  { %v3860_v46 = vadd.f32 %v7648_v44, %v3859_v45  ;;  %v8811_v47 = vpop.f32.mrb[109].mxu0 }
0x2ed7   :  { %v3862_v48 = vpop.f32.mrb[110].mxu0 }
0x2ed8   :  { %v3865_v49 = vmax.f32 %v3860_v46, 0.0  ;;  %v8812_v50 = vpop.f32.mrb[111].mxu0 }
0x2ed9   :  { %v9316_v50 = vld [vmem:[%s10902_s3 + $0x3e0] sm:$0xff]  }
0x2eda   :  { %v3866_v51 = vpack.c.bf16 %v3865_v49, %v3865_v49  ;;  %v9315_v49 = vld [vmem:[%s10902_s3 + $0x3d8] sm:$0xff]  }
0x2edc   :  { %8818 = vmatmul.mubr.msk.bf16.vlgmr.msra.gmra.mrb[108].mxu1 %vm111_vm3, %v3866_v51  ;;  %v7711_v51 = vld [vmem:[%s10903_s4 + $0x3c] ss:$0 sm:$0xff] }
0x2edd   :  { %8833 = vmatprep.mubr.msk.bf16.mxu1 %vm9419_vm1, %v9418_v2  ;;  %8830 = vmatpush3.bf16.msra.mxu1 %v9304_v53 }
0x2ede   :  { %8831 = vmatprep.subr.bf16.mxu1 %v9418_v2 }
0x2ee1   :  { %8832 = vmatpush3.bf16.msra.mxu1 %v9305_v62 }
0x2ee2   :  { %8845 = vmatprep.subr.bf16.mxu1 %v9418_v2 }
0x2faf   :  { %v3929_v55 = vpop.f32.mrb[108].mxu1 }
0x2fb0   :  { %v3930_v56 = vadd.f32 %v7657_v54, %v3929_v55  ;;  %v8819_v57 = vpop.f32.mrb[109].mxu1 }
0x2fb1   :  { %v3932_v58 = vpop.f32.mrb[110].mxu1 }
0x2fb2   :  { %v3935_v59 = vmax.f32 %v3930_v56, 0.0  ;;  %v8820_v60 = vpop.f32.mrb[111].mxu1 }
0x2fb3   :  { %v9318_v60 = vld [vmem:[%s10902_s3 + $0x3f0] sm:$0xff]  }
0x2fb4   :  { %v3936_v61 = vpack.c.bf16 %v3935_v59, %v3935_v59  ;;  %v9317_v59 = vld [vmem:[%s10902_s3 + $0x3e8] sm:$0xff]  }
0x2fb6   :  { %8826 = vmatmul.mubr.msk.bf16.vlgmr.msra.gmra.mrb[112].mxu0 %vm111_vm3, %v3936_v61  ;;  %v7720_v61 = vld [vmem:[%s10903_s4 + $0x3d] ss:$0 sm:$0xff] }
0x2fb7   :  { %8841 = vmatprep.mubr.msk.bf16.mxu0 %vm9419_vm1, %v9418_v2  ;;  %8838 = vmatpush3.bf16.msra.mxu0 %v9306_v63 }
0x2fb8   :  { %8839 = vmatprep.subr.bf16.mxu0 %v9418_v2 }
0x2fbb   :  { %8840 = vmatpush3.bf16.msra.mxu0 %v9307_v9 }
0x2fbc   :  { %8853 = vmatprep.subr.bf16.mxu0 %v9418_v2 }
0x3089   :  { %v3999_v1 = vpop.f32.mrb[112].mxu0 }
0x308a   :  { %v4000_v3 = vadd.f32 %v7666_v0, %v3999_v1  ;;  %v8827_v4 = vpop.f32.mrb[113].mxu0 }
0x308b   :  { %v4002_v5 = vpop.f32.mrb[114].mxu0 }
0x308c   :  { %v4005_v6 = vmax.f32 %v4000_v3, 0.0  ;;  %v8828_v7 = vpop.f32.mrb[115].mxu0 }
0x308d   :  { %v9320_v7 = vld [vmem:[%s10902_s3 + $0x400] sm:$0xff]  }
0x308e   :  { %v4006_v8 = vpack.c.bf16 %v4005_v6, %v4005_v6  ;;  %v9319_v6 = vld [vmem:[%s10902_s3 + $0x3f8] sm:$0xff]  }
0x3090   :  { %8834 = vmatmul.mubr.msk.bf16.vlgmr.msra.gmra.mrb[112].mxu1 %vm111_vm3, %v4006_v8  ;;  %v7729_v8 = vld [vmem:[%s10903_s4 + $0x3e] ss:$0 sm:$0xff] }
0x3091   :  { %8849 = vmatprep.mubr.msk.bf16.mxu1 %vm9419_vm1, %v9418_v2  ;;  %8846 = vmatpush3.bf16.msra.mxu1 %v9308_v10 }
0x3092   :  { %8847 = vmatprep.subr.bf16.mxu1 %v9418_v2 }
0x3095   :  { %8848 = vmatpush3.bf16.msra.mxu1 %v9309_v19 }
0x3096   :  { %8861 = vmatprep.subr.bf16.mxu1 %v9418_v2 }
0x3163   :  { %v4069_v12 = vpop.f32.mrb[112].mxu1 }
0x3164   :  { %v4070_v13 = vadd.f32 %v7675_v11, %v4069_v12  ;;  %v8835_v14 = vpop.f32.mrb[113].mxu1 }
0x3165   :  { %v4072_v15 = vpop.f32.mrb[114].mxu1 }
0x3166   :  { %v4075_v16 = vmax.f32 %v4070_v13, 0.0  ;;  %v8836_v17 = vpop.f32.mrb[115].mxu1 }
0x3167   :  { %v9322_v17 = vld [vmem:[%s10902_s3 + $0x410] sm:$0xff]  }
0x3168   :  { %v4076_v18 = vpack.c.bf16 %v4075_v16, %v4075_v16  ;;  %v9321_v16 = vld [vmem:[%s10902_s3 + $0x408] sm:$0xff]  }
0x316a   :  { %8842 = vmatmul.mubr.msk.bf16.vlgmr.msra.gmra.mrb[116].mxu0 %vm111_vm3, %v4076_v18  ;;  %v7738_v18 = vld [vmem:[%s10903_s4 + $0x3f] ss:$0 sm:$0xff] }
0x316b   :  { %8857 = vmatprep.mubr.msk.bf16.mxu0 %vm9419_vm1, %v9418_v2  ;;  %8854 = vmatpush3.bf16.msra.mxu0 %v9310_v20 }
0x316c   :  { %8855 = vmatprep.subr.bf16.mxu0 %v9418_v2 }
0x316f   :  { %8856 = vmatpush3.bf16.msra.mxu0 %v9311_v29 }
0x3170   :  { %8869 = vmatprep.subr.bf16.mxu0 %v9418_v2 }
0x323d   :  { %v4139_v22 = vpop.f32.mrb[116].mxu0 }
0x323e   :  { %v4140_v23 = vadd.f32 %v7684_v21, %v4139_v22  ;;  %v8843_v24 = vpop.f32.mrb[117].mxu0 }
0x323f   :  { %v4142_v25 = vpop.f32.mrb[118].mxu0 }
0x3240   :  { %v4145_v26 = vmax.f32 %v4140_v23, 0.0  ;;  %v8844_v27 = vpop.f32.mrb[119].mxu0 }
0x3241   :  { %v9324_v27 = vld [vmem:[%s10902_s3 + $0x420] sm:$0xff]  }
0x3242   :  { %v4146_v28 = vpack.c.bf16 %v4145_v26, %v4145_v26  ;;  %v9323_v26 = vld [vmem:[%s10902_s3 + $0x418] sm:$0xff]  }
0x3244   :  { %8850 = vmatmul.mubr.msk.bf16.vlgmr.msra.gmra.mrb[116].mxu1 %vm111_vm3, %v4146_v28  ;;  %v7747_v28 = vld [vmem:[%s10903_s4 + $0x40] ss:$0 sm:$0xff] }
0x3245   :  { %8865 = vmatprep.mubr.msk.bf16.mxu1 %vm9419_vm1, %v9418_v2  ;;  %8862 = vmatpush3.bf16.msra.mxu1 %v9312_v30 }
0x3246   :  { %8863 = vmatprep.subr.bf16.mxu1 %v9418_v2 }
0x3249   :  { %8864 = vmatpush3.bf16.msra.mxu1 %v9313_v39 }
0x324a   :  { %8877 = vmatprep.subr.bf16.mxu1 %v9418_v2 }
0x3317   :  { %v4209_v32 = vpop.f32.mrb[116].mxu1 }
0x3318   :  { %v4210_v33 = vadd.f32 %v7693_v31, %v4209_v32  ;;  %v8851_v34 = vpop.f32.mrb[117].mxu1 }
0x3319   :  { %v4212_v35 = vpop.f32.mrb[118].mxu1 }
0x331a   :  { %v4215_v36 = vmax.f32 %v4210_v33, 0.0  ;;  %v8852_v37 = vpop.f32.mrb[119].mxu1 }
0x331b   :  { %v9326_v37 = vld [vmem:[%s10902_s3 + $0x430] sm:$0xff]  }
0x331c   :  { %v4216_v38 = vpack.c.bf16 %v4215_v36, %v4215_v36  ;;  %v9325_v36 = vld [vmem:[%s10902_s3 + $0x428] sm:$0xff]  }
0x331e   :  { %8858 = vmatmul.mubr.msk.bf16.vlgmr.msra.gmra.mrb[120].mxu0 %vm111_vm3, %v4216_v38  ;;  %v7756_v38 = vld [vmem:[%s10903_s4 + $0x41] ss:$0 sm:$0xff] }
0x331f   :  { %8873 = vmatprep.mubr.msk.bf16.mxu0 %vm9419_vm1, %v9418_v2  ;;  %8870 = vmatpush3.bf16.msra.mxu0 %v9314_v40 }
0x3320   :  { %8871 = vmatprep.subr.bf16.mxu0 %v9418_v2 }
0x3323   :  { %8872 = vmatpush3.bf16.msra.mxu0 %v9315_v49 }
0x3324   :  { %8885 = vmatprep.subr.bf16.mxu0 %v9418_v2 }
0x33f1   :  { %v4279_v42 = vpop.f32.mrb[120].mxu0 }
0x33f2   :  { %v4280_v43 = vadd.f32 %v7702_v41, %v4279_v42  ;;  %v8859_v44 = vpop.f32.mrb[121].mxu0 }
0x33f3   :  { %v4282_v45 = vpop.f32.mrb[122].mxu0 }
0x33f4   :  { %v4285_v46 = vmax.f32 %v4280_v43, 0.0  ;;  %v8860_v47 = vpop.f32.mrb[123].mxu0 }
0x33f5   :  { %v9328_v47 = vld [vmem:[%s10902_s3 + $0x440] sm:$0xff]  }
0x33f6   :  { %v4286_v48 = vpack.c.bf16 %v4285_v46, %v4285_v46  ;;  %v9327_v46 = vld [vmem:[%s10902_s3 + $0x438] sm:$0xff]  }
0x33f8   :  { %8866 = vmatmul.mubr.msk.bf16.vlgmr.msra.gmra.mrb[120].mxu1 %vm111_vm3, %v4286_v48  ;;  %v7765_v48 = vld [vmem:[%s10903_s4 + $0x42] ss:$0 sm:$0xff] }
0x33f9   :  { %8881 = vmatprep.mubr.msk.bf16.mxu1 %vm9419_vm1, %v9418_v2  ;;  %8878 = vmatpush3.bf16.msra.mxu1 %v9316_v50 }
0x33fa   :  { %8879 = vmatprep.subr.bf16.mxu1 %v9418_v2 }
0x33fd   :  { %8880 = vmatpush3.bf16.msra.mxu1 %v9317_v59 }
0x33fe   :  { %8893 = vmatprep.subr.bf16.mxu1 %v9418_v2 }
0x34cb   :  { %v4349_v52 = vpop.f32.mrb[120].mxu1 }
0x34cc   :  { %v4350_v53 = vadd.f32 %v7711_v51, %v4349_v52  ;;  %v8867_v54 = vpop.f32.mrb[121].mxu1 }
0x34cd   :  { %v4352_v55 = vpop.f32.mrb[122].mxu1 }
0x34ce   :  { %v4355_v56 = vmax.f32 %v4350_v53, 0.0  ;;  %v8868_v57 = vpop.f32.mrb[123].mxu1 }
0x34cf   :  { %v9330_v57 = vld [vmem:[%s10902_s3 + $0x450] sm:$0xff]  }
0x34d0   :  { %v4356_v58 = vpack.c.bf16 %v4355_v56, %v4355_v56  ;;  %v9329_v56 = vld [vmem:[%s10902_s3 + $0x448] sm:$0xff]  }
0x34d2   :  { %8874 = vmatmul.mubr.msk.bf16.vlgmr.msra.gmra.mrb[124].mxu0 %vm111_vm3, %v4356_v58  ;;  %v7774_v58 = vld [vmem:[%s10903_s4 + $0x43] ss:$0 sm:$0xff] }
0x34d3   :  { %8889 = vmatprep.mubr.msk.bf16.mxu0 %vm9419_vm1, %v9418_v2  ;;  %8886 = vmatpush3.bf16.msra.mxu0 %v9318_v60 }
0x34d4   :  { %8887 = vmatprep.subr.bf16.mxu0 %v9418_v2 }
0x34d7   :  { %8888 = vmatpush3.bf16.msra.mxu0 %v9319_v6 }
0x34d8   :  { %8901 = vmatprep.subr.bf16.mxu0 %v9418_v2 }
0x35a5   :  { %v4419_v62 = vpop.f32.mrb[124].mxu0 }
0x35a6   :  { %v4420_v63 = vadd.f32 %v7720_v61, %v4419_v62  ;;  %v8875_v0 = vpop.f32.mrb[125].mxu0 }
0x35a7   :  { %v4422_v1 = vpop.f32.mrb[126].mxu0 }
0x35a8   :  { %v4425_v3 = vmax.f32 %v4420_v63, 0.0  ;;  %v8876_v4 = vpop.f32.mrb[127].mxu0 }
0x35a9   :  { %v9332_v4 = vld [vmem:[%s10902_s3 + $0x460] sm:$0xff]  }
0x35aa   :  { %v4426_v5 = vpack.c.bf16 %v4425_v3, %v4425_v3  ;;  %v9331_v3 = vld [vmem:[%s10902_s3 + $0x458] sm:$0xff]  }
0x35ac   :  { %8882 = vmatmul.mubr.msk.bf16.vlgmr.msra.gmra.mrb[124].mxu1 %vm111_vm3, %v4426_v5  ;;  %v7783_v5 = vld [vmem:[%s10903_s4 + $0x44] ss:$0 sm:$0xff] }
0x35ad   :  { %8897 = vmatprep.mubr.msk.bf16.mxu1 %vm9419_vm1, %v9418_v2  ;;  %8894 = vmatpush3.bf16.msra.mxu1 %v9320_v7 }
0x35ae   :  { %8895 = vmatprep.subr.bf16.mxu1 %v9418_v2 }
0x35b1   :  { %8896 = vmatpush3.bf16.msra.mxu1 %v9321_v16 }
0x35b2   :  { %8909 = vmatprep.subr.bf16.mxu1 %v9418_v2 }
0x367f   :  { %v4489_v9 = vpop.f32.mrb[124].mxu1 }
0x3680   :  { %v4490_v10 = vadd.f32 %v7729_v8, %v4489_v9  ;;  %v8883_v11 = vpop.f32.mrb[125].mxu1 }
0x3681   :  { %v4492_v12 = vpop.f32.mrb[126].mxu1 }
0x3682   :  { %v4495_v13 = vmax.f32 %v4490_v10, 0.0  ;;  %v8884_v14 = vpop.f32.mrb[127].mxu1 }
0x3683   :  { %v9334_v14 = vld [vmem:[%s10902_s3 + $0x470] sm:$0xff]  }
0x3684   :  { %v4496_v15 = vpack.c.bf16 %v4495_v13, %v4495_v13  ;;  %v9333_v13 = vld [vmem:[%s10902_s3 + $0x468] sm:$0xff]  }
0x3686   :  { %8890 = vmatmul.mubr.msk.bf16.vlgmr.msra.gmra.mrb[128].mxu0 %vm111_vm3, %v4496_v15  ;;  %v7792_v15 = vld [vmem:[%s10903_s4 + $0x45] ss:$0 sm:$0xff] }
0x3687   :  { %8905 = vmatprep.mubr.msk.bf16.mxu0 %vm9419_vm1, %v9418_v2  ;;  %8902 = vmatpush3.bf16.msra.mxu0 %v9322_v17 }
0x3688   :  { %8903 = vmatprep.subr.bf16.mxu0 %v9418_v2 }
0x368b   :  { %8904 = vmatpush3.bf16.msra.mxu0 %v9323_v26 }
0x368c   :  { %8917 = vmatprep.subr.bf16.mxu0 %v9418_v2 }
0x3759   :  { %v4559_v19 = vpop.f32.mrb[128].mxu0 }
0x375a   :  { %v4560_v20 = vadd.f32 %v7738_v18, %v4559_v19  ;;  %v8891_v21 = vpop.f32.mrb[129].mxu0 }
0x375b   :  { %v4562_v22 = vpop.f32.mrb[130].mxu0 }
0x375c   :  { %v4565_v23 = vmax.f32 %v4560_v20, 0.0  ;;  %v8892_v24 = vpop.f32.mrb[131].mxu0 }
0x375d   :  { %v9336_v24 = vld [vmem:[%s10902_s3 + $0x480] sm:$0xff]  }
0x375e   :  { %v4566_v25 = vpack.c.bf16 %v4565_v23, %v4565_v23  ;;  %v9335_v23 = vld [vmem:[%s10902_s3 + $0x478] sm:$0xff]  }
0x3760   :  { %8898 = vmatmul.mubr.msk.bf16.vlgmr.msra.gmra.mrb[128].mxu1 %vm111_vm3, %v4566_v25  ;;  %v7801_v25 = vld [vmem:[%s10903_s4 + $0x46] ss:$0 sm:$0xff] }
0x3761   :  { %8913 = vmatprep.mubr.msk.bf16.mxu1 %vm9419_vm1, %v9418_v2  ;;  %8910 = vmatpush3.bf16.msra.mxu1 %v9324_v27 }
0x3762   :  { %8911 = vmatprep.subr.bf16.mxu1 %v9418_v2 }
0x3765   :  { %8912 = vmatpush3.bf16.msra.mxu1 %v9325_v36 }
0x3766   :  { %8925 = vmatprep.subr.bf16.mxu1 %v9418_v2 }
0x3833   :  { %v4629_v29 = vpop.f32.mrb[128].mxu1 }
0x3834   :  { %v4630_v30 = vadd.f32 %v7747_v28, %v4629_v29  ;;  %v8899_v31 = vpop.f32.mrb[129].mxu1 }
0x3835   :  { %v4632_v32 = vpop.f32.mrb[130].mxu1 }
0x3836   :  { %v4635_v33 = vmax.f32 %v4630_v30, 0.0  ;;  %v8900_v34 = vpop.f32.mrb[131].mxu1 }
0x3837   :  { %v9338_v34 = vld [vmem:[%s10902_s3 + $0x490] sm:$0xff]  }
0x3838   :  { %v4636_v35 = vpack.c.bf16 %v4635_v33, %v4635_v33  ;;  %v9337_v33 = vld [vmem:[%s10902_s3 + $0x488] sm:$0xff]  }
0x383a   :  { %8906 = vmatmul.mubr.msk.bf16.vlgmr.msra.gmra.mrb[132].mxu0 %vm111_vm3, %v4636_v35  ;;  %v7810_v35 = vld [vmem:[%s10903_s4 + $0x47] ss:$0 sm:$0xff] }
0x383b   :  { %8921 = vmatprep.mubr.msk.bf16.mxu0 %vm9419_vm1, %v9418_v2  ;;  %8918 = vmatpush3.bf16.msra.mxu0 %v9326_v37 }
0x383c   :  { %8919 = vmatprep.subr.bf16.mxu0 %v9418_v2 }
0x383f   :  { %8920 = vmatpush3.bf16.msra.mxu0 %v9327_v46 }
0x3840   :  { %8933 = vmatprep.subr.bf16.mxu0 %v9418_v2 }
0x390d   :  { %v4699_v39 = vpop.f32.mrb[132].mxu0 }
0x390e   :  { %v4700_v40 = vadd.f32 %v7756_v38, %v4699_v39  ;;  %v8907_v41 = vpop.f32.mrb[133].mxu0 }
0x390f   :  { %v4702_v42 = vpop.f32.mrb[134].mxu0 }
0x3910   :  { %v4705_v43 = vmax.f32 %v4700_v40, 0.0  ;;  %v8908_v44 = vpop.f32.mrb[135].mxu0 }
0x3911   :  { %v9340_v44 = vld [vmem:[%s10902_s3 + $0x4a0] sm:$0xff]  }
0x3912   :  { %v4706_v45 = vpack.c.bf16 %v4705_v43, %v4705_v43  ;;  %v9339_v43 = vld [vmem:[%s10902_s3 + $0x498] sm:$0xff]  }
0x3914   :  { %8914 = vmatmul.mubr.msk.bf16.vlgmr.msra.gmra.mrb[132].mxu1 %vm111_vm3, %v4706_v45  ;;  %v7819_v45 = vld [vmem:[%s10903_s4 + $0x48] ss:$0 sm:$0xff] }
0x3915   :  { %8929 = vmatprep.mubr.msk.bf16.mxu1 %vm9419_vm1, %v9418_v2  ;;  %8926 = vmatpush3.bf16.msra.mxu1 %v9328_v47 }
0x3916   :  { %8927 = vmatprep.subr.bf16.mxu1 %v9418_v2 }
0x3919   :  { %8928 = vmatpush3.bf16.msra.mxu1 %v9329_v56 }
0x391a   :  { %8941 = vmatprep.subr.bf16.mxu1 %v9418_v2 }
0x39e7   :  { %v4769_v49 = vpop.f32.mrb[132].mxu1 }
0x39e8   :  { %v4770_v50 = vadd.f32 %v7765_v48, %v4769_v49  ;;  %v8915_v51 = vpop.f32.mrb[133].mxu1 }
0x39e9   :  { %v4772_v52 = vpop.f32.mrb[134].mxu1 }
0x39ea   :  { %v4775_v53 = vmax.f32 %v4770_v50, 0.0  ;;  %v8916_v54 = vpop.f32.mrb[135].mxu1 }
0x39eb   :  { %v9342_v54 = vld [vmem:[%s10902_s3 + $0x4b0] sm:$0xff]  }
0x39ec   :  { %v4776_v55 = vpack.c.bf16 %v4775_v53, %v4775_v53  ;;  %v9341_v53 = vld [vmem:[%s10902_s3 + $0x4a8] sm:$0xff]  }
0x39ee   :  { %8922 = vmatmul.mubr.msk.bf16.vlgmr.msra.gmra.mrb[136].mxu0 %vm111_vm3, %v4776_v55  ;;  %v7828_v55 = vld [vmem:[%s10903_s4 + $0x49] ss:$0 sm:$0xff] }
0x39ef   :  { %8937 = vmatprep.mubr.msk.bf16.mxu0 %vm9419_vm1, %v9418_v2  ;;  %8934 = vmatpush3.bf16.msra.mxu0 %v9330_v57 }
0x39f0   :  { %8935 = vmatprep.subr.bf16.mxu0 %v9418_v2 }
0x39f3   :  { %8936 = vmatpush3.bf16.msra.mxu0 %v9331_v3 }
0x39f4   :  { %8949 = vmatprep.subr.bf16.mxu0 %v9418_v2 }
0x3ac1   :  { %v4839_v59 = vpop.f32.mrb[136].mxu0 }
0x3ac2   :  { %v4840_v60 = vadd.f32 %v7774_v58, %v4839_v59  ;;  %v8923_v61 = vpop.f32.mrb[137].mxu0 }
0x3ac3   :  { %v4842_v62 = vpop.f32.mrb[138].mxu0 }
0x3ac4   :  { %v4845_v63 = vmax.f32 %v4840_v60, 0.0  ;;  %v8924_v0 = vpop.f32.mrb[139].mxu0 }
0x3ac5   :  { %v9344_v0 = vld [vmem:[%s10902_s3 + $0x4c0] sm:$0xff]  }
0x3ac6   :  { %v4846_v1 = vpack.c.bf16 %v4845_v63, %v4845_v63  ;;  %v9343_v63 = vld [vmem:[%s10902_s3 + $0x4b8] sm:$0xff]  }
0x3ac8   :  { %8930 = vmatmul.mubr.msk.bf16.vlgmr.msra.gmra.mrb[136].mxu1 %vm111_vm3, %v4846_v1  ;;  %v7837_v1 = vld [vmem:[%s10903_s4 + $0x4a] ss:$0 sm:$0xff] }
0x3ac9   :  { %8945 = vmatprep.mubr.msk.bf16.mxu1 %vm9419_vm1, %v9418_v2  ;;  %8942 = vmatpush3.bf16.msra.mxu1 %v9332_v4 }
0x3aca   :  { %8943 = vmatprep.subr.bf16.mxu1 %v9418_v2 }
0x3acd   :  { %8944 = vmatpush3.bf16.msra.mxu1 %v9333_v13 }
0x3ace   :  { %8957 = vmatprep.subr.bf16.mxu1 %v9418_v2 }
0x3b9b   :  { %v4909_v6 = vpop.f32.mrb[136].mxu1 }
0x3b9c   :  { %v4910_v7 = vadd.f32 %v7783_v5, %v4909_v6  ;;  %v8931_v8 = vpop.f32.mrb[137].mxu1 }
0x3b9d   :  { %v4912_v9 = vpop.f32.mrb[138].mxu1 }
0x3b9e   :  { %v4915_v10 = vmax.f32 %v4910_v7, 0.0  ;;  %v8932_v11 = vpop.f32.mrb[139].mxu1 }
0x3b9f   :  { %v9346_v11 = vld [vmem:[%s10902_s3 + $0x4d0] sm:$0xff]  }
0x3ba0   :  { %v4916_v12 = vpack.c.bf16 %v4915_v10, %v4915_v10  ;;  %v9345_v10 = vld [vmem:[%s10902_s3 + $0x4c8] sm:$0xff]  }
0x3ba2   :  { %8938 = vmatmul.mubr.msk.bf16.vlgmr.msra.gmra.mrb[140].mxu0 %vm111_vm3, %v4916_v12  ;;  %v7846_v12 = vld [vmem:[%s10903_s4 + $0x4b] ss:$0 sm:$0xff] }
0x3ba3   :  { %8953 = vmatprep.mubr.msk.bf16.mxu0 %vm9419_vm1, %v9418_v2  ;;  %8950 = vmatpush3.bf16.msra.mxu0 %v9334_v14 }
0x3ba4   :  { %8951 = vmatprep.subr.bf16.mxu0 %v9418_v2 }
0x3ba7   :  { %8952 = vmatpush3.bf16.msra.mxu0 %v9335_v23 }
0x3ba8   :  { %8965 = vmatprep.subr.bf16.mxu0 %v9418_v2 }
0x3c75   :  { %v4979_v16 = vpop.f32.mrb[140].mxu0 }
0x3c76   :  { %v4980_v17 = vadd.f32 %v7792_v15, %v4979_v16  ;;  %v8939_v18 = vpop.f32.mrb[141].mxu0 }
0x3c77   :  { %v4982_v19 = vpop.f32.mrb[142].mxu0 }
0x3c78   :  { %v4985_v20 = vmax.f32 %v4980_v17, 0.0  ;;  %v8940_v21 = vpop.f32.mrb[143].mxu0 }
0x3c79   :  { %v9348_v21 = vld [vmem:[%s10902_s3 + $0x4e0] sm:$0xff]  }
0x3c7a   :  { %v4986_v22 = vpack.c.bf16 %v4985_v20, %v4985_v20  ;;  %v9347_v20 = vld [vmem:[%s10902_s3 + $0x4d8] sm:$0xff]  }
0x3c7c   :  { %8946 = vmatmul.mubr.msk.bf16.vlgmr.msra.gmra.mrb[140].mxu1 %vm111_vm3, %v4986_v22  ;;  %v7855_v22 = vld [vmem:[%s10903_s4 + $0x4c] ss:$0 sm:$0xff] }
0x3c7d   :  { %8961 = vmatprep.mubr.msk.bf16.mxu1 %vm9419_vm1, %v9418_v2  ;;  %8958 = vmatpush3.bf16.msra.mxu1 %v9336_v24 }
0x3c7e   :  { %8959 = vmatprep.subr.bf16.mxu1 %v9418_v2 }
0x3c81   :  { %8960 = vmatpush3.bf16.msra.mxu1 %v9337_v33 }
0x3c82   :  { %8973 = vmatprep.subr.bf16.mxu1 %v9418_v2 }
0x3d4f   :  { %v5049_v26 = vpop.f32.mrb[140].mxu1 }
0x3d50   :  { %v5050_v27 = vadd.f32 %v7801_v25, %v5049_v26  ;;  %v8947_v28 = vpop.f32.mrb[141].mxu1 }
0x3d51   :  { %v5052_v29 = vpop.f32.mrb[142].mxu1 }
0x3d52   :  { %v5055_v30 = vmax.f32 %v5050_v27, 0.0  ;;  %v8948_v31 = vpop.f32.mrb[143].mxu1 }
0x3d53   :  { %v9350_v31 = vld [vmem:[%s10902_s3 + $0x4f0] sm:$0xff]  }
0x3d54   :  { %v5056_v32 = vpack.c.bf16 %v5055_v30, %v5055_v30  ;;  %v9349_v30 = vld [vmem:[%s10902_s3 + $0x4e8] sm:$0xff]  }
0x3d56   :  { %8954 = vmatmul.mubr.msk.bf16.vlgmr.msra.gmra.mrb[144].mxu0 %vm111_vm3, %v5056_v32  ;;  %v7864_v32 = vld [vmem:[%s10903_s4 + $0x4d] ss:$0 sm:$0xff] }
0x3d57   :  { %8969 = vmatprep.mubr.msk.bf16.mxu0 %vm9419_vm1, %v9418_v2  ;;  %8966 = vmatpush3.bf16.msra.mxu0 %v9338_v34 }
0x3d58   :  { %8967 = vmatprep.subr.bf16.mxu0 %v9418_v2 }
0x3d5b   :  { %8968 = vmatpush3.bf16.msra.mxu0 %v9339_v43 }
0x3d5c   :  { %8981 = vmatprep.subr.bf16.mxu0 %v9418_v2 }
0x3e29   :  { %v5119_v36 = vpop.f32.mrb[144].mxu0 }
0x3e2a   :  { %v5120_v37 = vadd.f32 %v7810_v35, %v5119_v36  ;;  %v8955_v38 = vpop.f32.mrb[145].mxu0 }
0x3e2b   :  { %v5122_v39 = vpop.f32.mrb[146].mxu0 }
0x3e2c   :  { %v5125_v40 = vmax.f32 %v5120_v37, 0.0  ;;  %v8956_v41 = vpop.f32.mrb[147].mxu0 }
0x3e2d   :  { %v9352_v41 = vld [vmem:[%s10902_s3 + $0x500] sm:$0xff]  }
0x3e2e   :  { %v5126_v42 = vpack.c.bf16 %v5125_v40, %v5125_v40  ;;  %v9351_v40 = vld [vmem:[%s10902_s3 + $0x4f8] sm:$0xff]  }
0x3e30   :  { %8962 = vmatmul.mubr.msk.bf16.vlgmr.msra.gmra.mrb[144].mxu1 %vm111_vm3, %v5126_v42  ;;  %v7873_v42 = vld [vmem:[%s10903_s4 + $0x4e] ss:$0 sm:$0xff] }
0x3e31   :  { %8977 = vmatprep.mubr.msk.bf16.mxu1 %vm9419_vm1, %v9418_v2  ;;  %8974 = vmatpush3.bf16.msra.mxu1 %v9340_v44 }
0x3e32   :  { %8975 = vmatprep.subr.bf16.mxu1 %v9418_v2 }
0x3e35   :  { %8976 = vmatpush3.bf16.msra.mxu1 %v9341_v53 }
0x3e36   :  { %8989 = vmatprep.subr.bf16.mxu1 %v9418_v2 }
0x3f03   :  { %v5189_v46 = vpop.f32.mrb[144].mxu1 }
0x3f04   :  { %v5190_v47 = vadd.f32 %v7819_v45, %v5189_v46  ;;  %v8963_v48 = vpop.f32.mrb[145].mxu1 }
0x3f05   :  { %v5192_v49 = vpop.f32.mrb[146].mxu1 }
0x3f06   :  { %v5195_v50 = vmax.f32 %v5190_v47, 0.0  ;;  %v8964_v51 = vpop.f32.mrb[147].mxu1 }
0x3f07   :  { %v9354_v51 = vld [vmem:[%s10902_s3 + $0x510] sm:$0xff]  }
0x3f08   :  { %v5196_v52 = vpack.c.bf16 %v5195_v50, %v5195_v50  ;;  %v9353_v50 = vld [vmem:[%s10902_s3 + $0x508] sm:$0xff]  }
0x3f0a   :  { %8970 = vmatmul.mubr.msk.bf16.vlgmr.msra.gmra.mrb[148].mxu0 %vm111_vm3, %v5196_v52  ;;  %v7882_v52 = vld [vmem:[%s10903_s4 + $0x4f] ss:$0 sm:$0xff] }
0x3f0b   :  { %8985 = vmatprep.mubr.msk.bf16.mxu0 %vm9419_vm1, %v9418_v2  ;;  %8982 = vmatpush3.bf16.msra.mxu0 %v9342_v54 }
0x3f0c   :  { %8983 = vmatprep.subr.bf16.mxu0 %v9418_v2 }
0x3f0f   :  { %8984 = vmatpush3.bf16.msra.mxu0 %v9343_v63 }
0x3f10   :  { %8997 = vmatprep.subr.bf16.mxu0 %v9418_v2 }
0x3fdd   :  { %v5259_v56 = vpop.f32.mrb[148].mxu0 }
0x3fde   :  { %v5260_v57 = vadd.f32 %v7828_v55, %v5259_v56  ;;  %v8971_v58 = vpop.f32.mrb[149].mxu0 }
0x3fdf   :  { %v5262_v59 = vpop.f32.mrb[150].mxu0 }
0x3fe0   :  { %v5265_v60 = vmax.f32 %v5260_v57, 0.0  ;;  %v8972_v61 = vpop.f32.mrb[151].mxu0 }
0x3fe1   :  { %v9356_v61 = vld [vmem:[%s10902_s3 + $0x520] sm:$0xff]  }
0x3fe2   :  { %v5266_v62 = vpack.c.bf16 %v5265_v60, %v5265_v60  ;;  %v9355_v60 = vld [vmem:[%s10902_s3 + $0x518] sm:$0xff]  }
0x3fe4   :  { %8978 = vmatmul.mubr.msk.bf16.vlgmr.msra.gmra.mrb[148].mxu1 %vm111_vm3, %v5266_v62  ;;  %v7891_v62 = vld [vmem:[%s10903_s4 + $0x50] ss:$0 sm:$0xff] }
0x3fe5   :  { %8993 = vmatprep.mubr.msk.bf16.mxu1 %vm9419_vm1, %v9418_v2  ;;  %8990 = vmatpush3.bf16.msra.mxu1 %v9344_v0 }
0x3fe6   :  { %8991 = vmatprep.subr.bf16.mxu1 %v9418_v2 }
0x3fe9   :  { %8992 = vmatpush3.bf16.msra.mxu1 %v9345_v10 }
0x3fea   :  { %9005 = vmatprep.subr.bf16.mxu1 %v9418_v2 }
0x40b7   :  { %v5329_v3 = vpop.f32.mrb[148].mxu1 }
0x40b8   :  { %v5330_v4 = vadd.f32 %v7837_v1, %v5329_v3  ;;  %v8979_v5 = vpop.f32.mrb[149].mxu1 }
0x40b9   :  { %v5332_v6 = vpop.f32.mrb[150].mxu1 }
0x40ba   :  { %v5335_v7 = vmax.f32 %v5330_v4, 0.0  ;;  %v8980_v8 = vpop.f32.mrb[151].mxu1 }
0x40bb   :  { %v9358_v8 = vld [vmem:[%s10902_s3 + $0x530] sm:$0xff]  }
0x40bc   :  { %v5336_v9 = vpack.c.bf16 %v5335_v7, %v5335_v7  ;;  %v9357_v7 = vld [vmem:[%s10902_s3 + $0x528] sm:$0xff]  }
0x40be   :  { %8986 = vmatmul.mubr.msk.bf16.vlgmr.msra.gmra.mrb[152].mxu0 %vm111_vm3, %v5336_v9  ;;  %v7900_v9 = vld [vmem:[%s10903_s4 + $0x51] ss:$0 sm:$0xff] }
0x40bf   :  { %9001 = vmatprep.mubr.msk.bf16.mxu0 %vm9419_vm1, %v9418_v2  ;;  %8998 = vmatpush3.bf16.msra.mxu0 %v9346_v11 }
0x40c0   :  { %8999 = vmatprep.subr.bf16.mxu0 %v9418_v2 }
0x40c3   :  { %9000 = vmatpush3.bf16.msra.mxu0 %v9347_v20 }
0x40c4   :  { %9013 = vmatprep.subr.bf16.mxu0 %v9418_v2 }
0x4191   :  { %v5399_v13 = vpop.f32.mrb[152].mxu0 }
0x4192   :  { %v5400_v14 = vadd.f32 %v7846_v12, %v5399_v13  ;;  %v8987_v15 = vpop.f32.mrb[153].mxu0 }
0x4193   :  { %v5402_v16 = vpop.f32.mrb[154].mxu0 }
0x4194   :  { %v5405_v17 = vmax.f32 %v5400_v14, 0.0  ;;  %v8988_v18 = vpop.f32.mrb[155].mxu0 }
0x4195   :  { %v9360_v18 = vld [vmem:[%s10902_s3 + $0x540] sm:$0xff]  }
0x4196   :  { %v5406_v19 = vpack.c.bf16 %v5405_v17, %v5405_v17  ;;  %v9359_v17 = vld [vmem:[%s10902_s3 + $0x538] sm:$0xff]  }
0x4198   :  { %8994 = vmatmul.mubr.msk.bf16.vlgmr.msra.gmra.mrb[152].mxu1 %vm111_vm3, %v5406_v19  ;;  %v7909_v19 = vld [vmem:[%s10903_s4 + $0x52] ss:$0 sm:$0xff] }
0x4199   :  { %9009 = vmatprep.mubr.msk.bf16.mxu1 %vm9419_vm1, %v9418_v2  ;;  %9006 = vmatpush3.bf16.msra.mxu1 %v9348_v21 }
0x419a   :  { %9007 = vmatprep.subr.bf16.mxu1 %v9418_v2 }
0x419d   :  { %9008 = vmatpush3.bf16.msra.mxu1 %v9349_v30 }
0x419e   :  { %9021 = vmatprep.subr.bf16.mxu1 %v9418_v2 }
0x426b   :  { %v5469_v23 = vpop.f32.mrb[152].mxu1 }
0x426c   :  { %v5470_v24 = vadd.f32 %v7855_v22, %v5469_v23  ;;  %v8995_v25 = vpop.f32.mrb[153].mxu1 }
0x426d   :  { %v5472_v26 = vpop.f32.mrb[154].mxu1 }
0x426e   :  { %v5475_v27 = vmax.f32 %v5470_v24, 0.0  ;;  %v8996_v28 = vpop.f32.mrb[155].mxu1 }
0x426f   :  { %v9362_v28 = vld [vmem:[%s10902_s3 + $0x550] sm:$0xff]  }
0x4270   :  { %v5476_v29 = vpack.c.bf16 %v5475_v27, %v5475_v27  ;;  %v9361_v27 = vld [vmem:[%s10902_s3 + $0x548] sm:$0xff]  }
0x4272   :  { %9002 = vmatmul.mubr.msk.bf16.vlgmr.msra.gmra.mrb[156].mxu0 %vm111_vm3, %v5476_v29  ;;  %v7918_v29 = vld [vmem:[%s10903_s4 + $0x53] ss:$0 sm:$0xff] }
0x4273   :  { %9017 = vmatprep.mubr.msk.bf16.mxu0 %vm9419_vm1, %v9418_v2  ;;  %9014 = vmatpush3.bf16.msra.mxu0 %v9350_v31 }
0x4274   :  { %9015 = vmatprep.subr.bf16.mxu0 %v9418_v2 }
0x4277   :  { %9016 = vmatpush3.bf16.msra.mxu0 %v9351_v40 }
0x4278   :  { %9029 = vmatprep.subr.bf16.mxu0 %v9418_v2 }
0x4345   :  { %v5539_v33 = vpop.f32.mrb[156].mxu0 }
0x4346   :  { %v5540_v34 = vadd.f32 %v7864_v32, %v5539_v33  ;;  %v9003_v35 = vpop.f32.mrb[157].mxu0 }
0x4347   :  { %v5542_v36 = vpop.f32.mrb[158].mxu0 }
0x4348   :  { %v5545_v37 = vmax.f32 %v5540_v34, 0.0  ;;  %v9004_v38 = vpop.f32.mrb[159].mxu0 }
0x4349   :  { %v9364_v38 = vld [vmem:[%s10902_s3 + $0x560] sm:$0xff]  }
0x434a   :  { %v5546_v39 = vpack.c.bf16 %v5545_v37, %v5545_v37  ;;  %v9363_v37 = vld [vmem:[%s10902_s3 + $0x558] sm:$0xff]  }
0x434c   :  { %9010 = vmatmul.mubr.msk.bf16.vlgmr.msra.gmra.mrb[156].mxu1 %vm111_vm3, %v5546_v39  ;;  %v7927_v39 = vld [vmem:[%s10903_s4 + $0x54] ss:$0 sm:$0xff] }
0x434d   :  { %9025 = vmatprep.mubr.msk.bf16.mxu1 %vm9419_vm1, %v9418_v2  ;;  %9022 = vmatpush3.bf16.msra.mxu1 %v9352_v41 }
0x434e   :  { %9023 = vmatprep.subr.bf16.mxu1 %v9418_v2 }
0x4351   :  { %9024 = vmatpush3.bf16.msra.mxu1 %v9353_v50 }
0x4352   :  { %9037 = vmatprep.subr.bf16.mxu1 %v9418_v2 }
0x441f   :  { %v5609_v43 = vpop.f32.mrb[156].mxu1 }
0x4420   :  { %v5610_v44 = vadd.f32 %v7873_v42, %v5609_v43  ;;  %v9011_v45 = vpop.f32.mrb[157].mxu1 }
0x4421   :  { %v5612_v46 = vpop.f32.mrb[158].mxu1 }
0x4422   :  { %v5615_v47 = vmax.f32 %v5610_v44, 0.0  ;;  %v9012_v48 = vpop.f32.mrb[159].mxu1 }
0x4423   :  { %v9366_v48 = vld [vmem:[%s10902_s3 + $0x570] sm:$0xff]  }
0x4424   :  { %v5616_v49 = vpack.c.bf16 %v5615_v47, %v5615_v47  ;;  %v9365_v47 = vld [vmem:[%s10902_s3 + $0x568] sm:$0xff]  }
0x4426   :  { %9018 = vmatmul.mubr.msk.bf16.vlgmr.msra.gmra.mrb[160].mxu0 %vm111_vm3, %v5616_v49  ;;  %v7936_v49 = vld [vmem:[%s10903_s4 + $0x55] ss:$0 sm:$0xff] }
0x4427   :  { %9033 = vmatprep.mubr.msk.bf16.mxu0 %vm9419_vm1, %v9418_v2  ;;  %9030 = vmatpush3.bf16.msra.mxu0 %v9354_v51 }
0x4428   :  { %9031 = vmatprep.subr.bf16.mxu0 %v9418_v2 }
0x442b   :  { %9032 = vmatpush3.bf16.msra.mxu0 %v9355_v60 }
0x442c   :  { %9045 = vmatprep.subr.bf16.mxu0 %v9418_v2 }
0x44f9   :  { %v5679_v53 = vpop.f32.mrb[160].mxu0 }
0x44fa   :  { %v5680_v54 = vadd.f32 %v7882_v52, %v5679_v53  ;;  %v9019_v55 = vpop.f32.mrb[161].mxu0 }
0x44fb   :  { %v5682_v56 = vpop.f32.mrb[162].mxu0 }
0x44fc   :  { %v5685_v57 = vmax.f32 %v5680_v54, 0.0  ;;  %v9020_v58 = vpop.f32.mrb[163].mxu0 }
0x44fd   :  { %v9368_v58 = vld [vmem:[%s10902_s3 + $0x580] sm:$0xff]  }
0x44fe   :  { %v5686_v59 = vpack.c.bf16 %v5685_v57, %v5685_v57  ;;  %v9367_v57 = vld [vmem:[%s10902_s3 + $0x578] sm:$0xff]  }
0x4500   :  { %9026 = vmatmul.mubr.msk.bf16.vlgmr.msra.gmra.mrb[160].mxu1 %vm111_vm3, %v5686_v59  ;;  %v7945_v59 = vld [vmem:[%s10903_s4 + $0x56] ss:$0 sm:$0xff] }
0x4501   :  { %9041 = vmatprep.mubr.msk.bf16.mxu1 %vm9419_vm1, %v9418_v2  ;;  %9038 = vmatpush3.bf16.msra.mxu1 %v9356_v61 }
0x4502   :  { %9039 = vmatprep.subr.bf16.mxu1 %v9418_v2 }
0x4505   :  { %9040 = vmatpush3.bf16.msra.mxu1 %v9357_v7 }
0x4506   :  { %9053 = vmatprep.subr.bf16.mxu1 %v9418_v2 }
0x45d3   :  { %v5749_v63 = vpop.f32.mrb[160].mxu1 }
0x45d4   :  { %v5750_v0 = vadd.f32 %v7891_v62, %v5749_v63  ;;  %v9027_v1 = vpop.f32.mrb[161].mxu1 }
0x45d5   :  { %v5752_v3 = vpop.f32.mrb[162].mxu1 }
0x45d6   :  { %v5755_v4 = vmax.f32 %v5750_v0, 0.0  ;;  %v9028_v5 = vpop.f32.mrb[163].mxu1 }
0x45d7   :  { %v9370_v5 = vld [vmem:[%s10902_s3 + $0x590] sm:$0xff]  }
0x45d8   :  { %v5756_v6 = vpack.c.bf16 %v5755_v4, %v5755_v4  ;;  %v9369_v4 = vld [vmem:[%s10902_s3 + $0x588] sm:$0xff]  }
0x45da   :  { %9034 = vmatmul.mubr.msk.bf16.vlgmr.msra.gmra.mrb[164].mxu0 %vm111_vm3, %v5756_v6  ;;  %v7954_v6 = vld [vmem:[%s10903_s4 + $0x57] ss:$0 sm:$0xff] }
0x45db   :  { %9049 = vmatprep.mubr.msk.bf16.mxu0 %vm9419_vm1, %v9418_v2  ;;  %9046 = vmatpush3.bf16.msra.mxu0 %v9358_v8 }
0x45dc   :  { %9047 = vmatprep.subr.bf16.mxu0 %v9418_v2 }
0x45df   :  { %9048 = vmatpush3.bf16.msra.mxu0 %v9359_v17 }
0x45e0   :  { %9061 = vmatprep.subr.bf16.mxu0 %v9418_v2 }
0x46ad   :  { %v5819_v10 = vpop.f32.mrb[164].mxu0 }
0x46ae   :  { %v5820_v11 = vadd.f32 %v7900_v9, %v5819_v10  ;;  %v9035_v12 = vpop.f32.mrb[165].mxu0 }
0x46af   :  { %v5822_v13 = vpop.f32.mrb[166].mxu0 }
0x46b0   :  { %v5825_v14 = vmax.f32 %v5820_v11, 0.0  ;;  %v9036_v15 = vpop.f32.mrb[167].mxu0 }
0x46b1   :  { %v9372_v15 = vld [vmem:[%s10902_s3 + $0x5a0] sm:$0xff]  }
0x46b2   :  { %v5826_v16 = vpack.c.bf16 %v5825_v14, %v5825_v14  ;;  %v9371_v14 = vld [vmem:[%s10902_s3 + $0x598] sm:$0xff]  }
0x46b4   :  { %9042 = vmatmul.mubr.msk.bf16.vlgmr.msra.gmra.mrb[164].mxu1 %vm111_vm3, %v5826_v16  ;;  %v7963_v16 = vld [vmem:[%s10903_s4 + $0x58] ss:$0 sm:$0xff] }
0x46b5   :  { %9057 = vmatprep.mubr.msk.bf16.mxu1 %vm9419_vm1, %v9418_v2  ;;  %9054 = vmatpush3.bf16.msra.mxu1 %v9360_v18 }
0x46b6   :  { %9055 = vmatprep.subr.bf16.mxu1 %v9418_v2 }
0x46b9   :  { %9056 = vmatpush3.bf16.msra.mxu1 %v9361_v27 }
0x46ba   :  { %9069 = vmatprep.subr.bf16.mxu1 %v9418_v2 }
0x4787   :  { %v5889_v20 = vpop.f32.mrb[164].mxu1 }
0x4788   :  { %v5890_v21 = vadd.f32 %v7909_v19, %v5889_v20  ;;  %v9043_v22 = vpop.f32.mrb[165].mxu1 }
0x4789   :  { %v5892_v23 = vpop.f32.mrb[166].mxu1 }
0x478a   :  { %v5895_v24 = vmax.f32 %v5890_v21, 0.0  ;;  %v9044_v25 = vpop.f32.mrb[167].mxu1 }
0x478b   :  { %v9374_v25 = vld [vmem:[%s10902_s3 + $0x5b0] sm:$0xff]  }
0x478c   :  { %v5896_v26 = vpack.c.bf16 %v5895_v24, %v5895_v24  ;;  %v9373_v24 = vld [vmem:[%s10902_s3 + $0x5a8] sm:$0xff]  }
0x478e   :  { %9050 = vmatmul.mubr.msk.bf16.vlgmr.msra.gmra.mrb[168].mxu0 %vm111_vm3, %v5896_v26  ;;  %v7972_v26 = vld [vmem:[%s10903_s4 + $0x59] ss:$0 sm:$0xff] }
0x478f   :  { %9065 = vmatprep.mubr.msk.bf16.mxu0 %vm9419_vm1, %v9418_v2  ;;  %9062 = vmatpush3.bf16.msra.mxu0 %v9362_v28 }
0x4790   :  { %9063 = vmatprep.subr.bf16.mxu0 %v9418_v2 }
0x4793   :  { %9064 = vmatpush3.bf16.msra.mxu0 %v9363_v37 }
0x4794   :  { %9077 = vmatprep.subr.bf16.mxu0 %v9418_v2 }
0x4861   :  { %v5959_v30 = vpop.f32.mrb[168].mxu0 }
0x4862   :  { %v5960_v31 = vadd.f32 %v7918_v29, %v5959_v30  ;;  %v9051_v32 = vpop.f32.mrb[169].mxu0 }
0x4863   :  { %v5962_v33 = vpop.f32.mrb[170].mxu0 }
0x4864   :  { %v5965_v34 = vmax.f32 %v5960_v31, 0.0  ;;  %v9052_v35 = vpop.f32.mrb[171].mxu0 }
0x4865   :  { %v9376_v35 = vld [vmem:[%s10902_s3 + $0x5c0] sm:$0xff]  }
0x4866   :  { %v5966_v36 = vpack.c.bf16 %v5965_v34, %v5965_v34  ;;  %v9375_v34 = vld [vmem:[%s10902_s3 + $0x5b8] sm:$0xff]  }
0x4868   :  { %9058 = vmatmul.mubr.msk.bf16.vlgmr.msra.gmra.mrb[168].mxu1 %vm111_vm3, %v5966_v36  ;;  %v7981_v36 = vld [vmem:[%s10903_s4 + $0x5a] ss:$0 sm:$0xff] }
0x4869   :  { %9073 = vmatprep.mubr.msk.bf16.mxu1 %vm9419_vm1, %v9418_v2  ;;  %9070 = vmatpush3.bf16.msra.mxu1 %v9364_v38 }
0x486a   :  { %9071 = vmatprep.subr.bf16.mxu1 %v9418_v2 }
0x486d   :  { %9072 = vmatpush3.bf16.msra.mxu1 %v9365_v47 }
0x486e   :  { %9085 = vmatprep.subr.bf16.mxu1 %v9418_v2 }
0x493b   :  { %v6029_v40 = vpop.f32.mrb[168].mxu1 }
0x493c   :  { %v6030_v41 = vadd.f32 %v7927_v39, %v6029_v40  ;;  %v9059_v42 = vpop.f32.mrb[169].mxu1 }
0x493d   :  { %v6032_v43 = vpop.f32.mrb[170].mxu1 }
0x493e   :  { %v6035_v44 = vmax.f32 %v6030_v41, 0.0  ;;  %v9060_v45 = vpop.f32.mrb[171].mxu1 }
0x493f   :  { %v9378_v45 = vld [vmem:[%s10902_s3 + $0x5d0] sm:$0xff]  }
0x4940   :  { %v6036_v46 = vpack.c.bf16 %v6035_v44, %v6035_v44  ;;  %v9377_v44 = vld [vmem:[%s10902_s3 + $0x5c8] sm:$0xff]  }
0x4942   :  { %9066 = vmatmul.mubr.msk.bf16.vlgmr.msra.gmra.mrb[172].mxu0 %vm111_vm3, %v6036_v46  ;;  %v7990_v46 = vld [vmem:[%s10903_s4 + $0x5b] ss:$0 sm:$0xff] }
0x4943   :  { %9081 = vmatprep.mubr.msk.bf16.mxu0 %vm9419_vm1, %v9418_v2  ;;  %9078 = vmatpush3.bf16.msra.mxu0 %v9366_v48 }
0x4944   :  { %9079 = vmatprep.subr.bf16.mxu0 %v9418_v2 }
0x4947   :  { %9080 = vmatpush3.bf16.msra.mxu0 %v9367_v57 }
0x4948   :  { %9093 = vmatprep.subr.bf16.mxu0 %v9418_v2 }
0x4a15   :  { %v6099_v50 = vpop.f32.mrb[172].mxu0 }
0x4a16   :  { %v6100_v51 = vadd.f32 %v7936_v49, %v6099_v50  ;;  %v9067_v52 = vpop.f32.mrb[173].mxu0 }
0x4a17   :  { %v6102_v53 = vpop.f32.mrb[174].mxu0 }
0x4a18   :  { %v6105_v54 = vmax.f32 %v6100_v51, 0.0  ;;  %v9068_v55 = vpop.f32.mrb[175].mxu0 }
0x4a19   :  { %v9380_v55 = vld [vmem:[%s10902_s3 + $0x5e0] sm:$0xff]  }
0x4a1a   :  { %v6106_v56 = vpack.c.bf16 %v6105_v54, %v6105_v54  ;;  %v9379_v54 = vld [vmem:[%s10902_s3 + $0x5d8] sm:$0xff]  }
0x4a1c   :  { %9074 = vmatmul.mubr.msk.bf16.vlgmr.msra.gmra.mrb[172].mxu1 %vm111_vm3, %v6106_v56  ;;  %v7999_v56 = vld [vmem:[%s10903_s4 + $0x5c] ss:$0 sm:$0xff] }
0x4a1d   :  { %9089 = vmatprep.mubr.msk.bf16.mxu1 %vm9419_vm1, %v9418_v2  ;;  %9086 = vmatpush3.bf16.msra.mxu1 %v9368_v58 }
0x4a1e   :  { %9087 = vmatprep.subr.bf16.mxu1 %v9418_v2 }
0x4a21   :  { %9088 = vmatpush3.bf16.msra.mxu1 %v9369_v4 }
0x4a22   :  { %9101 = vmatprep.subr.bf16.mxu1 %v9418_v2 }
0x4aef   :  { %v6169_v60 = vpop.f32.mrb[172].mxu1 }
0x4af0   :  { %v6170_v61 = vadd.f32 %v7945_v59, %v6169_v60  ;;  %v9075_v62 = vpop.f32.mrb[173].mxu1 }
0x4af1   :  { %v6172_v63 = vpop.f32.mrb[174].mxu1 }
0x4af2   :  { %v6175_v0 = vmax.f32 %v6170_v61, 0.0  ;;  %v9076_v1 = vpop.f32.mrb[175].mxu1 }
0x4af3   :  { %v9382_v1 = vld [vmem:[%s10902_s3 + $0x5f0] sm:$0xff]  }
0x4af4   :  { %v6176_v3 = vpack.c.bf16 %v6175_v0, %v6175_v0  ;;  %v9381_v0 = vld [vmem:[%s10902_s3 + $0x5e8] sm:$0xff]  }
0x4af6   :  { %9082 = vmatmul.mubr.msk.bf16.vlgmr.msra.gmra.mrb[176].mxu0 %vm111_vm3, %v6176_v3  ;;  %v8008_v3 = vld [vmem:[%s10903_s4 + $0x5d] ss:$0 sm:$0xff] }
0x4af7   :  { %9097 = vmatprep.mubr.msk.bf16.mxu0 %vm9419_vm1, %v9418_v2  ;;  %9094 = vmatpush3.bf16.msra.mxu0 %v9370_v5 }
0x4af8   :  { %9095 = vmatprep.subr.bf16.mxu0 %v9418_v2 }
0x4afb   :  { %9096 = vmatpush3.bf16.msra.mxu0 %v9371_v14 }
0x4afc   :  { %9109 = vmatprep.subr.bf16.mxu0 %v9418_v2 }
0x4bc9   :  { %v6239_v7 = vpop.f32.mrb[176].mxu0 }
0x4bca   :  { %v6240_v8 = vadd.f32 %v7954_v6, %v6239_v7  ;;  %v9083_v9 = vpop.f32.mrb[177].mxu0 }
0x4bcb   :  { %v6242_v10 = vpop.f32.mrb[178].mxu0 }
0x4bcc   :  { %v6245_v11 = vmax.f32 %v6240_v8, 0.0  ;;  %v9084_v12 = vpop.f32.mrb[179].mxu0 }
0x4bcd   :  { %v9384_v12 = vld [vmem:[%s10902_s3 + $0x600] sm:$0xff]  }
0x4bce   :  { %v6246_v13 = vpack.c.bf16 %v6245_v11, %v6245_v11  ;;  %v9383_v11 = vld [vmem:[%s10902_s3 + $0x5f8] sm:$0xff]  }
0x4bd0   :  { %9090 = vmatmul.mubr.msk.bf16.vlgmr.msra.gmra.mrb[176].mxu1 %vm111_vm3, %v6246_v13  ;;  %v8017_v13 = vld [vmem:[%s10903_s4 + $0x5e] ss:$0 sm:$0xff] }
0x4bd1   :  { %9105 = vmatprep.mubr.msk.bf16.mxu1 %vm9419_vm1, %v9418_v2  ;;  %9102 = vmatpush3.bf16.msra.mxu1 %v9372_v15 }
0x4bd2   :  { %9103 = vmatprep.subr.bf16.mxu1 %v9418_v2 }
0x4bd5   :  { %9104 = vmatpush3.bf16.msra.mxu1 %v9373_v24 }
0x4bd6   :  { %9117 = vmatprep.subr.bf16.mxu1 %v9418_v2 }
0x4ca3   :  { %v6309_v17 = vpop.f32.mrb[176].mxu1 }
0x4ca4   :  { %v6310_v18 = vadd.f32 %v7963_v16, %v6309_v17  ;;  %v9091_v19 = vpop.f32.mrb[177].mxu1 }
0x4ca5   :  { %v6312_v20 = vpop.f32.mrb[178].mxu1 }
0x4ca6   :  { %v6315_v21 = vmax.f32 %v6310_v18, 0.0  ;;  %v9092_v22 = vpop.f32.mrb[179].mxu1 }
0x4ca7   :  { %v9386_v22 = vld [vmem:[%s10902_s3 + $0x610] sm:$0xff]  }
0x4ca8   :  { %v6316_v23 = vpack.c.bf16 %v6315_v21, %v6315_v21  ;;  %v9385_v21 = vld [vmem:[%s10902_s3 + $0x608] sm:$0xff]  }
0x4caa   :  { %9098 = vmatmul.mubr.msk.bf16.vlgmr.msra.gmra.mrb[180].mxu0 %vm111_vm3, %v6316_v23  ;;  %v8026_v23 = vld [vmem:[%s10903_s4 + $0x5f] ss:$0 sm:$0xff] }
0x4cab   :  { %9113 = vmatprep.mubr.msk.bf16.mxu0 %vm9419_vm1, %v9418_v2  ;;  %9110 = vmatpush3.bf16.msra.mxu0 %v9374_v25 }
0x4cac   :  { %9111 = vmatprep.subr.bf16.mxu0 %v9418_v2 }
0x4caf   :  { %9112 = vmatpush3.bf16.msra.mxu0 %v9375_v34 }
0x4cb0   :  { %9125 = vmatprep.subr.bf16.mxu0 %v9418_v2 }
0x4d7d   :  { %v6379_v27 = vpop.f32.mrb[180].mxu0 }
0x4d7e   :  { %v6380_v28 = vadd.f32 %v7972_v26, %v6379_v27  ;;  %v9099_v29 = vpop.f32.mrb[181].mxu0 }
0x4d7f   :  { %v6382_v30 = vpop.f32.mrb[182].mxu0 }
0x4d80   :  { %v6385_v31 = vmax.f32 %v6380_v28, 0.0  ;;  %v9100_v32 = vpop.f32.mrb[183].mxu0 }
0x4d81   :  { %v9388_v32 = vld [vmem:[%s10902_s3 + $0x620] sm:$0xff]  }
0x4d82   :  { %v6386_v33 = vpack.c.bf16 %v6385_v31, %v6385_v31  ;;  %v9387_v31 = vld [vmem:[%s10902_s3 + $0x618] sm:$0xff]  }
0x4d84   :  { %9106 = vmatmul.mubr.msk.bf16.vlgmr.msra.gmra.mrb[180].mxu1 %vm111_vm3, %v6386_v33  ;;  %v8035_v33 = vld [vmem:[%s10903_s4 + $0x60] ss:$0 sm:$0xff] }
0x4d85   :  { %9121 = vmatprep.mubr.msk.bf16.mxu1 %vm9419_vm1, %v9418_v2  ;;  %9118 = vmatpush3.bf16.msra.mxu1 %v9376_v35 }
0x4d86   :  { %9119 = vmatprep.subr.bf16.mxu1 %v9418_v2 }
0x4d89   :  { %9120 = vmatpush3.bf16.msra.mxu1 %v9377_v44 }
0x4d8a   :  { %9133 = vmatprep.subr.bf16.mxu1 %v9418_v2 }
0x4e57   :  { %v6449_v37 = vpop.f32.mrb[180].mxu1 }
0x4e58   :  { %v6450_v38 = vadd.f32 %v7981_v36, %v6449_v37  ;;  %v9107_v39 = vpop.f32.mrb[181].mxu1 }
0x4e59   :  { %v6452_v40 = vpop.f32.mrb[182].mxu1 }
0x4e5a   :  { %v6455_v41 = vmax.f32 %v6450_v38, 0.0  ;;  %v9108_v42 = vpop.f32.mrb[183].mxu1 }
0x4e5b   :  { %v9390_v42 = vld [vmem:[%s10902_s3 + $0x630] sm:$0xff]  }
0x4e5c   :  { %v6456_v43 = vpack.c.bf16 %v6455_v41, %v6455_v41  ;;  %v9389_v41 = vld [vmem:[%s10902_s3 + $0x628] sm:$0xff]  }
0x4e5e   :  { %9114 = vmatmul.mubr.msk.bf16.vlgmr.msra.gmra.mrb[184].mxu0 %vm111_vm3, %v6456_v43  ;;  %v8044_v43 = vld [vmem:[%s10903_s4 + $0x61] ss:$0 sm:$0xff] }
0x4e5f   :  { %9129 = vmatprep.mubr.msk.bf16.mxu0 %vm9419_vm1, %v9418_v2  ;;  %9126 = vmatpush3.bf16.msra.mxu0 %v9378_v45 }
0x4e60   :  { %9127 = vmatprep.subr.bf16.mxu0 %v9418_v2 }
0x4e63   :  { %9128 = vmatpush3.bf16.msra.mxu0 %v9379_v54 }
0x4e64   :  { %9141 = vmatprep.subr.bf16.mxu0 %v9418_v2 }
0x4f31   :  { %v6519_v47 = vpop.f32.mrb[184].mxu0 }
0x4f32   :  { %v6520_v48 = vadd.f32 %v7990_v46, %v6519_v47  ;;  %v9115_v49 = vpop.f32.mrb[185].mxu0 }
0x4f33   :  { %v6522_v50 = vpop.f32.mrb[186].mxu0 }
0x4f34   :  { %v6525_v51 = vmax.f32 %v6520_v48, 0.0  ;;  %v9116_v52 = vpop.f32.mrb[187].mxu0 }
0x4f35   :  { %v9392_v52 = vld [vmem:[%s10904_s5] sm:$0xff]  }
0x4f36   :  { %v6526_v53 = vpack.c.bf16 %v6525_v51, %v6525_v51  ;;  %v9391_v51 = vld [vmem:[%s10902_s3 + $0x638] sm:$0xff]  }
0x4f38   :  { %9122 = vmatmul.mubr.msk.bf16.vlgmr.msra.gmra.mrb[184].mxu1 %vm111_vm3, %v6526_v53  ;;  %v8053_v53 = vld [vmem:[%s10903_s4 + $0x62] ss:$0 sm:$0xff] }
0x4f39   :  { %9137 = vmatprep.mubr.msk.bf16.mxu1 %vm9419_vm1, %v9418_v2  ;;  %9134 = vmatpush3.bf16.msra.mxu1 %v9380_v55 }
0x4f3a   :  { %9135 = vmatprep.subr.bf16.mxu1 %v9418_v2 }
0x4f3d   :  { %9136 = vmatpush3.bf16.msra.mxu1 %v9381_v0 }
0x4f3e   :  { %9149 = vmatprep.subr.bf16.mxu1 %v9418_v2 }
0x500b   :  { %v6589_v57 = vpop.f32.mrb[184].mxu1 }
0x500c   :  { %v6590_v58 = vadd.f32 %v7999_v56, %v6589_v57  ;;  %v9123_v59 = vpop.f32.mrb[185].mxu1 }
0x500d   :  { %v6592_v60 = vpop.f32.mrb[186].mxu1 }
0x500e   :  { %v6595_v61 = vmax.f32 %v6590_v58, 0.0  ;;  %v9124_v62 = vpop.f32.mrb[187].mxu1 }
0x5010   :  { %v6596_v63 = vpack.c.bf16 %v6595_v61, %v6595_v61  ;;  %v9393_v61 = vld [vmem:[%s10904_s5 + $0x8] sm:$0xff]   ;;  %s7161_s5 = sshll.u32 %s9420_s12, 4  ;;  %s7162_s5 = int_to_ptr.vmem [resolvable:$true] %s7161_s5 }
0x5011   :  { %p9399_p1 = scmp.lt.s32.totalorder %s7162_s5, %s7162_s5 }
0x5012   :  { %9130 = vmatmul.mubr.msk.bf16.vlgmr.msra.gmra.mrb[188].mxu0 %vm111_vm3, %v6596_v63 }
0x5013   :  { %9145 = vmatprep.mubr.msk.bf16.mxu0 %vm9419_vm1, %v9418_v2  ;;  %9142 = vmatpush3.bf16.msra.mxu0 %v9382_v1 }
0x5014   :  { %9143 = vmatprep.subr.bf16.mxu0 %v9418_v2 }
0x5017   :  { %9144 = vmatpush3.bf16.msra.mxu0 %v9383_v11 }
0x5018   :  { %9157 = vmatprep.subr.bf16.mxu0 %v9418_v2 }
0x50e5   :  { %v6659_v4 = vpop.f32.mrb[188].mxu0 }
0x50e6   :  { %v6660_v5 = vadd.f32 %v8008_v3, %v6659_v4  ;;  %v9131_v6 = vpop.f32.mrb[189].mxu0 }
0x50e7   :  { %v6662_v7 = vpop.f32.mrb[190].mxu0  ;;  %v8066_v6 = vld [vmem:[%s10905_s6] ss:$0 sm:$0xff] }
0x50e8   :  { %v6665_v8 = vmax.f32 %v6660_v5, 0.0  ;;  %v9132_v9 = vpop.f32.mrb[191].mxu0 }
0x50ea   :  { %v6666_v10 = vpack.c.bf16 %v6665_v8, %v6665_v8 }
0x50ec   :  { %9138 = vmatmul.mubr.msk.bf16.vlgmr.msra.gmra.mrb[188].mxu1 %vm111_vm3, %v6666_v10 }
0x50ed   :  { %9153 = vmatprep.mubr.msk.bf16.mxu1 %vm9419_vm1, %v9418_v2  ;;  %9150 = vmatpush3.bf16.msra.mxu1 %v9384_v12 }
0x50ee   :  { %9151 = vmatprep.subr.bf16.mxu1 %v9418_v2 }
0x50f1   :  { %9152 = vmatpush3.bf16.msra.mxu1 %v9385_v21 }
0x50f2   :  { %9165 = vmatprep.subr.bf16.mxu1 %v9418_v2 }
0x51bf   :  { %v6729_v14 = vpop.f32.mrb[188].mxu1 }
0x51c0   :  { %v6730_v15 = vadd.f32 %v8017_v13, %v6729_v14  ;;  %v9139_v16 = vpop.f32.mrb[189].mxu1 }
0x51c1   :  { %v6732_v17 = vpop.f32.mrb[190].mxu1 }
0x51c2   :  { %v6735_v18 = vmax.f32 %v6730_v15, 0.0  ;;  %v9140_v19 = vpop.f32.mrb[191].mxu1 }
0x51c4   :  { %v6736_v20 = vpack.c.bf16 %v6735_v18, %v6735_v18 }
0x51c6   :  { %9146 = vmatmul.mubr.msk.bf16.vlgmr.msra.gmra.mrb[192].mxu0 %vm111_vm3, %v6736_v20 }
0x51c7   :  { %9161 = vmatprep.mubr.msk.bf16.mxu0 %vm9419_vm1, %v9418_v2  ;;  %9158 = vmatpush3.bf16.msra.mxu0 %v9386_v22 }
0x51c8   :  { %9159 = vmatprep.subr.bf16.mxu0 %v9418_v2 }
0x51cb   :  { %9160 = vmatpush3.bf16.msra.mxu0 %v9387_v31 }
0x51cc   :  { %9173 = vmatprep.subr.bf16.mxu0 %v9418_v2 }
0x5299   :  { %v6799_v24 = vpop.f32.mrb[192].mxu0 }
0x529a   :  { %v6800_v25 = vadd.f32 %v8026_v23, %v6799_v24  ;;  %v9147_v26 = vpop.f32.mrb[193].mxu0 }
0x529b   :  { %v6802_v27 = vpop.f32.mrb[194].mxu0 }
0x529c   :  { %v6805_v28 = vmax.f32 %v6800_v25, 0.0  ;;  %v9148_v29 = vpop.f32.mrb[195].mxu0 }
0x529e   :  { %v6806_v30 = vpack.c.bf16 %v6805_v28, %v6805_v28 }
0x52a0   :  { %9154 = vmatmul.mubr.msk.bf16.vlgmr.msra.gmra.mrb[192].mxu1 %vm111_vm3, %v6806_v30 }
0x52a1   :  { %9169 = vmatprep.mubr.msk.bf16.mxu1 %vm9419_vm1, %v9418_v2  ;;  %9166 = vmatpush3.bf16.msra.mxu1 %v9388_v32 }
0x52a2   :  { %9167 = vmatprep.subr.bf16.mxu1 %v9418_v2 }
0x52a5   :  { %9168 = vmatpush3.bf16.msra.mxu1 %v9389_v41 }
0x52a6   :  { %9181 = vmatprep.subr.bf16.mxu1 %v9418_v2 }
0x5373   :  { %v6869_v34 = vpop.f32.mrb[192].mxu1 }
0x5374   :  { %v6870_v35 = vadd.f32 %v8035_v33, %v6869_v34  ;;  %v9155_v36 = vpop.f32.mrb[193].mxu1 }
0x5375   :  { %v6872_v37 = vpop.f32.mrb[194].mxu1 }
0x5376   :  { %v6875_v38 = vmax.f32 %v6870_v35, 0.0  ;;  %v9156_v39 = vpop.f32.mrb[195].mxu1 }
0x5378   :  { %v6876_v40 = vpack.c.bf16 %v6875_v38, %v6875_v38 }
0x537a   :  { %9162 = vmatmul.mubr.msk.bf16.vlgmr.msra.gmra.mrb[196].mxu0 %vm111_vm3, %v6876_v40 }
0x537b   :  { %9177 = vmatprep.mubr.msk.bf16.mxu0 %vm9419_vm1, %v9418_v2  ;;  %9174 = vmatpush3.bf16.msra.mxu0 %v9390_v42 }
0x537c   :  { %9175 = vmatprep.subr.bf16.mxu0 %v9418_v2 }
0x537f   :  { %9176 = vmatpush3.bf16.msra.mxu0 %v9391_v51 }
0x544d   :  { %v6939_v44 = vpop.f32.mrb[196].mxu0 }
0x544e   :  { %v6940_v45 = vadd.f32 %v8044_v43, %v6939_v44  ;;  %v9163_v46 = vpop.f32.mrb[197].mxu0 }
0x544f   :  { %v6942_v47 = vpop.f32.mrb[198].mxu0 }
0x5450   :  { %v6945_v48 = vmax.f32 %v6940_v45, 0.0  ;;  %v9164_v49 = vpop.f32.mrb[199].mxu0 }
0x5452   :  { %v6946_v50 = vpack.c.bf16 %v6945_v48, %v6945_v48 }
0x5454   :  { %9170 = vmatmul.mubr.msk.bf16.vlgmr.msra.gmra.mrb[196].mxu1 %vm111_vm3, %v6946_v50 }
0x5455   :  { %9185 = vmatprep.mubr.msk.bf16.mxu1 %vm9419_vm1, %v9418_v2  ;;  %9182 = vmatpush3.bf16.msra.mxu1 %v9392_v52 }
0x5456   :  { %9183 = vmatprep.subr.bf16.mxu1 %v9418_v2  ;;  %v8062_v2 = vld [vmem:[%s10903_s4 + $0x63] ss:$0 sm:$0xff]  ;;  %s9394_s4 = scalar_lea.vmem %s7162_s5, 128 }
0x5457   :  { %p9395_p0 = scmp.ne.s32.totalorder %s7162_s5, %s9394_s4  ;;  %p9400_p2 = scmp.lt.s32.totalorder %s9394_s4, %s9394_s4 }
0x5459   :  { %9184 = vmatpush3.bf16.msra.mxu1 %v9393_v61  ;;  %p9401_p3 = por %p9400_p2, %p9399_p1 }
0x545b   :  { %p9402_p4 = pnand %p9401_p3, %p9395_p0 }
0x5527   :  { %v7009_v54 = vpop.f32.mrb[196].mxu1 }
0x5528   :  { %v7010_v55 = vadd.f32 %v8053_v53, %v7009_v54  ;;  %v9171_v56 = vpop.f32.mrb[197].mxu1 }
0x5529   :  { %v7012_v57 = vpop.f32.mrb[198].mxu1 }
0x552a   :  { %v7015_v58 = vmax.f32 %v7010_v55, 0.0  ;;  %v9172_v59 = vpop.f32.mrb[199].mxu1 }
0x552c   :  { %v7016_v60 = vpack.c.bf16 %v7015_v58, %v7015_v58 }
0x552e   :  { %9178 = vmatmul.mubr.msk.bf16.vlgmr.msra.gmra.mrb[200].mxu0 %vm111_vm3, %v7016_v60 }
0x5601   :  { %v7079_v62 = vpop.f32.mrb[200].mxu0 }
0x5602   :  { %v7080_v63 = vadd.f32 %v8062_v2, %v7079_v62  ;;  %v9179_v0 = vpop.f32.mrb[201].mxu0 }
0x5603   :  { %v7082_v1 = vpop.f32.mrb[202].mxu0 }
0x5604   :  { %v7085_v3 = vmax.f32 %v7080_v63, 0.0  ;;  %v9180_v4 = vpop.f32.mrb[203].mxu0 }
0x5606   :  { %v7086_v5 = vpack.c.bf16 %v7085_v3, %v7085_v3 }
0x5608   :  { %9186 = vmatmul.mubr.msk.bf16.vlgmr.msra.gmra.mrb[200].mxu1 %vm111_vm3, %v7086_v5 }
0x56db   :  { %v7147_v7 = vpop.f32.mrb[200].mxu1 }
0x56dc   :  { %v7148_v8 = vadd.f32 %v8066_v6, %v7147_v7  ;;  %v9187_v9 = vpop.f32.mrb[201].mxu1 }
0x56dd   :  { %v7150_v10 = vpop.f32.mrb[202].mxu1 }
0x56de   :  { %v9188_v11 = vpop.f32.mrb[203].mxu1  ;;  %7154 = vst.msk [vmem:[#allocation2] sm:$0xff] %vm7153_vm4, %v7148_v8 }
0x56df   :  { %9405 = shalt.err (!%p9402_p4)
}
0x56e0   :  { %s9406_s6 = scalar_lea.hbm %s10906_s7, 128 }
0x56e1   :  { %p9407_p5 = scmp.ne.s32.totalorder %s10906_s7, %s9406_s6  ;;  %p9410_p6 = scmp.lt.u32.totalorder %s9406_s6, %s10906_s7 }
0x56e3   :  { %p9412_p7 = pnand %p9410_p6, %p9407_p5 }
0x56e5   :  { %9415 = shalt.err (!%p9412_p7)
}
0x56e6   :  { %7164 = dma.vmem_to_hbm [thread:$0]  %s7162_s5, 128, %s10906_s7, [#allocation3]  }
0x56e7   :  { %9416 = dma.done.wait [#allocation3], 128  }
0x56e8   :  { %9417 = vsyncadd [#allocation3], 4294967168 }
0x56e9   :  { %7168 = vsyncpa [#allocation3], 1 }

</bundles_post_ra>
